<compile_context>
chip_gen: v5e
topology: v5e:2x2
jax: 0.10.0
libtpu: 0.0.40
codegen_flags: <defaults>
</compile_context>

<pallas_src>
import jax
import jax.numpy as jnp
from jax.experimental import pallas as pl
from jax.experimental.pallas import tpu as pltpu

BN_EPS = 1e-5
MATMUL_DTYPE = jnp.bfloat16          # MXU operand dtype (accumulation is always f32)
VMEM_LIMIT_BYTES = 32 * 1024 * 1024  # safe on v5e/v6e (128 MiB) and v7x (64 MiB physical)


# ------------------------------- kernels -------------------------------------
def _im2col_3x3(x):
    """x: (H, W, Cin) -> (H*W, 9*Cin) patches for a 3x3 / pad=1 / stride=1 conv.

    Zero padding is built in-kernel (value level, VMEM only).  Tap order is
    (dh, dw, cin) row-major, matching `w.reshape(9*Cin, Cout)` for HWIO weights,
    so the whole conv becomes a single (H*W, 9*Cin) @ (9*Cin, Cout) MXU matmul.
    """
    H, W, Cin = x.shape
    zcol = jnp.zeros((H, 1, Cin), x.dtype)
    zrow = jnp.zeros((1, W + 2, Cin), x.dtype)
    xp = jnp.concatenate([zcol, x, zcol], axis=1)        # (H,   W+2, Cin)
    xp = jnp.concatenate([zrow, xp, zrow], axis=0)       # (H+2, W+2, Cin)
    taps = [xp[dh:dh + H, dw:dw + W, :]                  # 9 shifted windows
            for dh in range(3) for dw in range(3)]
    patches = jnp.concatenate(taps, axis=-1)             # (H, W, 9*Cin)
    return patches.reshape(H * W, 9 * Cin)


def _make_conv_stats_kernel(apply_input_affine):
    """Fused [optional BN-affine + ReLU of the previous stage] + Conv3x3 + BN partials.

    Writes the raw (pre-BN) conv activation plus per-image per-channel
    (sum, sum-of-squares) so batch statistics can be reduced across the grid.
    """
    def kernel(*refs):
        if apply_input_affine:
            x_ref, scale_ref, shift_ref, w_ref, y_ref, stats_ref = refs
        else:
            x_ref, w_ref, y_ref, stats_ref = refs
        _, H, W, _ = x_ref.shape
        Cout = y_ref.shape[-1]

        x = x_ref[0].astype(jnp.float32)                     # (H, W, Cin)
        if apply_input_affine:                               # fused BN1 affine + ReLU
            x = (x * scale_ref[...].astype(jnp.float32)
                 + shift_ref[...].astype(jnp.float32))
            x = jnp.maximum(x, 0.0)

        patches = _im2col_3x3(x).astype(MATMUL_DTYPE)        # bf16 MXU operands
        acc = jnp.dot(patches, w_ref[...],                   # single matmul, K = 9*Cin
                      preferred_element_type=jnp.float32)    # (H*W, Cout), f32 accumulate

        y_ref[...] = acc.reshape(1, H, W, Cout)
        s1 = jnp.sum(acc, axis=0, keepdims=True)             # (1, Cout)
        s2 = jnp.sum(acc * acc, axis=0, keepdims=True)       # (1, Cout)  one-pass stats
        stats_ref[...] = jnp.concatenate([s1, s2], axis=0)[None]  # (1, 2, Cout)

    return kernel


def _finalize_kernel(y_ref, scale_ref, shift_ref, res_ref, o_ref):
    """BN2 affine + residual add + final ReLU."""
    y = y_ref[...].astype(jnp.float32)
    y = y * scale_ref[...].astype(jnp.float32) + shift_ref[...].astype(jnp.float32)
    y = y + res_ref[...].astype(jnp.float32)
    o_ref[...] = jnp.maximum(y, 0.0).astype(o_ref.dtype)


# ------------------------------ pallas_call wrappers --------------------------
def _compiler_params():
    return pltpu.CompilerParams(
        dimension_semantics=("parallel",),       # batch axis -> megacore / v7x dual-TC
        vmem_limit_bytes=VMEM_LIMIT_BYTES)


def _conv_stats_call(x_nhwc, w_flat, scale=None, shift=None):
    """Per-image conv (+ optional fused input affine/ReLU) + BN partial sums."""
    N, H, W, Cin = x_nhwc.shape
    Cout = w_flat.shape[-1]

    img_in = pl.BlockSpec((1, H, W, Cin), lambda n: (n, 0, 0, 0))
    img_out = pl.BlockSpec((1, H, W, Cout), lambda n: (n, 0, 0, 0))
    stats_spec = pl.BlockSpec((1, 2, Cout), lambda n: (n, 0, 0))
    w_spec = pl.BlockSpec(w_flat.shape, lambda n: (0, 0))
    vec_spec = pl.BlockSpec((1, Cin), lambda n: (0, 0))

    apply_affine = scale is not None
    if apply_affine:
        in_specs = [img_in, vec_spec, vec_spec, w_spec]
        args = (x_nhwc, scale, shift, w_flat)
    else:
        in_specs = [img_in, w_spec]
        args = (x_nhwc, w_flat)

    return pl.pallas_call(
        _make_conv_stats_kernel(apply_affine),
        grid=(N,),
        in_specs=in_specs,
        out_specs=(img_out, stats_spec),
        out_shape=(jax.ShapeDtypeStruct((N, H, W, Cout), jnp.float32),
                   jax.ShapeDtypeStruct((N, 2, Cout), jnp.float32)),
        compiler_params=_compiler_params(),
    )(*args)


def _finalize_call(y, scale, shift, residual, out_dtype):
    N, H, W, C = y.shape
    img = pl.BlockSpec((1, H, W, C), lambda n: (n, 0, 0, 0))
    vec = pl.BlockSpec((1, C), lambda n: (0, 0))
    return pl.pallas_call(
        _finalize_kernel,
        grid=(N,),
        in_specs=[img, vec, vec, img],
        out_specs=img,
        out_shape=jax.ShapeDtypeStruct((N, H, W, C), out_dtype),
        compiler_params=_compiler_params(),
    )(y, scale, shift, residual)


def _bn_affine_from_stats(stats, gamma, beta, count):
    """Fold batch stats + gamma/beta into per-channel scale/shift: BN(y) = y*scale + shift."""
    s = jnp.sum(stats.astype(jnp.float32), axis=0)           # (2, C) global sums
    mean = s[0] / count
    var = jnp.maximum(s[1] / count - mean * mean, 0.0)       # biased var (PyTorch training)
    inv_std = jax.lax.rsqrt(var + BN_EPS)
    scale = gamma.astype(jnp.float32) * inv_std
    shift = beta.astype(jnp.float32) - mean * scale
    return scale.reshape(1, -1), shift.reshape(1, -1)


def res_block_forward(x_nchw, params):
    """ResBlock.forward with stride=1 and downsample=None (identity residual)."""
    x = jnp.transpose(x_nchw, (0, 2, 3, 1)).astype(jnp.float32)   # NCHW -> NHWC
    N, H, W, Cin = x.shape
    Cout = params["w1"].shape[-1]
    assert Cin == Cout, "identity residual requires in_channels == out_channels"

    # Conv biases are intentionally unused: with batch-statistics BN they cancel exactly.
    w1 = params["w1"].reshape(9 * Cin, Cout).astype(MATMUL_DTYPE)
    w2 = params["w2"].reshape(9 * Cout, Cout).astype(MATMUL_DTYPE)
    count = N * H * W

    # stage 1, pass 1: conv1 (pre-BN) + per-image BN partial sums
    y1, st1 = _conv_stats_call(x, w1)
    scale1, shift1 = _bn_affine_from_stats(st1, params["g1"], params["be1"], count)

    # stage 2, pass 1 (fused with BN1 affine + ReLU): conv2 (pre-BN) + partial sums
    y2, st2 = _conv_stats_call(y1, w2, scale=scale1, shift=shift1)
    scale2, shift2 = _bn_affine_from_stats(st2, params["g2"], params["be2"], count)

    # finalize: BN2 affine + residual (original x) + ReLU
    out = _finalize_call(y2, scale2, shift2, x, jnp.float32)
    return jnp.transpose(out, (0, 3, 1, 2)).astype(x_nchw.dtype)  # NHWC -> NCHW


# ---------------- pure-JAX reference (for correctness check) -----------------
def _round_mxu(a):
    return a.astype(MATMUL_DTYPE).astype(jnp.float32)


def _ref_conv(x_nhwc, w, b, matched_precision):
    if matched_precision:   # mimic bf16 MXU operands with f32 accumulation
        x_nhwc, w = _round_mxu(x_nhwc), _round_mxu(w)
    y = jax.lax.conv_general_dilated(
        x_nhwc, w, window_strides=(1, 1), padding="SAME",
        dimension_numbers=("NHWC", "HWIO", "NHWC"),
        preferred_element_type=jnp.float32)
    return y + b


def _ref_bn(y, gamma, beta):
    mean = y.mean(axis=(0, 1, 2), keepdims=True)
    var = ((y - mean) ** 2).mean(axis=(0, 1, 2), keepdims=True)
    return gamma * (y - mean) / jnp.sqrt(var + BN_EPS) + beta


def res_block_reference(x_nchw, params, matched_precision=False):
    x = jnp.transpose(x_nchw, (0, 2, 3, 1)).astype(jnp.float32)
    out = jax.nn.relu(_ref_bn(_ref_conv(x, params["w1"], params["b1"], matched_precision),
                              params["g1"], params["be1"]))
    out = _ref_bn(_ref_conv(out, params["w2"], params["b2"], matched_precision),
                  params["g2"], params["be2"])
    out = jax.nn.relu(out + x)
    return jnp.transpose(out, (0, 3, 1, 2))


# ------------------------------- parameters ----------------------------------
def init_params(key, in_channels, out_channels):
    k1, k2, k3, k4 = jax.random.split(key, 4)
    fan_in1 = in_channels * 9
    fan_in2 = out_channels * 9
    # Biases are kept for reference fidelity; the kernel drops them (they cancel in BN).
    return {
        "w1": jax.random.uniform(k1, (3, 3, in_channels, out_channels),
                                 jnp.float32, -1.0, 1.0) / jnp.sqrt(fan_in1),
        "b1": jax.random.uniform(k2, (out_channels,),
                                 jnp.float32, -1.0, 1.0) / jnp.sqrt(fan_in1),
        "g1": jnp.ones((out_channels,), jnp.float32),
        "be1": jnp.zeros((out_channels,), jnp.float32),
        "w2": jax.random.uniform(k3, (3, 3, out_channels, out_channels),
                                 jnp.float32, -1.0, 1.0) / jnp.sqrt(fan_in2),
        "b2": jax.random.uniform(k4, (out_channels,),
                                 jnp.float32, -1.0, 1.0) / jnp.sqrt(fan_in2),
        "g2": jnp.ones((out_channels,), jnp.float32),
        "be2": jnp.zeros((out_channels,), jnp.float32),
    }


if __name__ == "__main__":
    key = jax.random.PRNGKey(0)
    kx, kp = jax.random.split(key)

    N, C, H, W = 2, 4, 16, 16          # in_channels == out_channels, downsample=None
    x = jax.random.normal(kx, (N, C, H, W), jnp.float32)
    params = init_params(kp, C, C)

    out = jax.block_until_ready(jax.jit(res_block_forward)(x, params))

    # Matched-precision reference (same bf16 rounding of MXU operands, f32 elsewhere)
    # for a tight check; full-f32 reference as a looser sanity bound.
    ref_bf16 = res_block_reference(x, params, matched_precision=True)
    ref_f32 = res_block_reference(x, params, matched_precision=False)

    err_bf16 = float(jnp.max(jnp.abs(out - ref_bf16)))
    err_f32 = float(jnp.max(jnp.abs(out - ref_f32)))

    assert out.shape == (N, C, H, W)
    assert jnp.allclose(out, ref_bf16, rtol=1e-2, atol=1e-2), \
        f"max abs err vs matched-precision reference = {err_bf16}"
    assert err_f32 < 5e-2, f"max abs err vs f32 reference = {err_f32}"
    print("KERNEL_OK")
</pallas_src>

<mosaic_0001>
module attributes {stable_mosaic.version = 11 : i64} {
  func.func @kernel(%arg0: i32, %arg1: memref<1x16x16x4xf32, #tpu.memory_space<vmem>>, %arg2: memref<36x4xbf16, #tpu.memory_space<vmem>>, %arg3: memref<1x16x16x4xf32, #tpu.memory_space<vmem>>, %arg4: memref<1x2x4xf32, #tpu.memory_space<vmem>>) attributes {dimension_semantics = [#tpu.dimension_semantics<parallel>], iteration_bounds = array<i64: 2>, scalar_prefetch = 0 : i64, scratch_operands = 0 : i64, tpu.core_type = #tpu.core_type<tc>, window_params = [{transform_indices = @transform_0, window_bounds = array<i64: 1, 16, 16, 4>}, {pipeline_mode = #tpu.pipeline_mode<synchronous>, transform_indices = @transform_1, window_bounds = array<i64: 36, 4>}, {transform_indices = @transform_2, window_bounds = array<i64: 1, 16, 16, 4>}, {transform_indices = @transform_3, window_bounds = array<i64: 1, 2, 4>}]} {
    %c0 = arith.constant 0 : index
    %c0_0 = arith.constant 0 : index
    %c0_1 = arith.constant 0 : index
    %c0_2 = arith.constant 0 : index
    %0 = vector.load %arg1[%c0, %c0_0, %c0_1, %c0_2] : memref<1x16x16x4xf32, #tpu.memory_space<vmem>>, vector<1x16x16x4xf32>
    %1 = vector.shape_cast %0 : vector<1x16x16x4xf32> to vector<16x16x4xf32>
    %cst = arith.constant 0.000000e+00 : f32
    %2 = vector.broadcast %cst : f32 to vector<16x1x4xf32>
    %cst_3 = arith.constant 0.000000e+00 : f32
    %3 = vector.broadcast %cst_3 : f32 to vector<1x18x4xf32>
    %4 = tpu.concatenate %2, %1, %2 in 1 : vector<16x1x4xf32>, vector<16x16x4xf32>, vector<16x1x4xf32> -> vector<16x18x4xf32>
    %5 = tpu.concatenate %3, %4, %3 in 0 : vector<1x18x4xf32>, vector<16x18x4xf32>, vector<1x18x4xf32> -> vector<18x18x4xf32>
    %6 = vector.extract_strided_slice %5 {offsets = [0, 0, 0], sizes = [16, 16, 4], strides = [1, 1, 1]} : vector<18x18x4xf32> to vector<16x16x4xf32>
    %7 = vector.extract_strided_slice %5 {offsets = [0, 1, 0], sizes = [16, 16, 4], strides = [1, 1, 1]} : vector<18x18x4xf32> to vector<16x16x4xf32>
    %8 = vector.extract_strided_slice %5 {offsets = [0, 2, 0], sizes = [16, 16, 4], strides = [1, 1, 1]} : vector<18x18x4xf32> to vector<16x16x4xf32>
    %9 = vector.extract_strided_slice %5 {offsets = [1, 0, 0], sizes = [16, 16, 4], strides = [1, 1, 1]} : vector<18x18x4xf32> to vector<16x16x4xf32>
    %10 = vector.extract_strided_slice %5 {offsets = [1, 1, 0], sizes = [16, 16, 4], strides = [1, 1, 1]} : vector<18x18x4xf32> to vector<16x16x4xf32>
    %11 = vector.extract_strided_slice %5 {offsets = [1, 2, 0], sizes = [16, 16, 4], strides = [1, 1, 1]} : vector<18x18x4xf32> to vector<16x16x4xf32>
    %12 = vector.extract_strided_slice %5 {offsets = [2, 0, 0], sizes = [16, 16, 4], strides = [1, 1, 1]} : vector<18x18x4xf32> to vector<16x16x4xf32>
    %13 = vector.extract_strided_slice %5 {offsets = [2, 1, 0], sizes = [16, 16, 4], strides = [1, 1, 1]} : vector<18x18x4xf32> to vector<16x16x4xf32>
    %14 = vector.extract_strided_slice %5 {offsets = [2, 2, 0], sizes = [16, 16, 4], strides = [1, 1, 1]} : vector<18x18x4xf32> to vector<16x16x4xf32>
    %15 = tpu.concatenate %6, %7, %8, %9, %10, %11, %12, %13, %14 in 2 : vector<16x16x4xf32>, vector<16x16x4xf32>, vector<16x16x4xf32>, vector<16x16x4xf32>, vector<16x16x4xf32>, vector<16x16x4xf32>, vector<16x16x4xf32>, vector<16x16x4xf32>, vector<16x16x4xf32> -> vector<16x16x36xf32>
    %16 = vector.shape_cast %15 : vector<16x16x36xf32> to vector<256x36xf32>
    %17 = arith.truncf %16 : vector<256x36xf32> to vector<256x36xbf16>
    %c0_4 = arith.constant 0 : index
    %c0_5 = arith.constant 0 : index
    %18 = vector.load %arg2[%c0_4, %c0_5] : memref<36x4xbf16, #tpu.memory_space<vmem>>, vector<36x4xbf16>
    %cst_6 = arith.constant dense<0.000000e+00> : vector<256x4xf32>
    %19 = tpu.matmul %17, %18, %cst_6 {dimension_numbers = #tpu.dot_dimension_numbers<[1], [0], [0], [1], [0, 0, 1, 1], [], []>} : vector<256x36xbf16>, vector<36x4xbf16>, vector<256x4xf32> -> vector<256x4xf32>
    %20 = vector.shape_cast %19 : vector<256x4xf32> to vector<1x16x16x4xf32>
    %c0_7 = arith.constant 0 : index
    %c0_8 = arith.constant 0 : index
    %c0_9 = arith.constant 0 : index
    %c0_10 = arith.constant 0 : index
    %21 = vector.load %arg3[%c0_7, %c0_8, %c0_9, %c0_10] : memref<1x16x16x4xf32, #tpu.memory_space<vmem>>, vector<1x16x16x4xf32>
    tpu.vector_store %arg3[%c0_7, %c0_8, %c0_9, %c0_10], %20 {strides = array<i32>} : memref<1x16x16x4xf32, #tpu.memory_space<vmem>>, vector<1x16x16x4xf32>,
    %cst_11 = arith.constant dense<0.000000e+00> : vector<4xf32>
    %22 = vector.multi_reduction <add>, %19, %cst_11 [0] : vector<256x4xf32> to vector<4xf32>
    %23 = vector.shape_cast %22 : vector<4xf32> to vector<1x4xf32>
    %24 = arith.mulf %19, %19 : vector<256x4xf32>
    %cst_12 = arith.constant dense<0.000000e+00> : vector<4xf32>
    %25 = vector.multi_reduction <add>, %24, %cst_12 [0] : vector<256x4xf32> to vector<4xf32>
    %26 = vector.shape_cast %25 : vector<4xf32> to vector<1x4xf32>
    %27 = tpu.concatenate %23, %26 in 0 : vector<1x4xf32>, vector<1x4xf32> -> vector<2x4xf32>
    %28 = vector.shape_cast %27 : vector<2x4xf32> to vector<1x2x4xf32>
    %c0_13 = arith.constant 0 : index
    %c0_14 = arith.constant 0 : index
    %c0_15 = arith.constant 0 : index
    %29 = vector.load %arg4[%c0_13, %c0_14, %c0_15] : memref<1x2x4xf32, #tpu.memory_space<vmem>>, vector<1x2x4xf32>
    tpu.vector_store %arg4[%c0_13, %c0_14, %c0_15], %28 {strides = array<i32>} : memref<1x2x4xf32, #tpu.memory_space<vmem>>, vector<1x2x4xf32>,
    return
  }
  func.func @transform_0(%arg0: i32) -> (i32, i32, i32, i32) {
    %c0_i32 = arith.constant 0 : i32
    %c0_i32_0 = arith.constant 0 : i32
    %c0_i32_1 = arith.constant 0 : i32
    %c0_i32_2 = arith.constant 0 : i32
    return %arg0, %c0_i32, %c0_i32_0, %c0_i32_1 : i32, i32, i32, i32
  }
  func.func @transform_1(%arg0: i32) -> (i32, i32) {
    %c0_i32 = arith.constant 0 : i32
    %c0_i32_0 = arith.constant 0 : i32
    %c0_i32_1 = arith.constant 0 : i32
    return %c0_i32, %c0_i32_0 : i32, i32
  }
  func.func @transform_2(%arg0: i32) -> (i32, i32, i32, i32) {
    %c0_i32 = arith.constant 0 : i32
    %c0_i32_0 = arith.constant 0 : i32
    %c0_i32_1 = arith.constant 0 : i32
    %c0_i32_2 = arith.constant 0 : i32
    return %arg0, %c0_i32, %c0_i32_0, %c0_i32_1 : i32, i32, i32, i32
  }
  func.func @transform_3(%arg0: i32) -> (i32, i32, i32) {
    %c0_i32 = arith.constant 0 : i32
    %c0_i32_0 = arith.constant 0 : i32
    %c0_i32_1 = arith.constant 0 : i32
    return %arg0, %c0_i32, %c0_i32_0 : i32, i32, i32
  }
}

module attributes {stable_mosaic.version = 11 : i64} {
  func.func @_finalize_kernel(%arg0: i32, %arg1: memref<1x16x16x4xf32, #tpu.memory_space<vmem>>, %arg2: memref<1x4xf32, #tpu.memory_space<vmem>>, %arg3: memref<1x4xf32, #tpu.memory_space<vmem>>, %arg4: memref<1x16x16x4xf32, #tpu.memory_space<vmem>>, %arg5: memref<1x16x16x4xf32, #tpu.memory_space<vmem>>) attributes {dimension_semantics = [#tpu.dimension_semantics<parallel>], iteration_bounds = array<i64: 2>, scalar_prefetch = 0 : i64, scratch_operands = 0 : i64, tpu.core_type = #tpu.core_type<tc>, window_params = [{transform_indices = @transform_0, window_bounds = array<i64: 1, 16, 16, 4>}, {pipeline_mode = #tpu.pipeline_mode<synchronous>, transform_indices = @transform_1, window_bounds = array<i64: 1, 4>}, {pipeline_mode = #tpu.pipeline_mode<synchronous>, transform_indices = @transform_2, window_bounds = array<i64: 1, 4>}, {transform_indices = @transform_3, window_bounds = array<i64: 1, 16, 16, 4>}, {transform_indices = @transform_4, window_bounds = array<i64: 1, 16, 16, 4>}]} {
    %c0 = arith.constant 0 : index
    %c0_0 = arith.constant 0 : index
    %c0_1 = arith.constant 0 : index
    %c0_2 = arith.constant 0 : index
    %0 = vector.load %arg1[%c0, %c0_0, %c0_1, %c0_2] : memref<1x16x16x4xf32, #tpu.memory_space<vmem>>, vector<1x16x16x4xf32>
    %c0_3 = arith.constant 0 : index
    %c0_4 = arith.constant 0 : index
    %1 = vector.load %arg2[%c0_3, %c0_4] : memref<1x4xf32, #tpu.memory_space<vmem>>, vector<1x4xf32>
    %2 = vector.shape_cast %1 : vector<1x4xf32> to vector<1x1x1x4xf32>
    %3 = vector.broadcast %2 : vector<1x1x1x4xf32> to vector<1x16x16x4xf32>
    %4 = arith.mulf %0, %3 : vector<1x16x16x4xf32>
    %c0_5 = arith.constant 0 : index
    %c0_6 = arith.constant 0 : index
    %5 = vector.load %arg3[%c0_5, %c0_6] : memref<1x4xf32, #tpu.memory_space<vmem>>, vector<1x4xf32>
    %6 = vector.shape_cast %5 : vector<1x4xf32> to vector<1x1x1x4xf32>
    %7 = vector.broadcast %6 : vector<1x1x1x4xf32> to vector<1x16x16x4xf32>
    %8 = arith.addf %4, %7 : vector<1x16x16x4xf32>
    %c0_7 = arith.constant 0 : index
    %c0_8 = arith.constant 0 : index
    %c0_9 = arith.constant 0 : index
    %c0_10 = arith.constant 0 : index
    %9 = vector.load %arg4[%c0_7, %c0_8, %c0_9, %c0_10] : memref<1x16x16x4xf32, #tpu.memory_space<vmem>>, vector<1x16x16x4xf32>
    %10 = arith.addf %8, %9 : vector<1x16x16x4xf32>
    %cst = arith.constant 0.000000e+00 : f32
    %11 = vector.broadcast %cst : f32 to vector<1x16x16x4xf32>
    %12 = arith.maximumf %10, %11 : vector<1x16x16x4xf32>
    %c0_11 = arith.constant 0 : index
    %c0_12 = arith.constant 0 : index
    %c0_13 = arith.constant 0 : index
    %c0_14 = arith.constant 0 : index
    %13 = vector.load %arg5[%c0_11, %c0_12, %c0_13, %c0_14] : memref<1x16x16x4xf32, #tpu.memory_space<vmem>>, vector<1x16x16x4xf32>
    tpu.vector_store %arg5[%c0_11, %c0_12, %c0_13, %c0_14], %12 {strides = array<i32>} : memref<1x16x16x4xf32, #tpu.memory_space<vmem>>, vector<1x16x16x4xf32>,
    return
  }
  func.func @transform_0(%arg0: i32) -> (i32, i32, i32, i32) {
    %c0_i32 = arith.constant 0 : i32
    %c0_i32_0 = arith.constant 0 : i32
    %c0_i32_1 = arith.constant 0 : i32
    %c0_i32_2 = arith.constant 0 : i32
    return %arg0, %c0_i32, %c0_i32_0, %c0_i32_1 : i32, i32, i32, i32
  }
  func.func @transform_1(%arg0: i32) -> (i32, i32) {
    %c0_i32 = arith.constant 0 : i32
    %c0_i32_0 = arith.constant 0 : i32
    %c0_i32_1 = arith.constant 0 : i32
    return %c0_i32, %c0_i32_0 : i32, i32
  }
  func.func @transform_2(%arg0: i32) -> (i32, i32) {
    %c0_i32 = arith.constant 0 : i32
    %c0_i32_0 = arith.constant 0 : i32
    %c0_i32_1 = arith.constant 0 : i32
    return %c0_i32, %c0_i32_0 : i32, i32
  }
  func.func @transform_3(%arg0: i32) -> (i32, i32, i32, i32) {
    %c0_i32 = arith.constant 0 : i32
    %c0_i32_0 = arith.constant 0 : i32
    %c0_i32_1 = arith.constant 0 : i32
    %c0_i32_2 = arith.constant 0 : i32
    return %arg0, %c0_i32, %c0_i32_0, %c0_i32_1 : i32, i32, i32, i32
  }
  func.func @transform_4(%arg0: i32) -> (i32, i32, i32, i32) {
    %c0_i32 = arith.constant 0 : i32
    %c0_i32_0 = arith.constant 0 : i32
    %c0_i32_1 = arith.constant 0 : i32
    %c0_i32_2 = arith.constant 0 : i32
    return %arg0, %c0_i32, %c0_i32_0, %c0_i32_1 : i32, i32, i32, i32
  }
}

module attributes {stable_mosaic.version = 11 : i64} {
  func.func @kernel(%arg0: i32, %arg1: memref<1x16x16x4xf32, #tpu.memory_space<vmem>>, %arg2: memref<1x4xf32, #tpu.memory_space<vmem>>, %arg3: memref<1x4xf32, #tpu.memory_space<vmem>>, %arg4: memref<36x4xbf16, #tpu.memory_space<vmem>>, %arg5: memref<1x16x16x4xf32, #tpu.memory_space<vmem>>, %arg6: memref<1x2x4xf32, #tpu.memory_space<vmem>>) attributes {dimension_semantics = [#tpu.dimension_semantics<parallel>], iteration_bounds = array<i64: 2>, scalar_prefetch = 0 : i64, scratch_operands = 0 : i64, tpu.core_type = #tpu.core_type<tc>, window_params = [{transform_indices = @transform_0, window_bounds = array<i64: 1, 16, 16, 4>}, {pipeline_mode = #tpu.pipeline_mode<synchronous>, transform_indices = @transform_1, window_bounds = array<i64: 1, 4>}, {pipeline_mode = #tpu.pipeline_mode<synchronous>, transform_indices = @transform_2, window_bounds = array<i64: 1, 4>}, {pipeline_mode = #tpu.pipeline_mode<synchronous>, transform_indices = @transform_3, window_bounds = array<i64: 36, 4>}, {transform_indices = @transform_4, window_bounds = array<i64: 1, 16, 16, 4>}, {transform_indices = @transform_5, window_bounds = array<i64: 1, 2, 4>}]} {
    %c0 = arith.constant 0 : index
    %c0_0 = arith.constant 0 : index
    %c0_1 = arith.constant 0 : index
    %c0_2 = arith.constant 0 : index
    %0 = vector.load %arg1[%c0, %c0_0, %c0_1, %c0_2] : memref<1x16x16x4xf32, #tpu.memory_space<vmem>>, vector<1x16x16x4xf32>
    %1 = vector.shape_cast %0 : vector<1x16x16x4xf32> to vector<16x16x4xf32>
    %c0_3 = arith.constant 0 : index
    %c0_4 = arith.constant 0 : index
    %2 = vector.load %arg2[%c0_3, %c0_4] : memref<1x4xf32, #tpu.memory_space<vmem>>, vector<1x4xf32>
    %3 = vector.shape_cast %2 : vector<1x4xf32> to vector<1x1x4xf32>
    %4 = vector.broadcast %3 : vector<1x1x4xf32> to vector<16x16x4xf32>
    %5 = arith.mulf %1, %4 : vector<16x16x4xf32>
    %c0_5 = arith.constant 0 : index
    %c0_6 = arith.constant 0 : index
    %6 = vector.load %arg3[%c0_5, %c0_6] : memref<1x4xf32, #tpu.memory_space<vmem>>, vector<1x4xf32>
    %7 = vector.shape_cast %6 : vector<1x4xf32> to vector<1x1x4xf32>
    %8 = vector.broadcast %7 : vector<1x1x4xf32> to vector<16x16x4xf32>
    %9 = arith.addf %5, %8 : vector<16x16x4xf32>
    %cst = arith.constant 0.000000e+00 : f32
    %10 = vector.broadcast %cst : f32 to vector<16x16x4xf32>
    %11 = arith.maximumf %9, %10 : vector<16x16x4xf32>
    %cst_7 = arith.constant 0.000000e+00 : f32
    %12 = vector.broadcast %cst_7 : f32 to vector<16x1x4xf32>
    %cst_8 = arith.constant 0.000000e+00 : f32
    %13 = vector.broadcast %cst_8 : f32 to vector<1x18x4xf32>
    %14 = tpu.concatenate %12, %11, %12 in 1 : vector<16x1x4xf32>, vector<16x16x4xf32>, vector<16x1x4xf32> -> vector<16x18x4xf32>
    %15 = tpu.concatenate %13, %14, %13 in 0 : vector<1x18x4xf32>, vector<16x18x4xf32>, vector<1x18x4xf32> -> vector<18x18x4xf32>
    %16 = vector.extract_strided_slice %15 {offsets = [0, 0, 0], sizes = [16, 16, 4], strides = [1, 1, 1]} : vector<18x18x4xf32> to vector<16x16x4xf32>
    %17 = vector.extract_strided_slice %15 {offsets = [0, 1, 0], sizes = [16, 16, 4], strides = [1, 1, 1]} : vector<18x18x4xf32> to vector<16x16x4xf32>
    %18 = vector.extract_strided_slice %15 {offsets = [0, 2, 0], sizes = [16, 16, 4], strides = [1, 1, 1]} : vector<18x18x4xf32> to vector<16x16x4xf32>
    %19 = vector.extract_strided_slice %15 {offsets = [1, 0, 0], sizes = [16, 16, 4], strides = [1, 1, 1]} : vector<18x18x4xf32> to vector<16x16x4xf32>
    %20 = vector.extract_strided_slice %15 {offsets = [1, 1, 0], sizes = [16, 16, 4], strides = [1, 1, 1]} : vector<18x18x4xf32> to vector<16x16x4xf32>
    %21 = vector.extract_strided_slice %15 {offsets = [1, 2, 0], sizes = [16, 16, 4], strides = [1, 1, 1]} : vector<18x18x4xf32> to vector<16x16x4xf32>
    %22 = vector.extract_strided_slice %15 {offsets = [2, 0, 0], sizes = [16, 16, 4], strides = [1, 1, 1]} : vector<18x18x4xf32> to vector<16x16x4xf32>
    %23 = vector.extract_strided_slice %15 {offsets = [2, 1, 0], sizes = [16, 16, 4], strides = [1, 1, 1]} : vector<18x18x4xf32> to vector<16x16x4xf32>
    %24 = vector.extract_strided_slice %15 {offsets = [2, 2, 0], sizes = [16, 16, 4], strides = [1, 1, 1]} : vector<18x18x4xf32> to vector<16x16x4xf32>
    %25 = tpu.concatenate %16, %17, %18, %19, %20, %21, %22, %23, %24 in 2 : vector<16x16x4xf32>, vector<16x16x4xf32>, vector<16x16x4xf32>, vector<16x16x4xf32>, vector<16x16x4xf32>, vector<16x16x4xf32>, vector<16x16x4xf32>, vector<16x16x4xf32>, vector<16x16x4xf32> -> vector<16x16x36xf32>
    %26 = vector.shape_cast %25 : vector<16x16x36xf32> to vector<256x36xf32>
    %27 = arith.truncf %26 : vector<256x36xf32> to vector<256x36xbf16>
    %c0_9 = arith.constant 0 : index
    %c0_10 = arith.constant 0 : index
    %28 = vector.load %arg4[%c0_9, %c0_10] : memref<36x4xbf16, #tpu.memory_space<vmem>>, vector<36x4xbf16>
    %cst_11 = arith.constant dense<0.000000e+00> : vector<256x4xf32>
    %29 = tpu.matmul %27, %28, %cst_11 {dimension_numbers = #tpu.dot_dimension_numbers<[1], [0], [0], [1], [0, 0, 1, 1], [], []>} : vector<256x36xbf16>, vector<36x4xbf16>, vector<256x4xf32> -> vector<256x4xf32>
    %30 = vector.shape_cast %29 : vector<256x4xf32> to vector<1x16x16x4xf32>
    %c0_12 = arith.constant 0 : index
    %c0_13 = arith.constant 0 : index
    %c0_14 = arith.constant 0 : index
    %c0_15 = arith.constant 0 : index
    %31 = vector.load %arg5[%c0_12, %c0_13, %c0_14, %c0_15] : memref<1x16x16x4xf32, #tpu.memory_space<vmem>>, vector<1x16x16x4xf32>
    tpu.vector_store %arg5[%c0_12, %c0_13, %c0_14, %c0_15], %30 {strides = array<i32>} : memref<1x16x16x4xf32, #tpu.memory_space<vmem>>, vector<1x16x16x4xf32>,
    %cst_16 = arith.constant dense<0.000000e+00> : vector<4xf32>
    %32 = vector.multi_reduction <add>, %29, %cst_16 [0] : vector<256x4xf32> to vector<4xf32>
    %33 = vector.shape_cast %32 : vector<4xf32> to vector<1x4xf32>
    %34 = arith.mulf %29, %29 : vector<256x4xf32>
    %cst_17 = arith.constant dense<0.000000e+00> : vector<4xf32>
    %35 = vector.multi_reduction <add>, %34, %cst_17 [0] : vector<256x4xf32> to vector<4xf32>
    %36 = vector.shape_cast %35 : vector<4xf32> to vector<1x4xf32>
    %37 = tpu.concatenate %33, %36 in 0 : vector<1x4xf32>, vector<1x4xf32> -> vector<2x4xf32>
    %38 = vector.shape_cast %37 : vector<2x4xf32> to vector<1x2x4xf32>
    %c0_18 = arith.constant 0 : index
    %c0_19 = arith.constant 0 : index
    %c0_20 = arith.constant 0 : index
    %39 = vector.load %arg6[%c0_18, %c0_19, %c0_20] : memref<1x2x4xf32, #tpu.memory_space<vmem>>, vector<1x2x4xf32>
    tpu.vector_store %arg6[%c0_18, %c0_19, %c0_20], %38 {strides = array<i32>} : memref<1x2x4xf32, #tpu.memory_space<vmem>>, vector<1x2x4xf32>,
    return
  }
  func.func @transform_0(%arg0: i32) -> (i32, i32, i32, i32) {
    %c0_i32 = arith.constant 0 : i32
    %c0_i32_0 = arith.constant 0 : i32
    %c0_i32_1 = arith.constant 0 : i32
    %c0_i32_2 = arith.constant 0 : i32
    return %arg0, %c0_i32, %c0_i32_0, %c0_i32_1 : i32, i32, i32, i32
  }
  func.func @transform_1(%arg0: i32) -> (i32, i32) {
    %c0_i32 = arith.constant 0 : i32
    %c0_i32_0 = arith.constant 0 : i32
    %c0_i32_1 = arith.constant 0 : i32
    return %c0_i32, %c0_i32_0 : i32, i32
  }
  func.func @transform_2(%arg0: i32) -> (i32, i32) {
    %c0_i32 = arith.constant 0 : i32
    %c0_i32_0 = arith.constant 0 : i32
    %c0_i32_1 = arith.constant 0 : i32
    return %c0_i32, %c0_i32_0 : i32, i32
  }
  func.func @transform_3(%arg0: i32) -> (i32, i32) {
    %c0_i32 = arith.constant 0 : i32
    %c0_i32_0 = arith.constant 0 : i32
    %c0_i32_1 = arith.constant 0 : i32
    return %c0_i32, %c0_i32_0 : i32, i32
  }
  func.func @transform_4(%arg0: i32) -> (i32, i32, i32, i32) {
    %c0_i32 = arith.constant 0 : i32
    %c0_i32_0 = arith.constant 0 : i32
    %c0_i32_1 = arith.constant 0 : i32
    %c0_i32_2 = arith.constant 0 : i32
    return %arg0, %c0_i32, %c0_i32_0, %c0_i32_1 : i32, i32, i32, i32
  }
  func.func @transform_5(%arg0: i32) -> (i32, i32, i32) {
    %c0_i32 = arith.constant 0 : i32
    %c0_i32_0 = arith.constant 0 : i32
    %c0_i32_1 = arith.constant 0 : i32
    return %arg0, %c0_i32, %c0_i32_0 : i32, i32, i32
  }
}

</mosaic_0001>

<bundles_post_ra>
// kernel: res_block_forward.5
= control target key start
LH: loop header
LB: loop body
LE: loop exit
PB: predicated region body
PF: predicated region fallthrough
CT: control target
= control target key end

     0   :  { %s577_s15 = smov 0   ;;  %s810_s0 = inlined_call_operand.vmem [shape: f32[2,16,16,4], index: 0, kind: input, shape index: {}]   ;;  %s811_s1 = inlined_call_operand.vmem [shape: f32[1,4], index: 1, kind: input, shape index: {}]   ;;  %s812_s2 = inlined_call_operand.vmem [shape: f32[1,4], index: 2, kind: input, shape index: {}]   ;;  %s813_s3 = inlined_call_operand.vmem [shape: f32[2,16,16,4], index: 3, kind: input, shape index: {}]   ;;  %s814_s4 = inlined_call_operand.vmem [shape: f32[2,16,16,4], index: 4, kind: output, shape index: {}]  }
   0x1 LB: > { %s518_s16 = sadd.s32 4294967295, %s550_s15   ;;  %p522_p0 = scmp.ge.s32.totalorder %s550_s15, 1  ;;  %s550_s15 = sphi %s577_s15, %s14_s15  }
   0x2   : > { %p172_p1 = scmp.lt.s32.totalorder %s550_s15, 3 }
   0x4   : > { %p173_p2 = pnand %p522_p0, %p172_p1 }
   0x5   : > { %p203_p3 = scmp.lt.s32.totalorder (!%p173_p2), %s518_s16, 1 }
   0x6   : > { %176 = sbr.rel (%p173_p2) target bundleno = 55 (0x37), region = 36 }
   0xb   : > { %s816_s16 = smov (!%p203_p3, %s518_s16), 1  ;;  %v588_v0 = vld [vmem:[%s811_s1] ss:$0 sm:$0xff]  ;;  %vm418_vm0 = vcmask 31744  }
   0xc   : > { %s590_s19 = sshll.u32 %s816_s16, 8  ;;  %v607_v1 = vld [vmem:[%s812_s2] ss:$0 sm:$0xff] }
   0xd   : > { %s596_s22 = scalar_lea.vmem %s810_s0, %s590_s19  ;;  %s602_s25 = scalar_lea.vmem %s813_s3, %s590_s19 }
   0xe   : > { %v218_v2 = vld [vmem:[%s596_s22] sm:$0xff]  ;;  %v219_v3 = vld [vmem:[%s596_s22 + $0x8] sm:$0xff]  ;;  %v220_v7 = vld [vmem:[%s596_s22 + $0x10] sm:$0xff]  ;;  %s638_s30 = scalar_lea.vmem %s814_s4, %s590_s19 }
   0xf   : > { %v254_v4 = vmul.f32 %v588_v0, %v218_v2  ;;  %v322_v5 = vld [vmem:[%s602_s25] sm:$0xff]  ;;  %v255_v6 = vmul.f32 %v588_v0, %v219_v3  ;;  %v323_v8 = vld [vmem:[%s602_s25 + $0x8] sm:$0xff]  ;;  %v256_v9 = vmul.f32 %v588_v0, %v220_v7  ;;  %v221_v10 = vld [vmem:[%s596_s22 + $0x18] sm:$0xff] }
  0x10   : > { %v222_v11 = vld [vmem:[%s596_s22 + $0x20] sm:$0xff]  ;;  %v324_v14 = vld [vmem:[%s602_s25 + $0x10] sm:$0xff]  ;;  %v257_v15 = vmul.f32 %v588_v0, %v221_v10  ;;  %v325_v16 = vld [vmem:[%s602_s25 + $0x18] sm:$0xff] }
  0x11   : > { %v290_v12 = vadd.f32 %v607_v1, %v254_v4  ;;  %v291_v13 = vadd.f32 %v607_v1, %v255_v6  ;;  %v258_v17 = vmul.f32 %v588_v0, %v222_v11  ;;  %v223_v18 = vld [vmem:[%s596_s22 + $0x28] sm:$0xff]  ;;  %v292_v19 = vadd.f32 %v607_v1, %v256_v9  ;;  %v326_v20 = vld [vmem:[%s602_s25 + $0x20] sm:$0xff]  ;;  %v224_v22 = vld [vmem:[%s596_s22 + $0x30] sm:$0xff] }
  0x12   : > { %v259_v21 = vmul.f32 %v588_v0, %v223_v18  ;;  %v225_v23 = vld [vmem:[%s596_s22 + $0x38] sm:$0xff]  ;;  %v293_v26 = vadd.f32 %v607_v1, %v257_v15  ;;  %v327_v28 = vld [vmem:[%s602_s25 + $0x28] sm:$0xff]  ;;  %v260_v31 = vmul.f32 %v588_v0, %v224_v22  ;;  %v226_v33 = vld [vmem:[%s596_s22 + $0x40] sm:$0xff] }
  0x13   : > { %v354_v24 = vadd.f32 %v322_v5, %v290_v12  ;;  %v355_v25 = vadd.f32 %v323_v8, %v291_v13  ;;  %v294_v27 = vadd.f32 %v607_v1, %v258_v17  ;;  %v356_v29 = vadd.f32 %v324_v14, %v292_v19  ;;  %v227_v34 = vld [vmem:[%s596_s22 + $0x48] sm:$0xff]  ;;  %v328_v39 = vld [vmem:[%s602_s25 + $0x30] sm:$0xff]  ;;  %v329_v40 = vld [vmem:[%s602_s25 + $0x38] sm:$0xff] }
  0x14   : > { %v295_v30 = vadd.f32 %v607_v1, %v259_v21  ;;  %v261_v32 = vmul.f32 %v588_v0, %v225_v23  ;;  %v357_v37 = vadd.f32 %v325_v16, %v293_v26  ;;  %v228_v41 = vld [vmem:[%s596_s22 + $0x50] sm:$0xff]  ;;  %v296_v44 = vadd.f32 %v607_v1, %v260_v31  ;;  %v229_v46 = vld [vmem:[%s596_s22 + $0x58] sm:$0xff]  ;;  %v230_v47 = vld [vmem:[%s596_s22 + $0x60] sm:$0xff] }
  0x15   : > { %v386_v35 = vmax.f32 %v354_v24, 0.0  ;;  %v387_v36 = vmax.f32 %v355_v25, 0.0  ;;  %v358_v38 = vadd.f32 %v326_v20, %v294_v27  ;;  %v388_v42 = vmax.f32 %v356_v29, 0.0  ;;  %v231_v52 = vld [vmem:[%s596_s22 + $0x68] sm:$0xff]  ;;  %v330_v56 = vld [vmem:[%s602_s25 + $0x40] sm:$0xff]  ;;  %v332_v61 = vld [vmem:[%s602_s25 + $0x50] sm:$0xff] }
  0x16   : > { %v359_v43 = vadd.f32 %v327_v28, %v295_v30  ;;  %v297_v45 = vadd.f32 %v607_v1, %v261_v32  ;;  %v389_v48 = vmax.f32 %v357_v37, 0.0  ;;  %v262_v50 = vmul.f32 %v588_v0, %v226_v33  ;;  %v331_v57 = vld [vmem:[%s602_s25 + $0x48] sm:$0xff]  ;;  %v232_v2 = vld [vmem:[%s596_s22 + $0x70] sm:$0xff]  ;;  %v233_v3 = vld [vmem:[%s596_s22 + $0x78] sm:$0xff] }
  0x17   : > { %419 = vst.msk [vmem:[%s638_s30] sm:$0xff] %vm418_vm0, %v386_v35  ;;  %v390_v49 = vmax.f32 %v358_v38, 0.0  ;;  %v263_v51 = vmul.f32 %v588_v0, %v227_v34  ;;  %v360_v54 = vadd.f32 %v328_v39, %v296_v44  ;;  %v264_v58 = vmul.f32 %v588_v0, %v228_v41  ;;  %v333_v7 = vld [vmem:[%s602_s25 + $0x58] sm:$0xff]  ;;  %v334_v8 = vld [vmem:[%s602_s25 + $0x60] sm:$0xff]  ;;  %v335_v14 = vld [vmem:[%s602_s25 + $0x68] sm:$0xff] }
  0x18   : > { %420 = vst.msk [vmem:[%s638_s30 + $0x8] sm:$0xff] %vm418_vm0, %v387_v36  ;;  %v391_v53 = vmax.f32 %v359_v43, 0.0  ;;  %v361_v55 = vadd.f32 %v329_v40, %v297_v45  ;;  %v298_v59 = vadd.f32 %v607_v1, %v262_v50  ;;  %v265_v62 = vmul.f32 %v588_v0, %v229_v46  ;;  %v234_v19 = vld [vmem:[%s596_s22 + $0x80] sm:$0xff]  ;;  %v235_v20 = vld [vmem:[%s596_s22 + $0x88] sm:$0xff]  ;;  %v336_v25 = vld [vmem:[%s602_s25 + $0x70] sm:$0xff] }
  0x19   : > { %421 = vst.msk [vmem:[%s638_s30 + $0x10] sm:$0xff] %vm418_vm0, %v388_v42  ;;  %v299_v60 = vadd.f32 %v607_v1, %v263_v51  ;;  %v266_v63 = vmul.f32 %v588_v0, %v230_v47  ;;  %v392_v4 = vmax.f32 %v360_v54, 0.0  ;;  %v300_v6 = vadd.f32 %v607_v1, %v264_v58  ;;  %v337_v26 = vld [vmem:[%s602_s25 + $0x78] sm:$0xff]  ;;  %v236_v27 = vld [vmem:[%s596_s22 + $0x90] sm:$0xff]  ;;  %v238_v33 = vld [vmem:[%s596_s22 + $0xa0] sm:$0xff] }
  0x1a   : > { %422 = vst.msk [vmem:[%s638_s30 + $0x18] sm:$0xff] %vm418_vm0, %v389_v48  ;;  %v393_v5 = vmax.f32 %v361_v55, 0.0  ;;  %v267_v9 = vmul.f32 %v588_v0, %v231_v52  ;;  %v362_v10 = vadd.f32 %v330_v56, %v298_v59  ;;  %v301_v12 = vadd.f32 %v607_v1, %v265_v62  ;;  %v237_v32 = vld [vmem:[%s596_s22 + $0x98] sm:$0xff]  ;;  %v239_v38 = vld [vmem:[%s596_s22 + $0xa8] sm:$0xff]  ;;  %v338_v42 = vld [vmem:[%s602_s25 + $0x80] sm:$0xff] }
  0x1b   : > { %423 = vst.msk [vmem:[%s638_s30 + $0x20] sm:$0xff] %vm418_vm0, %v390_v49  ;;  %v363_v11 = vadd.f32 %v331_v57, %v299_v60  ;;  %v302_v13 = vadd.f32 %v607_v1, %v266_v63  ;;  %v364_v15 = vadd.f32 %v332_v61, %v300_v6  ;;  %v268_v17 = vmul.f32 %v588_v0, %v232_v2  ;;  %v339_v43 = vld [vmem:[%s602_s25 + $0x88] sm:$0xff]  ;;  %v340_v47 = vld [vmem:[%s602_s25 + $0x90] sm:$0xff]  ;;  %v241_v51 = vld [vmem:[%s596_s22 + $0xb8] sm:$0xff] }
  0x1c   : > { %424 = vst.msk [vmem:[%s638_s30 + $0x28] sm:$0xff] %vm418_vm0, %v391_v53  ;;  %v303_v16 = vadd.f32 %v607_v1, %v267_v9  ;;  %v269_v18 = vmul.f32 %v588_v0, %v233_v3  ;;  %v394_v21 = vmax.f32 %v362_v10, 0.0  ;;  %v365_v23 = vadd.f32 %v333_v7, %v301_v12  ;;  %v240_v50 = vld [vmem:[%s596_s22 + $0xb0] sm:$0xff]  ;;  %v341_v55 = vld [vmem:[%s602_s25 + $0x98] sm:$0xff]  ;;  %v342_v56 = vld [vmem:[%s602_s25 + $0xa0] sm:$0xff] }
  0x1d   : > { %425 = vst.msk [vmem:[%s638_s30 + $0x30] sm:$0xff] %vm418_vm0, %v392_v4  ;;  %v395_v22 = vmax.f32 %v363_v11, 0.0  ;;  %v366_v24 = vadd.f32 %v334_v8, %v302_v13  ;;  %v396_v28 = vmax.f32 %v364_v15, 0.0  ;;  %v304_v30 = vadd.f32 %v607_v1, %v268_v17  ;;  %v343_v62 = vld [vmem:[%s602_s25 + $0xa8] sm:$0xff]  ;;  %v344_v11 = vld [vmem:[%s602_s25 + $0xb0] sm:$0xff]  ;;  %v345_v12 = vld [vmem:[%s602_s25 + $0xb8] sm:$0xff] }
  0x1e   : > { %426 = vst.msk [vmem:[%s638_s30 + $0x38] sm:$0xff] %vm418_vm0, %v393_v5  ;;  %v367_v29 = vadd.f32 %v335_v14, %v303_v16  ;;  %v305_v31 = vadd.f32 %v607_v1, %v269_v18  ;;  %v397_v34 = vmax.f32 %v365_v23, 0.0  ;;  %v270_v36 = vmul.f32 %v588_v0, %v234_v19  ;;  %v242_v5 = vld [vmem:[%s596_s22 + $0xc0] sm:$0xff]  ;;  %v243_v6 = vld [vmem:[%s596_s22 + $0xc8] sm:$0xff]  ;;  %v244_v13 = vld [vmem:[%s596_s22 + $0xd0] sm:$0xff] }
  0x1f   : > { %427 = vst.msk [vmem:[%s638_s30 + $0x40] sm:$0xff] %vm418_vm0, %v394_v21  ;;  %v398_v35 = vmax.f32 %v366_v24, 0.0  ;;  %v271_v37 = vmul.f32 %v588_v0, %v235_v20  ;;  %v368_v40 = vadd.f32 %v336_v25, %v304_v30  ;;  %v272_v44 = vmul.f32 %v588_v0, %v236_v27  ;;  %v245_v18 = vld [vmem:[%s596_s22 + $0xd8] sm:$0xff]  ;;  %v246_v19 = vld [vmem:[%s596_s22 + $0xe0] sm:$0xff]  ;;  %v247_v24 = vld [vmem:[%s596_s22 + $0xe8] sm:$0xff] }
  0x20   : > { %428 = vst.msk [vmem:[%s638_s30 + $0x48] sm:$0xff] %vm418_vm0, %v395_v22  ;;  %v399_v39 = vmax.f32 %v367_v29, 0.0  ;;  %v369_v41 = vadd.f32 %v337_v26, %v305_v31  ;;  %v306_v45 = vadd.f32 %v607_v1, %v270_v36  ;;  %v273_v48 = vmul.f32 %v588_v0, %v237_v32  ;;  %v347_v29 = vld [vmem:[%s602_s25 + $0xc8] sm:$0xff]  ;;  %v248_v36 = vld [vmem:[%s596_s22 + $0xf0] sm:$0xff] }
  0x21   : > { %429 = vst.msk [vmem:[%s638_s30 + $0x50] sm:$0xff] %vm418_vm0, %v396_v28  ;;  %v307_v46 = vadd.f32 %v607_v1, %v271_v37  ;;  %v274_v49 = vmul.f32 %v588_v0, %v238_v33  ;;  %v400_v52 = vmax.f32 %v368_v40, 0.0  ;;  %v308_v54 = vadd.f32 %v607_v1, %v272_v44  ;;  %v346_v28 = vld [vmem:[%s602_s25 + $0xc0] sm:$0xff]  ;;  %v348_v33 = vld [vmem:[%s602_s25 + $0xd0] sm:$0xff]  ;;  %v249_v37 = vld [vmem:[%s596_s22 + $0xf8] sm:$0xff] }
  0x22   : > { %430 = vst.msk [vmem:[%s638_s30 + $0x58] sm:$0xff] %vm418_vm0, %v397_v34  ;;  %v401_v53 = vmax.f32 %v369_v41, 0.0  ;;  %v275_v57 = vmul.f32 %v588_v0, %v239_v38  ;;  %v370_v58 = vadd.f32 %v338_v42, %v306_v45  ;;  %v309_v60 = vadd.f32 %v607_v1, %v273_v48  ;;  %v349_v41 = vld [vmem:[%s602_s25 + $0xd8] sm:$0xff]  ;;  %v350_v42 = vld [vmem:[%s602_s25 + $0xe0] sm:$0xff]  ;;  %v351_v48 = vld [vmem:[%s602_s25 + $0xe8] sm:$0xff] }
  0x23   : > { %431 = vst.msk [vmem:[%s638_s30 + $0x60] sm:$0xff] %vm418_vm0, %v398_v35  ;;  %v371_v59 = vadd.f32 %v339_v43, %v307_v46  ;;  %v310_v61 = vadd.f32 %v607_v1, %v274_v49  ;;  %v372_v63 = vadd.f32 %v340_v47, %v308_v54  ;;  %v276_v3 = vmul.f32 %v588_v0, %v240_v50 }
  0x24   : > { %432 = vst.msk [vmem:[%s638_s30 + $0x68] sm:$0xff] %vm418_vm0, %v399_v39  ;;  %v311_v2 = vadd.f32 %v607_v1, %v275_v57  ;;  %v277_v4 = vmul.f32 %v588_v0, %v241_v51  ;;  %v402_v7 = vmax.f32 %v370_v58, 0.0  ;;  %v373_v9 = vadd.f32 %v341_v55, %v309_v60  ;;  %v352_v57 = vld [vmem:[%s602_s25 + $0xf0] sm:$0xff]  ;;  %v353_v58 = vld [vmem:[%s602_s25 + $0xf8] sm:$0xff] }
  0x25   : > { %433 = vst.msk [vmem:[%s638_s30 + $0x70] sm:$0xff] %vm418_vm0, %v400_v52  ;;  %v403_v8 = vmax.f32 %v371_v59, 0.0  ;;  %v374_v10 = vadd.f32 %v342_v56, %v310_v61  ;;  %v404_v14 = vmax.f32 %v372_v63, 0.0  ;;  %v312_v16 = vadd.f32 %v607_v1, %v276_v3 }
  0x26   : > { %434 = vst.msk [vmem:[%s638_s30 + $0x78] sm:$0xff] %vm418_vm0, %v401_v53  ;;  %v375_v15 = vadd.f32 %v343_v62, %v311_v2  ;;  %v313_v17 = vadd.f32 %v607_v1, %v277_v4  ;;  %v405_v20 = vmax.f32 %v373_v9, 0.0  ;;  %v278_v22 = vmul.f32 %v588_v0, %v242_v5 }
  0x27   : > { %435 = vst.msk [vmem:[%s638_s30 + $0x80] sm:$0xff] %vm418_vm0, %v402_v7  ;;  %v406_v21 = vmax.f32 %v374_v10, 0.0  ;;  %v279_v23 = vmul.f32 %v588_v0, %v243_v6  ;;  %v376_v26 = vadd.f32 %v344_v11, %v312_v16  ;;  %v280_v30 = vmul.f32 %v588_v0, %v244_v13 }
  0x28   : > { %436 = vst.msk [vmem:[%s638_s30 + $0x88] sm:$0xff] %vm418_vm0, %v403_v8  ;;  %v407_v25 = vmax.f32 %v375_v15, 0.0  ;;  %v377_v27 = vadd.f32 %v345_v12, %v313_v17  ;;  %v314_v31 = vadd.f32 %v607_v1, %v278_v22  ;;  %v281_v34 = vmul.f32 %v588_v0, %v245_v18 }
  0x29   : > { %437 = vst.msk [vmem:[%s638_s30 + $0x90] sm:$0xff] %vm418_vm0, %v404_v14  ;;  %v315_v32 = vadd.f32 %v607_v1, %v279_v23  ;;  %v282_v35 = vmul.f32 %v588_v0, %v246_v19  ;;  %v408_v38 = vmax.f32 %v376_v26, 0.0  ;;  %v316_v40 = vadd.f32 %v607_v1, %v280_v30 }
  0x2a   : > { %438 = vst.msk [vmem:[%s638_s30 + $0x98] sm:$0xff] %vm418_vm0, %v405_v20  ;;  %v409_v39 = vmax.f32 %v377_v27, 0.0  ;;  %v283_v43 = vmul.f32 %v588_v0, %v247_v24  ;;  %v378_v44 = vadd.f32 %v346_v28, %v314_v31  ;;  %v317_v46 = vadd.f32 %v607_v1, %v281_v34 }
  0x2b   : > { %439 = vst.msk [vmem:[%s638_s30 + $0xa0] sm:$0xff] %vm418_vm0, %v406_v21  ;;  %v379_v45 = vadd.f32 %v347_v29, %v315_v32  ;;  %v318_v47 = vadd.f32 %v607_v1, %v282_v35  ;;  %v380_v49 = vadd.f32 %v348_v33, %v316_v40  ;;  %v284_v51 = vmul.f32 %v588_v0, %v248_v36 }
  0x2c   : > { %440 = vst.msk [vmem:[%s638_s30 + $0xa8] sm:$0xff] %vm418_vm0, %v407_v25  ;;  %v319_v50 = vadd.f32 %v607_v1, %v283_v43  ;;  %v285_v52 = vmul.f32 %v588_v0, %v249_v37  ;;  %v410_v53 = vmax.f32 %v378_v44, 0.0  ;;  %v381_v55 = vadd.f32 %v349_v41, %v317_v46 }
  0x2d   : > { %441 = vst.msk [vmem:[%s638_s30 + $0xb0] sm:$0xff] %vm418_vm0, %v408_v38  ;;  %v411_v54 = vmax.f32 %v379_v45, 0.0  ;;  %v382_v56 = vadd.f32 %v350_v42, %v318_v47  ;;  %v412_v59 = vmax.f32 %v380_v49, 0.0  ;;  %v320_v0 = vadd.f32 %v607_v1, %v284_v51 }
  0x2e   : > { %442 = vst.msk [vmem:[%s638_s30 + $0xb8] sm:$0xff] %vm418_vm0, %v409_v39  ;;  %v383_v60 = vadd.f32 %v351_v48, %v319_v50  ;;  %v321_v61 = vadd.f32 %v607_v1, %v285_v52  ;;  %v413_v62 = vmax.f32 %v381_v55, 0.0 }
  0x2f   : > { %443 = vst.msk [vmem:[%s638_s30 + $0xc0] sm:$0xff] %vm418_vm0, %v410_v53  ;;  %v414_v63 = vmax.f32 %v382_v56, 0.0  ;;  %v384_v3 = vadd.f32 %v352_v57, %v320_v0 }
  0x30   : > { %444 = vst.msk [vmem:[%s638_s30 + $0xc8] sm:$0xff] %vm418_vm0, %v411_v54  ;;  %v415_v2 = vmax.f32 %v383_v60, 0.0  ;;  %v385_v4 = vadd.f32 %v353_v58, %v321_v61 }
  0x31   : > { %445 = vst.msk [vmem:[%s638_s30 + $0xd0] sm:$0xff] %vm418_vm0, %v412_v59  ;;  %v416_v5 = vmax.f32 %v384_v3, 0.0 }
  0x32   : > { %446 = vst.msk [vmem:[%s638_s30 + $0xd8] sm:$0xff] %vm418_vm0, %v413_v62  ;;  %v417_v6 = vmax.f32 %v385_v4, 0.0 }
  0x33   : > { %447 = vst.msk [vmem:[%s638_s30 + $0xe0] sm:$0xff] %vm418_vm0, %v414_v63 }
  0x34   : > { %448 = vst.msk [vmem:[%s638_s30 + $0xe8] sm:$0xff] %vm418_vm0, %v415_v2 }
  0x35   : > { %449 = vst.msk [vmem:[%s638_s30 + $0xf0] sm:$0xff] %vm418_vm0, %v416_v5 }
  0x36   : > { %450 = vst.msk [vmem:[%s638_s30 + $0xf8] sm:$0xff] %vm418_vm0, %v417_v6 }
  0x37 PF: > { %s14_s15 = sadd.s32 1, %s550_s15  }
  0x38   : > { %p11_p4 = scmp.ge.s32.totalorder %s14_s15, 4  }
  0x3a   :  { %13 = sbr.rel (!%p11_p4) target bundleno = 1 (0x1), region = 69 }

// kernel: res_block_forward.3
= control target key start
LH: loop header
LB: loop body
LE: loop exit
PB: predicated region body
PF: predicated region fallthrough
CT: control target
= control target key end

     0   :  { %s2776_s12 = smov 0   ;;  %s4625_s0 = inlined_call_operand.vmem [shape: f32[2,16,16,4], index: 0, kind: input, shape index: {}]   ;;  %s4626_s1 = inlined_call_operand.vmem [shape: bf16[36,4], index: 1, kind: input, shape index: {}]   ;;  %s4627_s2 = inlined_call_operand.vmem [shape: f32[2,16,16,4], index: 2, kind: output, shape index: {0}]   ;;  %s4628_s3 = inlined_call_operand.vmem [shape: f32[2,2,4], index: 3, kind: output, shape index: {1}]  }
   0x1 LB: > { %s2058_s13 = sadd.s32 4294967295, %s2745_s12   ;;  %p2062_p0 = scmp.ge.s32.totalorder %s2745_s12, 1  ;;  %s2745_s12 = sphi %s2776_s12, %s14_s12  }
   0x2   : > { %p140_p1 = scmp.lt.s32.totalorder %s2745_s12, 3 }
   0x4   : > { %p141_p2 = pnand %p2062_p0, %p140_p1 }
   0x6   : > { %144 = sbr.rel (%p141_p2) target bundleno = 655 (0x28f), region = 28 }
   0xb   : > { %p168_p3 = scmp.lt.s32.totalorder %s2058_s13, 1  ;;  %vm247_vm0 = vcmask 1040384   ;;  %vm406_vm1 = vcmask 1046528   ;;  %v4629_v40 = vmov 0.0   ;;  %s2748_s18 = smov 4   ;;  %vm577_vm2 = vcmask 1045504  }
   0xc   : > { %v2856_v41 = vrot.slane %v4629_v40, 1  ;;  %s2749_s19 = smov 8   ;;  %s2750_s20 = smov 12   ;;  %vm1359_vm3 = vcmask 64512   ;;  %vm1327_vm4 = vcmask 31744   ;;  %vm1391_vm5 = vcmask 97280  }
   0xd   : > { %s4892_s13 = smov (!%p168_p3, %s2058_s13), 1  ;;  %s2751_s21 = smov 16   ;;  %vm1424_vm6 = vcmask 130048   ;;  %vm1457_vm7 = vcmask 162816   ;;  %vm1674_vm8 = vcmask 1041408   ;;  %vm1490_vm9 = vcmask 195584  }
   0xe   : > { %s2094_s14 = sshll.u32 %s4892_s13, 8  ;;  %4718 = vst [vmem:[#allocation4_spill] sm:$0xff] %v2856_v41  ;;  %s2752_s22 = smov 20   ;;  %vm1523_vm10 = vcmask 228352   ;;  %vm1556_vm11 = vcmask 261120   ;;  %vm1625_vm12 = vcmask 293888  }
   0xf   : > { %s2792_s17 = scalar_lea.vmem %s4625_s0, %s2094_s14  ;;  %s2753_s23 = smov 32   ;;  %vm1970_vm13 = vcmask 25600  }
  0x10   : > { %v189_v0 = vld [vmem:[%s2792_s17 + $0x30] sm:$0xff]  ;;  %v190_v1 = vld [vmem:[%s2792_s17 + $0x38] sm:$0xff]  ;;  %v191_v2 = vld [vmem:[%s2792_s17 + $0x40] sm:$0xff]  ;;  %s2754_s24 = smov 28   ;;  %s2755_s25 = smov 24  }
  0x11   : > { %v192_v3 = vld [vmem:[%s2792_s17 + $0x48] sm:$0xff]  ;;  %v257_v4 = vrot.slane %v189_v0, 7  ;;  %v258_v5 = vrot.slane %v190_v1, 7  ;;  %v260_v6 = vrot.slane %v191_v2, 7  ;;  %v2799_v7 = vld [vmem:[%s2792_s17 + $0x10] sm:$0xff]  ;;  %v186_v8 = vld [vmem:[%s2792_s17 + $0x18] sm:$0xff]  ;;  %s4432_s7 = scalar_lea.vmem %s4627_s2, %s2094_s14 }
  0x12   : > { %v261_v9 = vrot.slane %v192_v3, 7  ;;  %v187_v10 = vld [vmem:[%s2792_s17 + $0x20] sm:$0xff]  ;;  %v188_v11 = vld [vmem:[%s2792_s17 + $0x28] sm:$0xff]  ;;  %v251_v12 = vrot.slane %v2799_v7, 7  ;;  %v252_v13 = vrot.slane %v186_v8, 7  ;;  %v193_v31 = vld [vmem:[%s2792_s17 + $0x50] sm:$0xff] }
  0x13   : > { %v2806_v14 = vsel %vm247_vm0, %v257_v4, %v258_v5  ;;  %v2809_v15 = vsel %vm247_vm0, 0.0, %v260_v6  ;;  %v2812_v16 = vsel %vm247_vm0, %v258_v5, 0.0  ;;  %v254_v17 = vrot.slane %v187_v10, 7  ;;  %v183_v25 = vld [vmem:[%s2792_s17] sm:$0xff]  ;;  %v184_v30 = vld [vmem:[%s2792_s17 + $0x8] sm:$0xff]  ;;  %v2842_v32 = vld [vmem:[%s2792_s17 + $0x58] sm:$0xff] }
  0x14   : > { %v2815_v18 = vsel %vm247_vm0, %v260_v6, %v261_v9  ;;  %v425_v19 = vrot.slane %v2806_v14, 1  ;;  %v427_v20 = vrot.slane %v2812_v16, 1  ;;  %v429_v21 = vrot.slane %v2809_v15, 1  ;;  %v197_v2 = vld [vmem:[%s2792_s17 + $0x70] sm:$0xff]  ;;  %v198_v3 = vld [vmem:[%s2792_s17 + $0x78] sm:$0xff]  ;;  %v2927_v10 = vld [vmem:[%s2792_s17 + $0x88] sm:$0xff] }
  0x15   : > { %v430_v22 = vrot.slane %v2815_v18, 1  ;;  %v2824_v23 = vsel %vm247_vm0, %v251_v12, %v252_v13  ;;  %v255_v24 = vrot.slane %v188_v11, 7  ;;  %v2833_v27 = vsel %vm247_vm0, 0.0, %v254_v17  ;;  %v195_v11 = vld [vmem:[%s2792_s17 + $0x60] sm:$0xff]  ;;  %s2067_s8 = sshll.u32 %s4892_s13, 1 }
  0x16   : > { %v2830_v26 = vsel %vm406_vm1, %v425_v19, %v427_v20  ;;  %v2836_v28 = vsel %vm247_vm0, %v252_v13, 0.0  ;;  %v415_v29 = vrot.slane %v2824_v23, 1  ;;  %v419_v36 = vrot.slane %v2833_v27, 1  ;;  %v196_v13 = vld [vmem:[%s2792_s17 + $0x68] sm:$0xff]  ;;  %s181_s11 = scalar_lea.vmem %s4628_s3, %s2067_s8 }
  0x17   : > { %4716 = vst [vmem:[#allocation2_spill] sm:$0xff] %v2830_v26  ;;  %v2845_v33 = vsel %vm406_vm1, %v429_v21, %v430_v22  ;;  %v2848_v34 = vsel %vm247_vm0, %v254_v17, %v255_v24  ;;  %v417_v35 = vrot.slane %v2836_v28, 1  ;;  %v248_v39 = vrot.slane %v183_v25, 7 }
  0x18   : > { %4717 = vst [vmem:[#allocation3_spill] sm:$0xff] %v2845_v33  ;;  %v2144_v37 = vpack.i.bf16 %v2845_v33, %v2830_v26  ;;  %v420_v38 = vrot.slane %v2848_v34, 1  ;;  %v249_v43 = vrot.slane %v184_v30, 7  ;;  %v263_v44 = vrot.slane %v193_v31, 7 }
  0x19   : > { %v2861_v42 = vsel %vm406_vm1, %v415_v29, %v417_v35  ;;  %v264_v45 = vrot.slane %v2842_v32, 7  ;;  %v2869_v47 = vsel %vm247_vm0, 0.0, %v248_v39  ;;  %v2872_v48 = vsel %vm247_vm0, %v261_v9, 0.0 }
  0x1a   : > { %4719 = vst [vmem:[#allocation5_spill] sm:$0xff] %v2861_v42  ;;  %2145 = vrot.lane.b32.xlu2 %v2144_v37, %s2748_s18  ;;  %v2866_v46 = vsel %vm406_vm1, %v419_v36, %v420_v38  ;;  %v2875_v49 = vsel %vm247_vm0, 0.0, %v257_v4  ;;  %v2880_v51 = vsel %vm247_vm0, %v248_v39, %v249_v43  ;;  %v2883_v52 = vsel %vm247_vm0, %v249_v43, 0.0  ;;  %v199_v4 = vld [vmem:[%s2792_s17 + $0x80] sm:$0xff] }
  0x1b   : > { %v2134_v50 = vpack.i.bf16 %v2866_v46, %v2861_v42  ;;  %v409_v53 = vrot.slane %v2869_v47, 1  ;;  %v410_v54 = vrot.slane %v2880_v51, 1  ;;  %v412_v55 = vrot.slane %v2883_v52, 1 }
  0x1c   : > { %v2891_v56 = vsel %vm247_vm0, %v263_v44, %v264_v45  ;;  %v2894_v57 = vsel %vm247_vm0, 0.0, %v263_v44  ;;  %v432_v58 = vrot.slane %v2872_v48, 1  ;;  %v2901_v61 = vsel %vm247_vm0, %v255_v24, 0.0 }
  0x1d   : > { %2135 = vrot.lane.b32.xlu1 %v2134_v50, %s2748_s18  ;;  %v434_v59 = vrot.slane %v2894_v57, 1  ;;  %v435_v60 = vrot.slane %v2891_v56, 1  ;;  %v2904_v62 = vsel %vm406_vm1, %v409_v53, %v410_v54  ;;  %v2907_v63 = vsel %vm406_vm1, %v410_v54, %v412_v55 }
  0x1e   : > { %4720 = vst [vmem:[#allocation6_spill] sm:$0xff] %v2904_v62  ;;  %v422_v0 = vrot.slane %v2901_v61, 1  ;;  %v424_v1 = vrot.slane %v2875_v49, 1  ;;  %v2124_v6 = vpack.i.bf16 %v2904_v62, %v2856_v41  ;;  %v2919_v8 = vsel %vm406_vm1, %v430_v22, %v432_v58 }
  0x1f   : > { %4721 = vst [vmem:[#allocation7_spill] sm:$0xff] %v2907_v63  ;;  %v2924_v9 = vsel %vm406_vm1, %v434_v59, %v435_v60  ;;  %v2944_v22 = vsel %vm247_vm0, 0.0, %v251_v12  ;;  %v269_v30 = vrot.slane %v197_v2, 7  ;;  %v270_v31 = vrot.slane %v198_v3, 7  ;;  %v203_v59 = vld [vmem:[%s2792_s17 + $0xa0] sm:$0xff] }
  0x20   : > { %4722 = vst [vmem:[#allocation8_spill] sm:$0xff] %v2919_v8  ;;  %v2149_v17 = vpack.i.bf16 %v2924_v9, %v2919_v8  ;;  %v2934_v20 = vsel %vm406_vm1, %v420_v38, %v422_v0  ;;  %v2939_v21 = vsel %vm406_vm1, %v424_v1, %v425_v19  ;;  %2125 = vrot.lane.b32.xlu0 %v2124_v6, %s2748_s18  ;;  %v414_v25 = vrot.slane %v2944_v22, 1  ;;  %v205_v6 = vld [vmem:[%s2792_s17 + $0xb0] sm:$0xff] }
  0x21   : > { %4723 = vst [vmem:[#allocation9_spill] sm:$0xff] %v2924_v9  ;;  %v2139_v24 = vpack.i.bf16 %v2939_v21, %v2934_v20  ;;  %v272_v35 = vrot.slane %v199_v4, 7  ;;  %v273_v19 = vrot.slane %v2927_v10, 7  ;;  %v266_v36 = vrot.slane %v195_v11, 7  ;;  %v204_v4 = vld [vmem:[%s2792_s17 + $0xa8] sm:$0xff] }
  0x22   : > { %4724 = vst [vmem:[#allocation10_spill] sm:$0xff] %v2939_v21  ;;  %2150 = vrot.lane.b32.xlu2 %v2149_v17, %s2748_s18  ;;  %v267_v7 = vrot.slane %v196_v13, 7  ;;  %v2955_v12 = vsel %vm406_vm1, %v414_v25, %v415_v29  ;;  %v2958_v37 = vsel %vm247_vm0, %v269_v30, %v270_v31  ;;  %v2961_v38 = vsel %vm247_vm0, %v270_v31, 0.0 }
  0x23   : > { %v2964_v39 = vsel %vm247_vm0, 0.0, %v269_v30  ;;  %v2129_v43 = vpack.i.bf16 %v2955_v12, %v2907_v63  ;;  %v2969_v44 = vsel %vm247_vm0, %v272_v35, %v273_v19  ;;  %v2972_v29 = vsel %vm247_vm0, 0.0, %v272_v35 }
  0x24   : > { %v445_v50 = vrot.slane %v2958_v37, 1  ;;  %v447_v53 = vrot.slane %v2961_v38, 1  ;;  %v449_v54 = vrot.slane %v2972_v29, 1  ;;  %v4631_v55 = vrot.slane %v2969_v44, 1 }
  0x25   : > { %2140 = vrot.lane.b32.xlu1 %v2139_v24, %s2748_s18  ;;  %v2980_v58 = vsel %vm247_vm0, %v266_v36, %v267_v7  ;;  %v2984_v0 = vsel %vm247_vm0, %v267_v7, 0.0  ;;  %v444_v2 = vrot.slane %v2964_v39, 1  ;;  %v2989_v3 = vsel %vm247_vm0, 0.0, %v266_v36  ;;  %v3008_v24 = vld [vmem:[%s2792_s17 + $0xb8] sm:$0xff] }
  0x26   : > { %v440_v1 = vrot.slane %v2980_v58, 1  ;;  %v2994_v10 = vsel %vm406_vm1, %v445_v50, %v447_v53  ;;  %v2999_v11 = vsel %vm406_vm1, %v449_v54, %v4631_v55  ;;  %v442_v13 = vrot.slane %v2984_v0, 1 }
  0x27   : > { %4725 = vst [vmem:[#allocation11_spill] sm:$0xff] %v2994_v10  ;;  %v3005_v17 = vsel %vm247_vm0, %v264_v45, 0.0  ;;  %v2164_v25 = vpack.i.bf16 %v2999_v11, %v2994_v10  ;;  %v3013_v30 = vsel %vm406_vm1, %v444_v2, %v445_v50  ;;  %v439_v35 = vrot.slane %v2989_v3, 1  ;;  %v201_v2 = vld [vmem:[%s2792_s17 + $0x90] sm:$0xff]  ;;  %v211_v10 = vld [vmem:[%s2792_s17 + $0xe0] sm:$0xff] }
  0x28   : > { %4726 = vst [vmem:[#allocation12_spill] sm:$0xff] %v2999_v11  ;;  %v437_v31 = vrot.slane %v3005_v17, 1  ;;  %2130 = vrot.lane.b32.xlu0 %v2129_v43, %s2748_s18  ;;  %v3019_v32 = vsel %vm406_vm1, %v440_v1, %v442_v13  ;;  %v278_v45 = vrot.slane %v203_v59, 7  ;;  %v279_v36 = vrot.slane %v204_v4, 7  ;;  %v202_v13 = vld [vmem:[%s2792_s17 + $0x98] sm:$0xff]  ;;  %v208_v11 = vld [vmem:[%s2792_s17 + $0xc8] sm:$0xff] }
  0x29   : > { %4727 = vst [vmem:[#allocation13_spill] sm:$0xff] %v3013_v30  ;;  %v281_v7 = vrot.slane %v205_v6, 7  ;;  %v2159_v53 = vpack.i.bf16 %v3013_v30, %v3019_v32  ;;  %v3030_v54 = vsel %vm406_vm1, %v439_v35, %v440_v1  ;;  %v4633_v43 = vrot.slane %v3008_v24, 7  ;;  %v209_v1 = vld [vmem:[%s2792_s17 + $0xd0] sm:$0xff] }
  0x2a   : > { %4728 = vst [vmem:[#allocation14_spill] sm:$0xff] %v3019_v32  ;;  %2165 = vrot.lane.b32.xlu2 %v2164_v25, %s2748_s18  ;;  %v3027_v50 = vsel %vm406_vm1, %v435_v60, %v437_v31  ;;  %v3038_v4 = vsel %vm247_vm0, %v278_v45, %v279_v36  ;;  %v3044_v60 = vsel %vm247_vm0, %v279_v36, 0.0  ;;  %v275_v36 = vrot.slane %v201_v2, 7 }
  0x2b   : > { %4729 = vst [vmem:[#allocation15_spill] sm:$0xff] %v3027_v50  ;;  %v2154_v59 = vpack.i.bf16 %v3030_v54, %v3027_v50  ;;  %v3041_v6 = vsel %vm247_vm0, 0.0, %v281_v7  ;;  %v3050_v25 = vsel %vm247_vm0, %v281_v7, %v4633_v43  ;;  %v460_v31 = vrot.slane %v3038_v4, 1 }
  0x2c   : > { %4730 = vst [vmem:[#allocation16_spill] sm:$0xff] %v3030_v54  ;;  %v462_v35 = vrot.slane %v3044_v60, 1  ;;  %v464_v5 = vrot.slane %v3041_v6, 1  ;;  %v4640_v40 = vrot.slane %v3050_v25, 1  ;;  %v276_v55 = vrot.slane %v202_v13, 7  ;;  %v210_v54 = vld [vmem:[%s2792_s17 + $0xd8] sm:$0xff] }
  0x2d   : > { %2160 = vrot.lane.b32.xlu1 %v2159_v53, %s2748_s18  ;;  %v3058_v41 = vsel %vm247_vm0, 0.0, %v278_v45  ;;  %v3065_v32 = vsel %vm247_vm0, %v273_v19, 0.0  ;;  %v287_v53 = vrot.slane %v209_v1, 7  ;;  %v3081_v13 = vsel %vm247_vm0, 0.0, %v275_v36  ;;  %v207_v19 = vld [vmem:[%s2792_s17 + $0xc0] sm:$0xff] }
  0x2e   : > { %v3061_v7 = vsel %vm406_vm1, %v460_v31, %v462_v35  ;;  %v459_v43 = vrot.slane %v3058_v41, 1  ;;  %v3072_v30 = vsel %vm406_vm1, %v464_v5, %v4640_v40  ;;  %v3075_v2 = vsel %vm247_vm0, %v275_v36, %v276_v55  ;;  %v3084_v35 = vld [vmem:[%s2792_s17 + $0xe8] sm:$0xff] }
  0x2f   : > { %4731 = vst [vmem:[#allocation17_spill] sm:$0xff] %v3061_v7  ;;  %v3078_v45 = vsel %vm247_vm0, %v276_v55, 0.0  ;;  %v2179_v1 = vpack.i.bf16 %v3072_v30, %v3061_v7  ;;  %v455_v26 = vrot.slane %v3075_v2, 1  ;;  %v452_v55 = vrot.slane %v3065_v32, 1 }
  0x30   : > { %4732 = vst [vmem:[#allocation18_spill] sm:$0xff] %v3072_v30  ;;  %v457_v5 = vrot.slane %v3078_v45, 1  ;;  %v3093_v40 = vsel %vm406_vm1, %v459_v43, %v460_v31  ;;  %2155 = vrot.lane.b32.xlu0 %v2154_v59, %s2748_s18  ;;  %v454_v36 = vrot.slane %v3081_v13, 1  ;;  %v288_v21 = vrot.slane %v210_v54, 7 }
  0x31   : > { %4733 = vst [vmem:[#allocation19_spill] sm:$0xff] %v3093_v40  ;;  %v290_v8 = vrot.slane %v211_v10, 7  ;;  %v291_v7 = vrot.slane %v3084_v35, 7  ;;  %v284_v30 = vrot.slane %v207_v19, 7  ;;  %v285_v62 = vrot.slane %v208_v11, 7 }
  0x32   : > { %2180 = vrot.lane.b32.xlu2 %v2179_v1, %s2748_s18  ;;  %v3100_v33 = vsel %vm406_vm1, %v455_v26, %v457_v5  ;;  %v4735_v59 = vrot.slane %v2969_v44, 1  ;;  %v3111_v54 = vsel %vm406_vm1, %v454_v36, %v455_v26  ;;  %v3114_v10 = vsel %vm247_vm0, %v287_v53, %v288_v21 }
  0x33   : > { %4734 = vst [vmem:[#allocation20_spill] sm:$0xff] %v3100_v33  ;;  %v2174_v43 = vpack.i.bf16 %v3093_v40, %v3100_v33  ;;  %v3119_v35 = vsel %vm247_vm0, %v290_v8, %v291_v7  ;;  %v3122_v11 = vsel %vm247_vm0, 0.0, %v290_v8  ;;  %v3125_v19 = vsel %vm247_vm0, %v288_v21, 0.0 }
  0x34   : > { %v3108_v31 = vsel %vm406_vm1, %v4735_v59, %v452_v55  ;;  %4737 = vst [vmem:[#allocation22_spill] sm:$0xff] %v3111_v54  ;;  %v475_v26 = vrot.slane %v3114_v10, 1  ;;  %v477_v5 = vrot.slane %v3125_v19, 1  ;;  %v479_v55 = vrot.slane %v3122_v11, 1 }
  0x35   : > { %4736 = vst [vmem:[#allocation21_spill] sm:$0xff] %v3108_v31  ;;  %v2169_v1 = vpack.i.bf16 %v3111_v54, %v3108_v31  ;;  %2175 = vrot.lane.b32.xlu1 %v2174_v43, %s2748_s18  ;;  %v480_v36 = vrot.slane %v3119_v35, 1  ;;  %v3133_v59 = vsel %vm247_vm0, %v284_v30, %v285_v62  ;;  %v3136_v33 = vsel %vm247_vm0, 0.0, %v287_v53 }
  0x36   : > { %4738 = vst [vmem:[#allocation23_spill] sm:$0xff] %v3114_v10  ;;  %v3139_v8 = vsel %vm247_vm0, %v285_v62, 0.0  ;;  %v3142_v21 = vsel %vm247_vm0, 0.0, %v284_v30  ;;  %v3145_v43 = vsel %vm406_vm1, %v475_v26, %v477_v5  ;;  %v470_v40 = vrot.slane %v3133_v59, 1 }
  0x37   : > { %4739 = vst [vmem:[#allocation24_spill] sm:$0xff] %v3119_v35  ;;  %v3148_v54 = vsel %vm406_vm1, %v479_v55, %v480_v36  ;;  %v472_v31 = vrot.slane %v3139_v8, 1  ;;  %v474_v63 = vrot.slane %v3136_v33, 1  ;;  %v4743_v62 = vrot.slane %v3008_v24, 7 }
  0x38   : > { %4740 = vst [vmem:[#allocation25_spill] sm:$0xff] %v3122_v11  ;;  %v2194_v53 = vpack.i.bf16 %v3148_v54, %v3145_v43  ;;  %v469_v5 = vrot.slane %v3142_v21, 1  ;;  %2170 = vrot.lane.b32.xlu0 %v2169_v1, %s2748_s18  ;;  %v581_v9 = vrot.slane %v2880_v51, 2  ;;  %v585_v1 = vrot.slane %v2944_v22, 2 }
  0x39   : > { %4741 = vst [vmem:[#allocation26_spill] sm:$0xff] %v3145_v43  ;;  %v3158_v30 = vsel %vm247_vm0, %v4743_v62, 0.0  ;;  %v3163_v55 = vsel %vm406_vm1, %v470_v40, %v472_v31  ;;  %v3169_v43 = vsel %vm406_vm1, %v474_v63, %v475_v26  ;;  %v583_v62 = vrot.slane %v2883_v52, 2 }
  0x3a   : > { %4742 = vst [vmem:[#allocation27_spill] sm:$0xff] %v3148_v54  ;;  %v467_v50 = vrot.slane %v3158_v30, 1  ;;  %2195 = vrot.lane.b32.xlu2 %v2194_v53, %s2748_s18  ;;  %v3172_v24 = vsel %vm406_vm1, %v469_v5, %v470_v40  ;;  %v2189_v31 = vpack.i.bf16 %v3169_v43, %v3163_v55  ;;  %v4747_v54 = vrot.slane %v3050_v25, 1 }
  0x3b   : > { %4744 = vst [vmem:[#allocation28_spill] sm:$0xff] %v3163_v55  ;;  %v586_v53 = vrot.slane %v2824_v23, 2  ;;  %v3185_v63 = vsel %vm577_vm2, %v581_v9, %v583_v62  ;;  %v580_v40 = vrot.slane %v2869_v47, 2  ;;  %v4750_v5 = vmov 0.0  }
  0x3c   : > { %4745 = vst [vmem:[#allocation29_spill] sm:$0xff] %v3169_v43  ;;  %v3181_v42 = vsel %vm406_vm1, %v4747_v54, %v467_v50  ;;  %v3195_v55 = vrot.slane %v4750_v5, 2  ;;  %v3203_v62 = vsel %vm247_vm0, %v291_v7, 0.0  ;;  %v596_v43 = vrot.slane %v2806_v14, 2 }
  0x3d   : > { %4746 = vst [vmem:[#allocation30_spill] sm:$0xff] %v3172_v24  ;;  %2190 = vrot.lane.b32.xlu1 %v2189_v31, %s2748_s18  ;;  %v2184_v52 = vpack.i.bf16 %v3172_v24, %v3181_v42  ;;  %v3192_v26 = vsel %vm577_vm2, %v585_v1, %v586_v53  ;;  %v3200_v54 = vsel %vm577_vm2, %v580_v40, %v581_v9  ;;  %v598_v31 = vrot.slane %v2812_v16, 2 }
  0x3e   : > { %4748 = vst [vmem:[#allocation31_spill] sm:$0xff] %v3185_v63  ;;  %v2204_v50 = vpack.i.bf16 %v3192_v26, %v3185_v63  ;;  %v600_v24 = vrot.slane %v2809_v15, 2  ;;  %v601_v1 = vrot.slane %v2815_v18, 2  ;;  %v2199_v5 = vpack.i.bf16 %v3200_v54, %v3195_v55 }
  0x3f   : > { %4749 = vst [vmem:[#allocation32_spill] sm:$0xff] %v3192_v26  ;;  %v482_v63 = vrot.slane %v3203_v62, 1  ;;  %v591_v9 = vrot.slane %v2848_v34, 2  ;;  %v593_v16 = vrot.slane %v2901_v61, 2  ;;  %v595_v7 = vrot.slane %v2875_v49, 2 }
  0x40   : > { %4751 = vst [vmem:[#allocation33_spill] sm:$0xff] %v3195_v55  ;;  %2185 = vrot.lane.b32.xlu0 %v2184_v52, %s2748_s18  ;;  %v3218_v40 = vsel %vm577_vm2, %v596_v43, %v598_v31  ;;  %v3221_v26 = vsel %vm577_vm2, %v600_v24, %v601_v1  ;;  %v588_v52 = vrot.slane %v2836_v28, 2  ;;  %v590_v31 = vrot.slane %v2833_v27, 2 }
  0x41   : > { %4752 = vst [vmem:[#allocation34_spill] sm:$0xff] %v3200_v54  ;;  %v3226_v55 = vsel %vm406_vm1, %v480_v36, %v482_v63  ;;  %v3231_v61 = vsel %vm577_vm2, %v591_v9, %v593_v16  ;;  %v3234_v54 = vsel %vm577_vm2, %v595_v7, %v596_v43  ;;  %v611_v24 = vrot.slane %v2980_v58, 2 }
  0x42   : > { %2205 = vrot.lane.b32.xlu2 %v2204_v50, %s2749_s19  ;;  %4753 = vst [vmem:[#allocation35_spill] sm:$0xff] %v3218_v40  ;;  %v2219_v50 = vpack.i.bf16 %v3221_v26, %v3218_v40  ;;  %v613_v28 = vrot.slane %v2984_v0, 2  ;;  %v616_v36 = vrot.slane %v2958_v37, 2  ;;  %v2214_v63 = vpack.i.bf16 %v3234_v54, %v3231_v61 }
  0x43   : > { %4754 = vst [vmem:[#allocation36_spill] sm:$0xff] %v3221_v26  ;;  %v3246_v16 = vsel %vm577_vm2, %v586_v53, %v588_v52  ;;  %v3250_v43 = vsel %vm577_vm2, %v590_v31, %v591_v9  ;;  %v606_v0 = vrot.slane %v2891_v56, 2  ;;  %v608_v7 = vrot.slane %v3005_v17, 2 }
  0x44   : > { %4755 = vst [vmem:[#allocation37_spill] sm:$0xff] %v3226_v55  ;;  %v610_v40 = vrot.slane %v2989_v3, 2  ;;  %v3256_v26 = vsel %vm577_vm2, %v611_v24, %v613_v28  ;;  %v2209_v53 = vpack.i.bf16 %v3250_v43, %v3246_v16  ;;  %v603_v9 = vrot.slane %v2872_v48, 2 }
  0x45   : > { %2200 = vrot.lane.b32.xlu1 %v2199_v5, %s2749_s19  ;;  %4756 = vst [vmem:[#allocation38_spill] sm:$0xff] %v3231_v61  ;;  %v615_v5 = vrot.slane %v2964_v39, 2  ;;  %v3268_v17 = vsel %vm577_vm2, %v606_v0, %v608_v7  ;;  %v605_v31 = vrot.slane %v2894_v57, 2  ;;  %v626_v28 = vrot.slane %v3075_v2, 2 }
  0x46   : > { %4757 = vst [vmem:[#allocation39_spill] sm:$0xff] %v3256_v26  ;;  %v631_v61 = vrot.slane %v3038_v4, 2  ;;  %v3282_v7 = vsel %vm577_vm2, %v601_v1, %v603_v9 }
  0x47   : > { %4759 = vst [vmem:[#allocation41_spill] sm:$0xff] %v3268_v17 }
  0x48   : > { %544 = vrot.lane.b32.xlu0 %v3226_v55, %s2748_s18  ;;  %v3259_v55 = vsel %vm577_vm2, %v615_v5, %v616_v36  ;;  %v628_v5 = vrot.slane %v3078_v45, 2  ;;  %v623_v45 = vrot.slane %v3065_v32, 2 }
  0x49   : > { %4758 = vst [vmem:[#allocation40_spill] sm:$0xff] %v3259_v55  ;;  %v2234_v52 = vpack.i.bf16 %v3259_v55, %v3256_v26  ;;  %v625_v26 = vrot.slane %v3081_v13, 2 }
  0x4a   : > { %2220 = vrot.lane.b32.xlu2 %v2219_v50, %s2749_s19  ;;  %v3271_v50 = vsel %vm577_vm2, %v610_v40, %v611_v24  ;;  %v3286_v40 = vsel %vm577_vm2, %v605_v31, %v606_v0  ;;  %v621_v24 = vrot.slane %v2969_v44, 2  ;;  %v3292_v55 = vsel %vm577_vm2, %v626_v28, %v628_v5 }
  0x4b   : > { %v2229_v48 = vpack.i.bf16 %v3271_v50, %v3268_v17  ;;  %4760 = vst [vmem:[#allocation42_spill] sm:$0xff] %v3292_v55  ;;  %v2224_v1 = vpack.i.bf16 %v3286_v40, %v3282_v7  ;;  %v618_v0 = vrot.slane %v2961_v38, 2  ;;  %v620_v31 = vrot.slane %v2972_v29, 2 }
  0x4c   : > { %v3304_v32 = vsel %vm577_vm2, %v621_v24, %v623_v45  ;;  %v641_v5 = vrot.slane %v3133_v59, 2  ;;  %v646_v17 = vrot.slane %v3114_v10, 2 }
  0x4d   : > { %2215 = vrot.lane.b32.xlu1 %v2214_v63, %s2749_s19  ;;  %v630_v63 = vrot.slane %v3058_v41, 2  ;;  %4762 = vst [vmem:[#allocation44_spill] sm:$0xff] %v3304_v32  ;;  %v3318_v45 = vsel %vm577_vm2, %v616_v36, %v618_v0 }
  0x50   : > { %2210 = vrot.lane.b32.xlu0 %v2209_v53, %s2749_s19  ;;  %v3295_v53 = vsel %vm577_vm2, %v630_v63, %v631_v61  ;;  %v643_v63 = vrot.slane %v3139_v8, 2  ;;  %v638_v8 = vrot.slane %v3158_v30, 2 }
  0x51   : > { %4761 = vst [vmem:[#allocation43_spill] sm:$0xff] %v3295_v53  ;;  %v2249_v9 = vpack.i.bf16 %v3295_v53, %v3292_v55  ;;  %v640_v55 = vrot.slane %v3142_v21, 2 }
  0x52   : > { %2235 = vrot.lane.b32.xlu2 %v2234_v52, %s2749_s19  ;;  %v3307_v52 = vsel %vm577_vm2, %v625_v26, %v626_v28  ;;  %v3322_v26 = vsel %vm577_vm2, %v620_v31, %v621_v24  ;;  %v636_v28 = vrot.slane %v3050_v25, 2  ;;  %v3328_v53 = vsel %vm577_vm2, %v641_v5, %v643_v63 }
  0x53   : > { %v2244_v38 = vpack.i.bf16 %v3307_v52, %v3304_v32  ;;  %4763 = vst [vmem:[#allocation45_spill] sm:$0xff] %v3328_v53  ;;  %v2239_v36 = vpack.i.bf16 %v3322_v26, %v3318_v45  ;;  %v633_v24 = vrot.slane %v3044_v60, 2  ;;  %v635_v31 = vrot.slane %v3041_v6, 2 }
  0x54   : > { %v3340_v30 = vsel %vm577_vm2, %v636_v28, %v638_v8  ;;  %v653_v8 = vrot.slane %v3203_v62, 2  ;;  %v3382_v62 = vpack.i.bf16 %v2806_v14, %v2875_v49 }
  0x55   : > { %2230 = vrot.lane.b32.xlu1 %v2229_v48, %s2749_s19  ;;  %v645_v48 = vrot.slane %v3136_v33, 2  ;;  %4765 = vst [vmem:[#allocation47_spill] sm:$0xff] %v3340_v30  ;;  %v3351_v60 = vsel %vm577_vm2, %v631_v61, %v633_v24  ;;  %v650_v61 = vrot.slane %v3122_v11, 2 }
  0x56   : > { %4771 = vst [vmem:[#allocation53_spill] sm:$0xff] %v3382_v62 }
  0x58   : > { %2225 = vrot.lane.b32.xlu0 %v2224_v1, %s2749_s19  ;;  %v3331_v1 = vsel %vm577_vm2, %v645_v48, %v646_v17  ;;  %v3354_v48 = vsel %vm577_vm2, %v635_v31, %v636_v28  ;;  %v3387_v31 = vpack.i.bf16 %v2848_v34, %v2833_v27 }
  0x59   : > { %4764 = vst [vmem:[#allocation46_spill] sm:$0xff] %v3331_v1  ;;  %v2264_v0 = vpack.i.bf16 %v3331_v1, %v3328_v53 }
  0x5a   : > { %2250 = vrot.lane.b32.xlu2 %v2249_v9, %s2749_s19  ;;  %v3343_v9 = vsel %vm577_vm2, %v640_v55, %v641_v5  ;;  %4767 = vst [vmem:[#allocation49_spill] sm:$0xff] %v3354_v48  ;;  %v2254_v55 = vpack.i.bf16 %v3354_v48, %v3351_v60  ;;  %v2274_v5 = vpack.i.bf16 %v2880_v51, %v2869_v47 }
  0x5b   : > { %4766 = vst [vmem:[#allocation48_spill] sm:$0xff] %v3343_v9  ;;  %v2259_v63 = vpack.i.bf16 %v3343_v9, %v3340_v30  ;;  %v3494_v30 = vpack.i.bf16 %v3114_v10, %v3136_v33 }
  0x5c   : > { %4772 = vst [vmem:[#allocation54_spill] sm:$0xff] %v3387_v31 }
  0x5d   : > { %2245 = vrot.lane.b32.xlu1 %v2244_v38, %s2749_s19  ;;  %v651_v38 = vrot.slane %v3119_v35, 2  ;;  %4788 = vst [vmem:[#allocation70_spill] sm:$0xff] %v3494_v30 }
  0x5f   : > { %v3368_v28 = vsel %vm577_vm2, %v651_v38, %v653_v8  ;;  %v3417_v8 = vpack.i.bf16 %v2815_v18, %v2809_v15 }
  0x60   : > { %2240 = vrot.lane.b32.xlu0 %v2239_v36, %s2749_s19  ;;  %v648_v36 = vrot.slane %v3125_v19, 2  ;;  %4768 = vst [vmem:[#allocation50_spill] sm:$0xff] %v3368_v28 }
  0x61   : > { %4776 = vst [vmem:[#allocation58_spill] sm:$0xff] %v3417_v8 }
  0x62   : > { %2265 = vrot.lane.b32.xlu2 %v2264_v0, %s2749_s19  ;;  %v3371_v24 = vsel %vm577_vm2, %v646_v17, %v648_v36  ;;  %v3374_v0 = vsel %vm577_vm2, %v650_v61, %v651_v38  ;;  %v3421_v36 = vpack.i.bf16 %v3075_v2, %v3081_v13  ;;  %v3427_v61 = vpack.i.bf16 %v2969_v44, %v2972_v29 }
  0x63   : > { %4769 = vst [vmem:[#allocation51_spill] sm:$0xff] %v3371_v24  ;;  %v2269_v19 = vpack.i.bf16 %v3374_v0, %v3371_v24 }
  0x64   : > { %4770 = vst [vmem:[#allocation52_spill] sm:$0xff] %v3374_v0  ;;  %v3435_v0 = vld [vmem:[%s2792_s17 + $0xf8] sm:$0xff] }
  0x65   : > { %2260 = vrot.lane.b32.xlu1 %v2259_v63, %s2749_s19  ;;  %v3397_v63 = vpack.i.bf16 %v2824_v23, %v2944_v22  ;;  %4777 = vst [vmem:[#allocation59_spill] sm:$0xff] %v3421_v36 }
  0x66   : > { %4778 = vst [vmem:[#allocation60_spill] sm:$0xff] %v3427_v61 }
  0x67   : > { %4773 = vst [vmem:[#allocation55_spill] sm:$0xff] %v3397_v63 }
  0x68   : > { %2255 = vrot.lane.b32.xlu0 %v2254_v55, %s2749_s19  ;;  %v3401_v55 = vpack.i.bf16 %v2980_v58, %v2989_v3 }
  0x6a   : > { %2275 = vrot.lane.b32.xlu2 %v2274_v5, %s2750_s20  ;;  %4774 = vst [vmem:[#allocation56_spill] sm:$0xff] %v3401_v55  ;;  %v3407_v5 = vpack.i.bf16 %v2891_v56, %v2894_v57 }
  0x6c   : > { %4775 = vst [vmem:[#allocation57_spill] sm:$0xff] %v3407_v5 }
  0x6d   : > { %715 = vrot.lane.b32.xlu1 %v3368_v28, %s2749_s19  ;;  %v213_v28 = vld [vmem:[%s2792_s17 + $0xf0] sm:$0xff] }
  0x70   : > { %2270 = vrot.lane.b32.xlu0 %v2269_v19, %s2749_s19 }
  0x72   : > { %2290 = vrot.lane.b32.xlu2 %v3382_v62, %s2750_s20  ;;  %v3441_v62 = vpack.i.bf16 %v2958_v37, %v2964_v39 }
  0x74   : > { %v3391_v17 = vpop.permute.xlu2 %2145  ;;  %4779 = vst [vmem:[#allocation61_spill] sm:$0xff] %v3441_v62 }
  0x75   : > { %2285 = vrot.lane.b32.xlu1 %v3387_v31, %s2750_s20  ;;  %v4685_v31 = vrot.slane %v3435_v0, 7 }
  0x78   : > { %2280 = vrot.lane.b32.xlu0 %v3397_v63, %s2750_s20 }
  0x7a   : > { %2305 = vrot.lane.b32.xlu2 %v3401_v55, %s2750_s20  ;;  %v293_v55 = vrot.slane %v213_v28, 7 }
  0x7c   : > { %v3411_v38 = vpop.permute.xlu2 %2150 }
  0x7d   : > { %2300 = vrot.lane.b32.xlu1 %v3407_v5, %s2750_s20  ;;  %v3462_v5 = vsel %vm247_vm0, 0.0, %v293_v55 }
  0x7e   : > { %4783 = vst [vmem:[#allocation65_spill] sm:$0xff] %v3462_v5 }
  0x80   : > { %2295 = vrot.lane.b32.xlu0 %v3417_v8, %s2750_s20  ;;  %v3445_v8 = vpack.i.bf16 %v3133_v59, %v3142_v21 }
  0x82   : > { %2320 = vrot.lane.b32.xlu2 %v3421_v36, %s2750_s20  ;;  %4780 = vst [vmem:[#allocation62_spill] sm:$0xff] %v3445_v8  ;;  %v3452_v36 = vpack.i.bf16 %v3050_v25, %v3041_v6 }
  0x84   : > { %v3431_v19 = vpop.permute.xlu2 %2165  ;;  %4781 = vst [vmem:[#allocation63_spill] sm:$0xff] %v3452_v36 }
  0x85   : > { %2315 = vrot.lane.b32.xlu1 %v3427_v61, %s2750_s20  ;;  %v3459_v61 = vsel %vm247_vm0, %v293_v55, %v4685_v31  ;;  %v3482_v55 = vpack.i.bf16 %v3119_v35, %v3122_v11 }
  0x86   : > { %4782 = vst [vmem:[#allocation64_spill] sm:$0xff] %v3459_v61 }
  0x87   : > { %4786 = vst [vmem:[#allocation68_spill] sm:$0xff] %v3482_v55 }
  0x88   : > { %2310 = vrot.lane.b32.xlu0 %v3441_v62, %s2750_s20  ;;  %v3470_v62 = vpack.i.bf16 %v3038_v4, %v3058_v41 }
  0x8a   : > { %2335 = vrot.lane.b32.xlu2 %v3445_v8, %s2750_s20  ;;  %4784 = vst [vmem:[#allocation66_spill] sm:$0xff] %v3470_v62  ;;  %v3474_v8 = vpack.i.bf16 %v3459_v61, %v3462_v5 }
  0x8c   : > { %v3464_v28 = vpop.permute.xlu2 %2180  ;;  %4785 = vst [vmem:[#allocation67_spill] sm:$0xff] %v3474_v8 }
  0x8d   : > { %2330 = vrot.lane.b32.xlu1 %v3452_v36, %s2750_s20 }
  0x8f   : > { %v3476_v63 = vpop.permute.xlu1 %2135 }
  0x90   : > { %2325 = vrot.lane.b32.xlu0 %v3470_v62, %s2750_s20  ;;  %v3498_v62 = vpack.i.bf16 %v2934_v20, %v2866_v46 }
  0x92   : > { %2350 = vrot.lane.b32.xlu2 %v3474_v8, %s2750_s20  ;;  %v3486_v31 = vpop.permute.xlu0 %2125  ;;  %4789 = vst [vmem:[#allocation71_spill] sm:$0xff] %v3498_v62  ;;  %v4790_v8 = vld [vmem:[#allocation5_spill] sm:$0xff] }
  0x93   : > { %v3506_v11 = vpack.i.bf16 %v4790_v8, %v2955_v12  ;;  %v4792_v8 = vld [vmem:[#allocation9_spill] sm:$0xff] }
  0x94   : > { %v3488_v36 = vpop.permute.xlu2 %2195 }
  0x95   : > { %4787 = vst [vmem:[#allocation69_spill] sm:$0xff] %v3488_v36  ;;  %2345 = vrot.lane.b32.xlu1 %v3482_v55, %s2750_s20  ;;  %v4793_v36 = vld [vmem:[#allocation15_spill] sm:$0xff] }
  0x96   : > { %4791 = vst [vmem:[#allocation5_spill] sm:$0xff] %v3506_v11 }
  0x97   : > { %v3500_v48 = vpop.permute.xlu1 %2140 }
  0x98   : > { %2340 = vrot.lane.b32.xlu0 %v3494_v30, %s2750_s20 }
  0x9a   : > { %2365 = vrot.lane.b32.xlu2 %v3498_v62, %s2751_s21  ;;  %v2131_v55 = vpop.permute.xlu0 %2130  ;;  %v3518_v62 = vpack.i.bf16 %v4793_v36, %v4792_v8 }
  0x9b   : > { %v2133_v10 = vunpack.i.h.bf16 %v2131_v55  ;;  %v2132_v53 = vunpack.i.l.bf16 %v2131_v55 }
  0x9c   : > { %v2206_v9 = vpop.permute.xlu2 %2205  ;;  %4794 = vst [vmem:[#allocation9_spill] sm:$0xff] %v3518_v62 }
  0x9d   : > { %2360 = vrot.lane.b32.xlu1 %v3506_v11, %s2751_s21  ;;  %v2208_v46 = vunpack.i.h.bf16 %v2206_v9  ;;  %v2207_v20 = vunpack.i.l.bf16 %v2206_v9  ;;  %v1331_v30 = vsel %vm1327_vm4, %v2944_v22, %v2133_v10  ;;  %v1330_v12 = vsel %vm1327_vm4, %v2880_v51, %v2132_v53  ;;  %v4796_v11 = vld [vmem:[#allocation7_spill] sm:$0xff]  ;;  %v4797_v9 = vld [vmem:[#allocation6_spill] sm:$0xff]  ;;  %v4800_v10 = vld [vmem:[#allocation8_spill] sm:$0xff] }
  0x9e   : > { %v4798_v1 = vpack.i.bf16 %v4796_v11, %v4797_v9  ;;  %v4799_v22 = vld [vmem:[#allocation3_spill] sm:$0xff]  ;;  %v2148_v51 = vunpack.i.h.bf16 %v3391_v17  ;;  %v2147_v53 = vunpack.i.l.bf16 %v3391_v17  ;;  %v4803_v11 = vld [vmem:[#allocation2_spill] sm:$0xff]  ;;  %v4805_v9 = vld [vmem:[#allocation12_spill] sm:$0xff] }
  0x9f   : > { %v2161_v35 = vpop.permute.xlu1 %2160  ;;  %v3521_v55 = vsel %vm1359_vm3, %v1330_v12, %v2207_v20  ;;  %v3524_v24 = vsel %vm1359_vm3, %v1331_v30, %v2208_v46  ;;  %v3532_v32 = vpack.i.bf16 %v4800_v10, %v4799_v22  ;;  %v4802_v46 = vld [vmem:[#allocation10_spill] sm:$0xff]  ;;  %v4806_v22 = vld [vmem:[#allocation21_spill] sm:$0xff] }
  0xa0   : > { %4795 = vst [vmem:[#allocation15_spill] sm:$0xff] %v3521_v55  ;;  %2355 = vrot.lane.b32.xlu0 %v4798_v1, %s2751_s21  ;;  %v3544_v1 = vpack.i.bf16 %v4803_v11, %v4802_v46  ;;  %v1337_v8 = vsel %vm1327_vm4, %v2809_v15, %v2148_v51  ;;  %v1336_v17 = vsel %vm1327_vm4, %v2806_v14, %v2147_v53  ;;  %v4809_v46 = vld [vmem:[#allocation11_spill] sm:$0xff]  ;;  %v2163_v51 = vunpack.i.h.bf16 %v2161_v35 }
  0xa1   : > { %4801 = vst [vmem:[#allocation7_spill] sm:$0xff] %v3532_v32  ;;  %v3552_v10 = vpack.i.bf16 %v4806_v22, %v4805_v9  ;;  %v2162_v14 = vunpack.i.l.bf16 %v2161_v35 }
  0xa2   : > { %2380 = vrot.lane.b32.xlu2 %v3518_v62, %s2751_s21  ;;  %v3538_v36 = vpop.permute.xlu0 %2155  ;;  %4804 = vst [vmem:[#allocation6_spill] sm:$0xff] %v3544_v1  ;;  %v1343_v22 = vsel %vm1327_vm4, %v2964_v39, %v2163_v51 }
  0xa3   : > { %4807 = vst [vmem:[#allocation3_spill] sm:$0xff] %v3552_v10  ;;  %v1342_v35 = vsel %vm1327_vm4, %v2980_v58, %v2162_v14  ;;  %v2128_v14 = vunpack.i.h.bf16 %v3486_v31 }
  0xa4   : > { %v2221_v30 = vpop.permute.xlu2 %2220 }
  0xa5   : > { %2375 = vrot.lane.b32.xlu1 %v3532_v32, %s2751_s21  ;;  %v2223_v20 = vunpack.i.h.bf16 %v2221_v30  ;;  %v2222_v12 = vunpack.i.l.bf16 %v2221_v30  ;;  %v4808_v30 = vld [vmem:[#allocation13_spill] sm:$0xff] }
  0xa6   : > { %v3564_v15 = vpack.i.bf16 %v4809_v46, %v4808_v30  ;;  %v4814_v30 = vld [vmem:[#allocation18_spill] sm:$0xff] }
  0xa7   : > { %v2176_v62 = vpop.permute.xlu1 %2175  ;;  %v3555_v55 = vsel %vm1359_vm3, %v1337_v8, %v2223_v20  ;;  %v3558_v32 = vsel %vm1359_vm3, %v1336_v17, %v2222_v12  ;;  %v4811_v20 = vld [vmem:[#allocation16_spill] sm:$0xff]  ;;  %v4812_v12 = vld [vmem:[#allocation14_spill] sm:$0xff]  ;;  %v3582_v46 = vpack.i.bf16 %v3181_v42, %v4814_v30 }
  0xa8   : > { %2370 = vrot.lane.b32.xlu0 %v3544_v1, %s2751_s21  ;;  %4810 = vst [vmem:[#allocation8_spill] sm:$0xff] %v3564_v15  ;;  %v3574_v8 = vpack.i.bf16 %v4812_v12, %v4811_v20  ;;  %v4819_v20 = vld [vmem:[#allocation17_spill] sm:$0xff]  ;;  %v2178_v51 = vunpack.i.h.bf16 %v2176_v62  ;;  %v2177_v58 = vunpack.i.l.bf16 %v2176_v62 }
  0xa9   : > { %4815 = vst [vmem:[#allocation2_spill] sm:$0xff] %v3582_v46 }
  0xaa   : > { %2395 = vrot.lane.b32.xlu2 %v3552_v10, %s2751_s21  ;;  %v3568_v53 = vpop.permute.xlu0 %2170  ;;  %4813 = vst [vmem:[#allocation10_spill] sm:$0xff] %v3574_v8  ;;  %v1349_v62 = vsel %vm1327_vm4, %v3058_v41, %v2178_v51 }
  0xac   : > { %v2236_v11 = vpop.permute.xlu2 %2235 }
  0xad   : > { %2390 = vrot.lane.b32.xlu1 %v3564_v15, %s2751_s21  ;;  %v2238_v17 = vunpack.i.h.bf16 %v2236_v11  ;;  %v2237_v9 = vunpack.i.l.bf16 %v2236_v11  ;;  %v4818_v11 = vld [vmem:[#allocation19_spill] sm:$0xff] }
  0xae   : > { %v3594_v39 = vpack.i.bf16 %v4819_v20, %v4818_v11  ;;  %v1348_v20 = vsel %vm1327_vm4, %v3075_v2, %v2177_v58  ;;  %v4826_v2 = vld [vmem:[#allocation29_spill] sm:$0xff] }
  0xaf   : > { %v2191_v10 = vpop.permute.xlu1 %2190  ;;  %v3585_v1 = vsel %vm1359_vm3, %v1343_v22, %v2238_v17  ;;  %v3588_v15 = vsel %vm1359_vm3, %v1342_v35, %v2237_v9  ;;  %v2127_v17 = vunpack.i.l.bf16 %v3486_v31  ;;  %v4821_v9 = vld [vmem:[#allocation22_spill] sm:$0xff]  ;;  %v4822_v22 = vld [vmem:[#allocation20_spill] sm:$0xff] }
  0xb0   : > { %4816 = vst [vmem:[#allocation12_spill] sm:$0xff] %v3585_v1  ;;  %2385 = vrot.lane.b32.xlu0 %v3574_v8, %s2751_s21  ;;  %v3606_v35 = vpack.i.bf16 %v4822_v22, %v4821_v9  ;;  %v4824_v8 = vld [vmem:[#allocation37_spill] sm:$0xff]  ;;  %v2193_v51 = vunpack.i.h.bf16 %v2191_v10  ;;  %v2192_v58 = vunpack.i.l.bf16 %v2191_v10  ;;  %v4830_v10 = vld [vmem:[#allocation30_spill] sm:$0xff] }
  0xb1   : > { %4817 = vst [vmem:[#allocation21_spill] sm:$0xff] %v3588_v15  ;;  %v1328_v41 = vsel %vm1327_vm4, 0.0, %v2127_v17 }
  0xb2   : > { %4820 = vst [vmem:[#allocation13_spill] sm:$0xff] %v3594_v39  ;;  %2410 = vrot.lane.b32.xlu2 %v3582_v46, %s2751_s21  ;;  %v3598_v42 = vpop.permute.xlu0 %2185  ;;  %v4823_v46 = vld [vmem:[#allocation27_spill] sm:$0xff] }
  0xb3   : > { %v3614_v15 = vpack.i.bf16 %v4824_v8, %v4823_v46  ;;  %v4827_v8 = vld [vmem:[#allocation26_spill] sm:$0xff] }
  0xb4   : > { %v2251_v12 = vpop.permute.xlu2 %2250  ;;  %v3629_v46 = vpack.i.bf16 %v4827_v8, %v4826_v2  ;;  %v846_v2 = vrot.slane %v3462_v5, 1  ;;  %v1355_v8 = vsel %vm1327_vm4, %v3136_v33, %v2193_v51 }
  0xb5   : > { %2405 = vrot.lane.b32.xlu1 %v3594_v39, %s2751_s21  ;;  %v2253_v30 = vunpack.i.h.bf16 %v2251_v12  ;;  %v2252_v11 = vunpack.i.l.bf16 %v2251_v12  ;;  %4825 = vst [vmem:[#allocation11_spill] sm:$0xff] %v3614_v15  ;;  %v1329_v12 = vsel %vm1327_vm4, %v2869_v47, %v2128_v14  ;;  %v4829_v14 = vrot.slane %v3435_v0, 7 }
  0xb6   : > { %4828 = vst [vmem:[#allocation16_spill] sm:$0xff] %v3629_v46  ;;  %v847_v0 = vrot.slane %v3459_v61, 1 }
  0xb7   : > { %v3617_v31 = vsel %vm1359_vm3, %v1349_v62, %v2253_v30  ;;  %v3620_v39 = vsel %vm1359_vm3, %v1348_v20, %v2252_v11  ;;  %v2201_v9 = vpop.permute.xlu1 %2200  ;;  %v3642_v17 = vsel %vm247_vm0, %v4829_v14, 0.0  ;;  %v2143_v62 = vunpack.i.h.bf16 %v3500_v48  ;;  %v4832_v14 = vld [vmem:[#allocation32_spill] sm:$0xff] }
  0xb8   : > { %v2203_v22 = vunpack.i.h.bf16 %v2201_v9  ;;  %v2202_v1 = vunpack.i.l.bf16 %v2201_v9  ;;  %2400 = vrot.lane.b32.xlu0 %v3606_v35, %s2751_s21  ;;  %v2142_v20 = vunpack.i.l.bf16 %v3500_v48  ;;  %v4831_v9 = vld [vmem:[#allocation28_spill] sm:$0xff]  ;;  %v1354_v48 = vsel %vm1327_vm4, %v3133_v59, %v2192_v58  ;;  %v4833_v58 = vld [vmem:[#allocation34_spill] sm:$0xff] }
  0xb9   : > { %v1335_v59 = vsel %vm1327_vm4, %v2875_v49, %v2143_v62  ;;  %v848_v49 = vsel %vm406_vm1, %v846_v2, %v847_v0 }
  0xba   : > { %v1360_v30 = vsel %vm1359_vm3, %v1328_v41, %v2202_v1  ;;  %v3633_v11 = vsel %vm1359_vm3, %v1329_v12, %v2203_v22  ;;  %2425 = vrot.lane.b32.xlu2 %v3614_v15, %s2751_s21  ;;  %v3637_v47 = vpop.permute.xlu0 %544  ;;  %v3648_v1 = vpack.i.bf16 %v4831_v9, %v4830_v10  ;;  %v3660_v10 = vpack.i.bf16 %v3246_v16, %v4832_v14 }
  0xbb   : > { %v849_v9 = vrot.slane %v3642_v17, 1  ;;  %v2138_v15 = vunpack.i.h.bf16 %v3476_v63  ;;  %v1334_v16 = vsel %vm1327_vm4, %v2848_v34, %v2142_v20 }
  0xbc   : > { %v2266_v22 = vpop.permute.xlu2 %2265 }
  0xbd   : > { %2420 = vrot.lane.b32.xlu1 %v3629_v46, %s2751_s21  ;;  %v2268_v12 = vunpack.i.h.bf16 %v2266_v22  ;;  %v2267_v41 = vunpack.i.l.bf16 %v2266_v22  ;;  %v2137_v22 = vunpack.i.l.bf16 %v3476_v63  ;;  %v4834_v63 = vld [vmem:[#allocation31_spill] sm:$0xff]  ;;  %v850_v62 = vsel %vm406_vm1, %v847_v0, %v849_v9 }
  0xbe   : > { %v2434_v14 = vpack.i.bf16 %v4834_v63, %v4833_v58  ;;  %v1333_v34 = vsel %vm1327_vm4, %v2833_v27, %v2138_v15  ;;  %v3694_v2 = vpack.i.bf16 %v850_v62, %v848_v49 }
  0xbf   : > { %v3666_v5 = vsel %vm1359_vm3, %v1355_v8, %v2268_v12  ;;  %v3669_v61 = vsel %vm1359_vm3, %v1354_v48, %v2267_v41  ;;  %v2216_v33 = vpop.permute.xlu1 %2215  ;;  %v1332_v20 = vsel %vm1327_vm4, %v2824_v23, %v2137_v22  ;;  %v2158_v48 = vunpack.i.h.bf16 %v3538_v36  ;;  %v4835_v23 = vld [vmem:[#allocation36_spill] sm:$0xff] }
  0xc0   : > { %v2218_v51 = vunpack.i.h.bf16 %v2216_v33  ;;  %v2217_v46 = vunpack.i.l.bf16 %v2216_v33  ;;  %2415 = vrot.lane.b32.xlu0 %v3648_v1, %s2751_s21  ;;  %v3702_v22 = vpack.i.bf16 %v3282_v7, %v4835_v23 }
  0xc2   : > { %v3680_v12 = vsel %vm1359_vm3, %v1335_v59, %v2218_v51  ;;  %v1366_v41 = vsel %vm1359_vm3, %v1334_v16, %v2217_v46  ;;  %2440 = vrot.lane.b32.xlu2 %v3660_v10, %s2752_s22  ;;  %v2211_v8 = vpop.permute.xlu0 %2210  ;;  %v2157_v59 = vunpack.i.l.bf16 %v3538_v36  ;;  %v2153_v16 = vunpack.i.h.bf16 %v3411_v38 }
  0xc3   : > { %v2213_v33 = vunpack.i.h.bf16 %v2211_v8  ;;  %v2212_v51 = vunpack.i.l.bf16 %v2211_v8 }
  0xc4   : > { %v2276_v46 = vpop.permute.xlu2 %2275  ;;  %v1340_v7 = vsel %vm1327_vm4, %v2891_v56, %v2157_v59  ;;  %v2172_v59 = vunpack.i.l.bf16 %v3568_v53 }
  0xc5   : > { %2435 = vrot.lane.b32.xlu1 %v2434_v14, %s2752_s22  ;;  %v2278_v0 = vunpack.i.h.bf16 %v2276_v46  ;;  %v2277_v9 = vunpack.i.l.bf16 %v2276_v46  ;;  %v1365_v27 = vsel %vm1359_vm3, %v1333_v34, %v2213_v33  ;;  %v3698_v15 = vsel %vm1359_vm3, %v1332_v20, %v2212_v51  ;;  %v4836_v20 = vld [vmem:[#allocation35_spill] sm:$0xff] }
  0xc6   : > { %v2152_v14 = vunpack.i.l.bf16 %v3411_v38  ;;  %v1341_v34 = vsel %vm1327_vm4, %v2989_v3, %v2158_v48  ;;  %v3720_v8 = vpack.i.bf16 %v4836_v20, %v3234_v54  ;;  %v1339_v3 = vsel %vm1327_vm4, %v2894_v57, %v2153_v16 }
  0xc7   : > { %v3706_v58 = vsel %vm1391_vm5, %v1360_v30, %v2277_v9  ;;  %v3709_v36 = vsel %vm1391_vm5, %v1360_v30, %v2278_v0  ;;  %v2231_v63 = vpop.permute.xlu1 %2230  ;;  %v2173_v48 = vunpack.i.h.bf16 %v3568_v53  ;;  %v4837_v0 = vld [vmem:[#allocation38_spill] sm:$0xff]  ;;  %v2168_v53 = vunpack.i.h.bf16 %v3431_v19 }
  0xc8   : > { %v2233_v49 = vunpack.i.h.bf16 %v2231_v63  ;;  %v2232_v62 = vunpack.i.l.bf16 %v2231_v63  ;;  %2430 = vrot.lane.b32.xlu0 %v3694_v2, %s2751_s21  ;;  %v1338_v56 = vsel %vm1327_vm4, %v2815_v18, %v2152_v14  ;;  %v3738_v9 = vpack.i.bf16 %v4837_v0, %v3250_v43  ;;  %v4838_v63 = vld [vmem:[#allocation40_spill] sm:$0xff] }
  0xc9   : > { %v3746_v14 = vpack.i.bf16 %v3318_v45, %v4838_v63  ;;  %v1346_v45 = vsel %vm1327_vm4, %v2969_v44, %v2172_v59  ;;  %v4840_v59 = vld [vmem:[#allocation41_spill] sm:$0xff]  ;;  %v4841_v63 = vld [vmem:[#allocation43_spill] sm:$0xff] }
  0xca   : > { %v1372_v30 = vsel %vm1359_vm3, %v1340_v7, %v2232_v62  ;;  %v3724_v33 = vsel %vm1359_vm3, %v1341_v34, %v2233_v49  ;;  %2455 = vrot.lane.b32.xlu2 %v3702_v22, %s2752_s22  ;;  %v2226_v38 = vpop.permute.xlu0 %2225  ;;  %v2167_v34 = vunpack.i.l.bf16 %v3431_v19  ;;  %v3782_v0 = vpack.i.bf16 %v4840_v59, %v3286_v40 }
  0xcb   : > { %v2228_v51 = vunpack.i.h.bf16 %v2226_v38  ;;  %v2227_v54 = vunpack.i.l.bf16 %v2226_v38  ;;  %v2183_v40 = vunpack.i.h.bf16 %v3464_v28 }
  0xcc   : > { %v2291_v46 = vpop.permute.xlu2 %2290  ;;  %v1344_v44 = vsel %vm1327_vm4, %v2958_v37, %v2167_v34 }
  0xcd   : > { %2450 = vrot.lane.b32.xlu1 %v3720_v8, %s2752_s22  ;;  %v2293_v23 = vunpack.i.h.bf16 %v2291_v46  ;;  %v2292_v57 = vunpack.i.l.bf16 %v2291_v46  ;;  %v1371_v16 = vsel %vm1359_vm3, %v1339_v3, %v2228_v51  ;;  %v3742_v18 = vsel %vm1359_vm3, %v1338_v56, %v2227_v54 }
  0xce   : > { %v1347_v3 = vsel %vm1327_vm4, %v3081_v13, %v2173_v48  ;;  %v1345_v13 = vsel %vm1327_vm4, %v2972_v29, %v2168_v53  ;;  %v2188_v48 = vunpack.i.h.bf16 %v3598_v42  ;;  %v2187_v46 = vunpack.i.l.bf16 %v3598_v42 }
  0xcf   : > { %v3750_v49 = vsel %vm1391_vm5, %v1365_v27, %v2292_v57  ;;  %v3753_v62 = vsel %vm1391_vm5, %v1366_v41, %v2293_v23  ;;  %v2246_v43 = vpop.permute.xlu1 %2245  ;;  %v4839_v27 = vld [vmem:[#allocation39_spill] sm:$0xff]  ;;  %v3790_v53 = vpack.i.bf16 %v3351_v60, %v4841_v63 }
  0xd0   : > { %v2248_v7 = vunpack.i.h.bf16 %v2246_v43  ;;  %v2247_v20 = vunpack.i.l.bf16 %v2246_v43  ;;  %2445 = vrot.lane.b32.xlu0 %v3738_v9, %s2752_s22  ;;  %v3764_v38 = vpack.i.bf16 %v4839_v27, %v3271_v50  ;;  %v1352_v60 = vsel %vm1327_vm4, %v3050_v25, %v2187_v46 }
  0xd2   : > { %v1378_v41 = vsel %vm1359_vm3, %v1346_v45, %v2247_v20  ;;  %v3768_v56 = vsel %vm1359_vm3, %v1347_v3, %v2248_v7  ;;  %2470 = vrot.lane.b32.xlu2 %v3746_v14, %s2752_s22  ;;  %v2241_v19 = vpop.permute.xlu0 %2240  ;;  %v2182_v3 = vunpack.i.l.bf16 %v3464_v28  ;;  %v1353_v45 = vsel %vm1327_vm4, %v3142_v21, %v2188_v48 }
  0xd3   : > { %v2243_v51 = vunpack.i.h.bf16 %v2241_v19  ;;  %v2242_v50 = vunpack.i.l.bf16 %v2241_v19  ;;  %v1351_v21 = vsel %vm1327_vm4, %v3041_v6, %v2183_v40  ;;  %v4844_v6 = vld [vmem:[#allocation46_spill] sm:$0xff] }
  0xd4   : > { %v2306_v54 = vpop.permute.xlu2 %2305  ;;  %v1350_v48 = vsel %vm1327_vm4, %v3038_v4, %v2182_v3  ;;  %v4846_v4 = vld [vmem:[#allocation24_spill] sm:$0xff] }
  0xd5   : > { %2465 = vrot.lane.b32.xlu1 %v3764_v38, %s2752_s22  ;;  %v2308_v23 = vunpack.i.h.bf16 %v2306_v54  ;;  %v2307_v29 = vunpack.i.l.bf16 %v2306_v54  ;;  %v1377_v57 = vsel %vm1359_vm3, %v1345_v13, %v2243_v51  ;;  %v3786_v37 = vsel %vm1359_vm3, %v1344_v44, %v2242_v50 }
  0xd6   : > { %v1358_v63 = vsel %vm1327_vm4, %v4846_v4, %v3637_v47 }
  0xd7   : > { %v3793_v42 = vsel %vm1391_vm5, %v1371_v16, %v2307_v29  ;;  %v3796_v43 = vsel %vm1391_vm5, %v1372_v30, %v2308_v23  ;;  %v2261_v34 = vpop.permute.xlu1 %2260  ;;  %v4842_v16 = vld [vmem:[#allocation42_spill] sm:$0xff]  ;;  %v4845_v23 = vld [vmem:[#allocation51_spill] sm:$0xff] }
  0xd8   : > { %v2263_v7 = vunpack.i.h.bf16 %v2261_v34  ;;  %v2262_v20 = vunpack.i.l.bf16 %v2261_v34  ;;  %2460 = vrot.lane.b32.xlu0 %v3782_v0, %s2752_s22  ;;  %v3808_v30 = vpack.i.bf16 %v4842_v16, %v3307_v52  ;;  %v4843_v52 = vld [vmem:[#allocation44_spill] sm:$0xff]  ;;  %v3832_v29 = vpack.i.bf16 %v4845_v23, %v4844_v6  ;;  %v4849_v16 = vld [vmem:[#allocation45_spill] sm:$0xff] }
  0xd9   : > { %v3824_v51 = vpack.i.bf16 %v4843_v52, %v3322_v26  ;;  %v4852_v52 = vld [vmem:[#allocation49_spill] sm:$0xff] }
  0xda   : > { %v1384_v27 = vsel %vm1359_vm3, %v1352_v60, %v2262_v20  ;;  %v3812_v13 = vsel %vm1359_vm3, %v1353_v45, %v2263_v7  ;;  %2485 = vrot.lane.b32.xlu2 %v3790_v53, %s2752_s22  ;;  %v2256_v28 = vpop.permute.xlu0 %2255  ;;  %v4847_v7 = vld [vmem:[#allocation69_spill] sm:$0xff]  ;;  %v4848_v60 = vld [vmem:[#allocation48_spill] sm:$0xff] }
  0xdb   : > { %v2258_v25 = vunpack.i.h.bf16 %v2256_v28  ;;  %v2257_v19 = vunpack.i.l.bf16 %v2256_v28  ;;  %v2198_v20 = vunpack.i.h.bf16 %v4847_v7  ;;  %v2197_v45 = vunpack.i.l.bf16 %v4847_v7 }
  0xdc   : > { %v2321_v44 = vpop.permute.xlu2 %2320  ;;  %v3850_v28 = vpack.i.bf16 %v4849_v16, %v4848_v60 }
  0xdd   : > { %2480 = vrot.lane.b32.xlu1 %v3808_v30, %s2752_s22  ;;  %v2323_v50 = vunpack.i.h.bf16 %v2321_v44  ;;  %v2322_v54 = vunpack.i.l.bf16 %v2321_v44  ;;  %v1383_v46 = vsel %vm1359_vm3, %v1351_v21, %v2258_v25  ;;  %v3828_v59 = vsel %vm1359_vm3, %v1350_v48, %v2257_v19  ;;  %v4851_v44 = vld [vmem:[#allocation23_spill] sm:$0xff] }
  0xde   : > { %v1356_v48 = vsel %vm1327_vm4, %v4851_v44, %v2197_v45  ;;  %v4855_v44 = vld [vmem:[#allocation15_spill] sm:$0xff] }
  0xdf   : > { %v3838_v34 = vsel %vm1391_vm5, %v1377_v57, %v2322_v54  ;;  %v3841_v26 = vsel %vm1391_vm5, %v1378_v41, %v2323_v50  ;;  %v716_v40 = vpop.permute.xlu1 %715  ;;  %v4850_v41 = vld [vmem:[#allocation25_spill] sm:$0xff]  ;;  %v4853_v50 = vld [vmem:[#allocation47_spill] sm:$0xff] }
  0xe0   : > { %v1390_v3 = vsel %vm1359_vm3, %v1358_v63, %v716_v40  ;;  %2475 = vrot.lane.b32.xlu0 %v3824_v51, %s2752_s22  ;;  %v1357_v57 = vsel %vm1327_vm4, %v4850_v41, %v2198_v20  ;;  %v3862_v54 = vpack.i.bf16 %v4853_v50, %v4852_v52 }
  0xe2   : > { %2500 = vrot.lane.b32.xlu2 %v3832_v29, %s2752_s22  ;;  %v2271_v47 = vpop.permute.xlu0 %2270 }
  0xe3   : > { %v2273_v21 = vunpack.i.h.bf16 %v2271_v47  ;;  %v2272_v25 = vunpack.i.l.bf16 %v2271_v47 }
  0xe4   : > { %v2336_v19 = vpop.permute.xlu2 %2335 }
  0xe5   : > { %2495 = vrot.lane.b32.xlu1 %v3850_v28, %s2752_s22  ;;  %v2338_v6 = vunpack.i.h.bf16 %v2336_v19  ;;  %v2337_v23 = vunpack.i.l.bf16 %v2336_v19  ;;  %v1389_v4 = vsel %vm1359_vm3, %v1357_v57, %v2273_v21  ;;  %v3866_v63 = vsel %vm1359_vm3, %v1356_v48, %v2272_v25  ;;  %v4854_v21 = vld [vmem:[#allocation5_spill] sm:$0xff] }
  0xe7   : > { %v3869_v40 = vsel %vm1391_vm5, %v1383_v46, %v2337_v23  ;;  %v3872_v7 = vsel %vm1391_vm5, %v1384_v27, %v2338_v6  ;;  %v2286_v20 = vpop.permute.xlu1 %2285  ;;  %v4856_v23 = vld [vmem:[#allocation55_spill] sm:$0xff] }
  0xe8   : > { %v2288_v45 = vunpack.i.h.bf16 %v2286_v20  ;;  %v2287_v60 = vunpack.i.l.bf16 %v2286_v20  ;;  %2490 = vrot.lane.b32.xlu0 %v3862_v54, %s2752_s22 }
  0xea   : > { %v1396_v16 = vsel %vm1391_vm5, %v3524_v24, %v2287_v60  ;;  %v1397_v47 = vsel %vm1391_vm5, %v3698_v15, %v2288_v45  ;;  %2515 = vrot.lane.b32.xlu2 %v3660_v10, %s2753_s23  ;;  %v2281_v46 = vpop.permute.xlu0 %2280  ;;  %v4857_v45 = vld [vmem:[#allocation71_spill] sm:$0xff] }
  0xeb   : > { %v2283_v41 = vunpack.i.h.bf16 %v2281_v46  ;;  %v2282_v27 = vunpack.i.l.bf16 %v2281_v46 }
  0xec   : > { %v2351_v57 = vpop.permute.xlu2 %2350 }
  0xed   : > { %2510 = vrot.lane.b32.xlu1 %v4854_v21, %s2754_s24  ;;  %v2353_v25 = vunpack.i.h.bf16 %v2351_v57  ;;  %v2352_v19 = vunpack.i.l.bf16 %v2351_v57  ;;  %v3886_v24 = vsel %vm1391_vm5, %v3633_v11, %v2282_v27  ;;  %v3890_v15 = vsel %vm1391_vm5, %v4855_v44, %v2283_v41  ;;  %v4858_v41 = vld [vmem:[#allocation57_spill] sm:$0xff] }
  0xef   : > { %v3893_v10 = vsel %vm1391_vm5, %v1389_v4, %v2352_v19  ;;  %v3896_v48 = vsel %vm1391_vm5, %v1390_v3, %v2353_v25  ;;  %v2301_v52 = vpop.permute.xlu1 %2300 }
  0xf0   : > { %v2303_v50 = vunpack.i.h.bf16 %v2301_v52  ;;  %v2302_v6 = vunpack.i.l.bf16 %v2301_v52  ;;  %2505 = vrot.lane.b32.xlu0 %v4856_v23, %s2755_s25 }
  0xf2   : > { %v1402_v11 = vsel %vm1391_vm5, %v3555_v55, %v2302_v6  ;;  %v1403_v20 = vsel %vm1391_vm5, %v3742_v18, %v2303_v50  ;;  %2530 = vrot.lane.b32.xlu2 %v4857_v45, %s2754_s24  ;;  %v2296_v4 = vpop.permute.xlu0 %2295  ;;  %v4859_v50 = vld [vmem:[#allocation54_spill] sm:$0xff]  ;;  %v4860_v6 = vld [vmem:[#allocation12_spill] sm:$0xff] }
  0xf3   : > { %v2298_v60 = vunpack.i.h.bf16 %v2296_v4  ;;  %v2297_v3 = vunpack.i.l.bf16 %v2296_v4 }
  0xf4   : > { %v2366_v46 = vpop.permute.xlu2 %2365 }
  0xf5   : > { %2525 = vrot.lane.b32.xlu1 %v4858_v41, %s2755_s25  ;;  %v2368_v27 = vunpack.i.h.bf16 %v2366_v46  ;;  %v2367_v57 = vunpack.i.l.bf16 %v2366_v46  ;;  %v3910_v21 = vsel %vm1391_vm5, %v3558_v32, %v2298_v60  ;;  %v3914_v55 = vsel %vm1391_vm5, %v3680_v12, %v2297_v3  ;;  %v4861_v3 = vld [vmem:[#allocation21_spill] sm:$0xff] }
  0xf7   : > { %v3917_v18 = vsel %vm1424_vm6, %v1396_v16, %v2367_v57  ;;  %v3920_v25 = vsel %vm1424_vm6, %v1397_v47, %v2368_v27  ;;  %v2316_v19 = vpop.permute.xlu1 %2315 }
  0xf8   : > { %v2318_v44 = vunpack.i.h.bf16 %v2316_v19  ;;  %v2317_v52 = vunpack.i.l.bf16 %v2316_v19  ;;  %2520 = vrot.lane.b32.xlu0 %v4859_v50, %s2755_s25 }
  0xfa   : > { %v1408_v32 = vsel %vm1391_vm5, %v4860_v6, %v2317_v52  ;;  %v1409_v23 = vsel %vm1391_vm5, %v3786_v37, %v2318_v44  ;;  %2545 = vrot.lane.b32.xlu2 %v3782_v0, %s2753_s23  ;;  %v2311_v12 = vpop.permute.xlu0 %2310 }
  0xfb   : > { %v2313_v16 = vunpack.i.h.bf16 %v2311_v12  ;;  %v2312_v45 = vunpack.i.l.bf16 %v2311_v12 }
  0xfc   : > { %v2381_v47 = vpop.permute.xlu2 %2380 }
  0xfd   : > { %2540 = vrot.lane.b32.xlu1 %v3738_v9, %s2753_s23  ;;  %v2383_v4 = vunpack.i.h.bf16 %v2381_v47  ;;  %v2382_v60 = vunpack.i.l.bf16 %v2381_v47  ;;  %v3934_v46 = vsel %vm1391_vm5, %v4861_v3, %v2313_v16  ;;  %v3938_v41 = vsel %vm1391_vm5, %v3724_v33, %v2312_v45  ;;  %v4862_v9 = vld [vmem:[#allocation9_spill] sm:$0xff] }
  0xff   : > { %v3941_v37 = vsel %vm1424_vm6, %v1402_v11, %v2382_v60  ;;  %v3944_v0 = vsel %vm1424_vm6, %v1403_v20, %v2383_v4  ;;  %v2331_v27 = vpop.permute.xlu1 %2330 }
 0x100   : > { %v2333_v57 = vunpack.i.h.bf16 %v2331_v27  ;;  %v2332_v19 = vunpack.i.l.bf16 %v2331_v27  ;;  %2535 = vrot.lane.b32.xlu0 %v4862_v9, %s2754_s24 }
 0x102   : > { %v1414_v44 = vsel %vm1391_vm5, %v3617_v31, %v2332_v19  ;;  %v1415_v52 = vsel %vm1391_vm5, %v3828_v59, %v2333_v57  ;;  %2560 = vrot.lane.b32.xlu2 %v3808_v30, %s2753_s23  ;;  %v2326_v33 = vpop.permute.xlu0 %2325  ;;  %v4865_v57 = vld [vmem:[#allocation56_spill] sm:$0xff] }
 0x103   : > { %v2328_v11 = vunpack.i.h.bf16 %v2326_v33  ;;  %v2327_v50 = vunpack.i.l.bf16 %v2326_v33 }
 0x104   : > { %v2396_v20 = vpop.permute.xlu2 %2395 }
 0x105   : > { %2555 = vrot.lane.b32.xlu1 %v3606_v35, %s2754_s24  ;;  %v2398_v6 = vunpack.i.h.bf16 %v2396_v20  ;;  %v2397_v12 = vunpack.i.l.bf16 %v2396_v20  ;;  %v3958_v16 = vsel %vm1391_vm5, %v3620_v39, %v2328_v11  ;;  %v3962_v31 = vsel %vm1391_vm5, %v3768_v56, %v2327_v50  ;;  %v4863_v35 = vld [vmem:[#allocation59_spill] sm:$0xff]  ;;  %v4864_v56 = vld [vmem:[#allocation6_spill] sm:$0xff] }
 0x107   : > { %v3965_v59 = vsel %vm1424_vm6, %v1408_v32, %v2397_v12  ;;  %v3968_v30 = vsel %vm1424_vm6, %v1409_v23, %v2398_v6  ;;  %v2346_v45 = vpop.permute.xlu1 %2345  ;;  %v4866_v12 = vld [vmem:[#allocation53_spill] sm:$0xff] }
 0x108   : > { %v2348_v47 = vunpack.i.h.bf16 %v2346_v45  ;;  %v2347_v4 = vunpack.i.l.bf16 %v2346_v45  ;;  %2550 = vrot.lane.b32.xlu0 %v4863_v35, %s2755_s25 }
 0x10a   : > { %v1420_v39 = vsel %vm1391_vm5, %v3666_v5, %v2347_v4  ;;  %v1421_v60 = vsel %vm1391_vm5, %v3866_v63, %v2348_v47  ;;  %2575 = vrot.lane.b32.xlu2 %v4864_v56, %s2754_s24  ;;  %v2341_v32 = vpop.permute.xlu0 %2340 }
 0x10b   : > { %v2343_v3 = vunpack.i.h.bf16 %v2341_v32  ;;  %v2342_v27 = vunpack.i.l.bf16 %v2341_v32 }
 0x10c   : > { %v2411_v23 = vpop.permute.xlu2 %2410 }
 0x10d   : > { %2570 = vrot.lane.b32.xlu1 %v4865_v57, %s2755_s25  ;;  %v2413_v19 = vunpack.i.h.bf16 %v2411_v23  ;;  %v2412_v9 = vunpack.i.l.bf16 %v2411_v23  ;;  %v3982_v33 = vsel %vm1391_vm5, %v3669_v61, %v2343_v3  ;;  %v3986_v5 = vsel %vm1391_vm5, %v3812_v13, %v2342_v27 }
 0x10f   : > { %v3989_v63 = vsel %vm1424_vm6, %v1414_v44, %v2412_v9  ;;  %v3992_v11 = vsel %vm1424_vm6, %v1415_v52, %v2413_v19  ;;  %v2361_v50 = vpop.permute.xlu1 %2360  ;;  %v4869_v9 = vld [vmem:[#allocation70_spill] sm:$0xff] }
 0x110   : > { %v2363_v20 = vunpack.i.h.bf16 %v2361_v50  ;;  %v2362_v6 = vunpack.i.l.bf16 %v2361_v50  ;;  %2565 = vrot.lane.b32.xlu0 %v4866_v12, %s2755_s25  ;;  %v4870_v12 = vld [vmem:[#allocation66_spill] sm:$0xff] }
 0x112   : > { %v3998_v61 = vsel %vm1424_vm6, %v3886_v24, %v2362_v6  ;;  %v4002_v13 = vsel %vm1424_vm6, %v3890_v15, %v2363_v20  ;;  %2590 = vrot.lane.b32.xlu2 %v3764_v38, %s2753_s23  ;;  %v2356_v44 = vpop.permute.xlu0 %2355 }
 0x113   : > { %v2358_v52 = vunpack.i.h.bf16 %v2356_v44  ;;  %v2357_v45 = vunpack.i.l.bf16 %v2356_v44 }
 0x114   : > { %v2426_v47 = vpop.permute.xlu2 %2425 }
 0x115   : > { %2585 = vrot.lane.b32.xlu1 %v3720_v8, %s2753_s23  ;;  %v2428_v4 = vunpack.i.h.bf16 %v2426_v47  ;;  %v2427_v35 = vunpack.i.l.bf16 %v2426_v47  ;;  %v4010_v24 = vsel %vm1424_vm6, %v3706_v58, %v2357_v45  ;;  %v4014_v15 = vsel %vm1424_vm6, %v3709_v36, %v2358_v52  ;;  %v4867_v8 = vld [vmem:[#allocation10_spill] sm:$0xff] }
 0x117   : > { %v4017_v56 = vsel %vm1424_vm6, %v1420_v39, %v2427_v35  ;;  %v4020_v38 = vsel %vm1424_vm6, %v1421_v60, %v2428_v4  ;;  %v2376_v32 = vpop.permute.xlu1 %2375  ;;  %v4868_v39 = vld [vmem:[#allocation13_spill] sm:$0xff] }
 0x118   : > { %v2378_v3 = vunpack.i.h.bf16 %v2376_v32  ;;  %v2377_v27 = vunpack.i.l.bf16 %v2376_v32  ;;  %2580 = vrot.lane.b32.xlu0 %v4867_v8, %s2754_s24 }
 0x11a   : > { %v4026_v58 = vsel %vm1424_vm6, %v3914_v55, %v2377_v27  ;;  %v4030_v36 = vsel %vm1424_vm6, %v3910_v21, %v2378_v3  ;;  %2605 = vrot.lane.b32.xlu2 %v4868_v39, %s2754_s24  ;;  %v2371_v23 = vpop.permute.xlu0 %2370  ;;  %v4872_v27 = vld [vmem:[#allocation7_spill] sm:$0xff] }
 0x11b   : > { %v2373_v60 = vunpack.i.h.bf16 %v2371_v23  ;;  %v2372_v57 = vunpack.i.l.bf16 %v2371_v23  ;;  %v4873_v23 = vld [vmem:[#allocation61_spill] sm:$0xff] }
 0x11c   : > { %v4034_v19 = vpop.permute.xlu2 %2440 }
 0x11d   : > { %2600 = vrot.lane.b32.xlu1 %v4869_v9, %s2755_s25  ;;  %v4040_v50 = vsel %vm1424_vm6, %v3753_v62, %v2373_v60  ;;  %v4044_v55 = vsel %vm1424_vm6, %v3750_v49, %v2372_v57 }
 0x11f   : > { %v2391_v21 = vpop.permute.xlu1 %2390 }
 0x120   : > { %v2393_v20 = vunpack.i.h.bf16 %v2391_v21  ;;  %v2392_v6 = vunpack.i.l.bf16 %v2391_v21  ;;  %2595 = vrot.lane.b32.xlu0 %v4870_v12, %s2755_s25 }
 0x122   : > { %v1439_v44 = vsel %vm1424_vm6, %v3938_v41, %v2392_v6  ;;  %v1440_v52 = vsel %vm1424_vm6, %v3934_v46, %v2393_v20  ;;  %2620 = vrot.lane.b32.xlu2 %v3832_v29, %s2753_s23  ;;  %v2386_v62 = vpop.permute.xlu0 %2385  ;;  %v4871_v29 = vld [vmem:[#allocation16_spill] sm:$0xff] }
 0x123   : > { %v2388_v45 = vunpack.i.h.bf16 %v2386_v62  ;;  %v2387_v47 = vunpack.i.l.bf16 %v2386_v62  ;;  %v4874_v62 = vld [vmem:[#allocation58_spill] sm:$0xff] }
 0x124   : > { %v4054_v49 = vpop.permute.xlu2 %2455 }
 0x125   : > { %2615 = vrot.lane.b32.xlu1 %v3790_v53, %s2753_s23  ;;  %v4060_v4 = vsel %vm1424_vm6, %v3793_v42, %v2387_v47  ;;  %v4064_v41 = vsel %vm1424_vm6, %v3796_v43, %v2388_v45 }
 0x127   : > { %v2406_v46 = vpop.permute.xlu1 %2405 }
 0x128   : > { %v2408_v35 = vunpack.i.h.bf16 %v2406_v46  ;;  %v2407_v32 = vunpack.i.l.bf16 %v2406_v46  ;;  %2610 = vrot.lane.b32.xlu0 %v4871_v29, %s2754_s24 }
 0x12a   : > { %v1445_v3 = vsel %vm1424_vm6, %v3962_v31, %v2407_v32  ;;  %v1446_v53 = vsel %vm1424_vm6, %v3958_v16, %v2408_v35  ;;  %2635 = vrot.lane.b32.xlu2 %v4872_v27, %s2754_s24  ;;  %v2401_v42 = vpop.permute.xlu0 %2400  ;;  %v4876_v27 = vld [vmem:[#allocation2_spill] sm:$0xff] }
 0x12b   : > { %v2403_v8 = vunpack.i.h.bf16 %v2401_v42  ;;  %v2402_v39 = vunpack.i.l.bf16 %v2401_v42 }
 0x12c   : > { %v2471_v43 = vpop.permute.xlu2 %2470 }
 0x12d   : > { %2630 = vrot.lane.b32.xlu1 %v4873_v23, %s2755_s25  ;;  %v2473_v60 = vunpack.i.h.bf16 %v2471_v43  ;;  %v2472_v57 = vunpack.i.l.bf16 %v2471_v43  ;;  %v4078_v9 = vsel %vm1424_vm6, %v3838_v34, %v2402_v39  ;;  %v4082_v16 = vsel %vm1424_vm6, %v3841_v26, %v2403_v8 }
 0x12f   : > { %v4085_v31 = vsel %vm1457_vm7, %v1439_v44, %v2472_v57  ;;  %v4088_v21 = vsel %vm1457_vm7, %v1440_v52, %v2473_v60  ;;  %v2421_v20 = vpop.permute.xlu1 %2420 }
 0x130   : > { %v2423_v6 = vunpack.i.h.bf16 %v2421_v20  ;;  %v2422_v12 = vunpack.i.l.bf16 %v2421_v20  ;;  %2625 = vrot.lane.b32.xlu0 %v4874_v62, %s2755_s25 }
 0x132   : > { %v1451_v34 = vsel %vm1424_vm6, %v3986_v5, %v2422_v12  ;;  %v1452_v45 = vsel %vm1424_vm6, %v3982_v33, %v2423_v6  ;;  %2650 = vrot.lane.b32.xlu2 %v3746_v14, %s2753_s23  ;;  %v2416_v26 = vpop.permute.xlu0 %2415 }
 0x133   : > { %v2418_v44 = vunpack.i.h.bf16 %v2416_v26  ;;  %v2417_v47 = vunpack.i.l.bf16 %v2416_v26 }
 0x134   : > { %v2486_v52 = vpop.permute.xlu2 %2485 }
 0x135   : > { %2645 = vrot.lane.b32.xlu1 %v3702_v22, %s2753_s23  ;;  %v2488_v46 = vunpack.i.h.bf16 %v2486_v52  ;;  %v2487_v35 = vunpack.i.l.bf16 %v2486_v52  ;;  %v4102_v32 = vsel %vm1424_vm6, %v3869_v40, %v2417_v47  ;;  %v4106_v5 = vsel %vm1424_vm6, %v3872_v7, %v2418_v44  ;;  %v4875_v22 = vld [vmem:[#allocation8_spill] sm:$0xff] }
 0x136   : > { %v1609_v40 = vld [vmem:[%s4626_s1 + $0x10] sm:$0x3] }
 0x137   : > { %v4109_v33 = vsel %vm1457_vm7, %v1445_v3, %v2487_v35  ;;  %v4112_v14 = vsel %vm1457_vm7, %v1446_v53, %v2488_v46  ;;  %v4114_v29 = vpop.permute.xlu1 %2435  ;;  %v1619_v42 = vunpack.c.l.b16 %v1609_v40  ;;  %v4877_v53 = vld [vmem:[#allocation68_spill] sm:$0xff]  ;;  %v4879_v46 = vld [vmem:[#allocation50_spill] sm:$0xff] }
 0x138   : > { %2640 = vrot.lane.b32.xlu0 %v4875_v22, %s2754_s24  ;;  %v4878_v52 = vld [vmem:[#allocation52_spill] sm:$0xff] }
 0x139   : > { %v1622_v60 = vpack.c.b16 %v1619_v42, %v1619_v42  ;;  %v2679_v35 = vpack.i.bf16 %v4879_v46, %v4878_v52  ;;  %v2096_v42 = vld [vmem:[%s4626_s1] sm:$0xff] }
 0x13a   : > { %2665 = vrot.lane.b32.xlu2 %v4876_v27, %s2754_s24  ;;  %v2431_v7 = vpop.permute.xlu0 %2430  ;;  %v4885_v52 = vld [vmem:[#allocation62_spill] sm:$0xff] }
 0x13b   : > { %v2433_v8 = vunpack.i.h.bf16 %v2431_v7  ;;  %v2432_v3 = vunpack.i.l.bf16 %v2431_v7  ;;  %v1676_v62 = vsel %vm1674_vm8, %v1622_v60, 0 }
 0x13c   : > { %v2501_v39 = vpop.permute.xlu2 %2500  ;;  %1683 = vmatpush.bf16.msra.mxu0 %v1676_v62  ;;  %2098 = vmatpush.bf16.msra.mxu1 %v1676_v62 }
 0x13d   : > { %2660 = vrot.lane.b32.xlu1 %v4877_v53, %s2755_s25  ;;  %v2503_v43 = vunpack.i.h.bf16 %v2501_v39  ;;  %v2502_v23 = vunpack.i.l.bf16 %v2501_v39  ;;  %v4127_v57 = vsel %vm1424_vm6, %v3893_v10, %v2432_v3  ;;  %v4137_v26 = vsel %vm1424_vm6, %v3896_v48, %v2433_v8  ;;  %v4880_v10 = vld [vmem:[#allocation63_spill] sm:$0xff]  ;;  %2099 = vmatpush.bf16.msra.mxu2 %v1676_v62 }
 0x13e   : > { %v2097_v48 = vld [vmem:[%s4626_s1 + $0x8] sm:$0xff]  ;;  %2100 = vmatpush.bf16.msra.mxu3 %v1676_v62 }
 0x13f   : > { %v4130_v20 = vsel %vm1457_vm7, %v1451_v34, %v2502_v23  ;;  %v4133_v6 = vsel %vm1457_vm7, %v1452_v45, %v2503_v43  ;;  %v2451_v12 = vpop.permute.xlu1 %2450  ;;  %v4882_v43 = vld [vmem:[#allocation3_spill] sm:$0xff] }
 0x140   : > { %v2453_v44 = vunpack.i.h.bf16 %v2451_v12  ;;  %v2452_v47 = vunpack.i.l.bf16 %v2451_v12  ;;  %2655 = vrot.lane.b32.xlu0 %v4880_v10, %s2755_s25  ;;  %1684 = vmatpush.bf16.msra.mxu0 %v2097_v48 }
 0x141   : > { %2101 = vmatpush.bf16.msra.mxu1 %v2097_v48  ;;  %2102 = vmatpush.bf16.msra.mxu2 %v2097_v48 }
 0x142   : > { %v4145_v34 = vsel %vm1457_vm7, %v4044_v55, %v2452_v47  ;;  %v4149_v45 = vsel %vm1457_vm7, %v4040_v50, %v2453_v44  ;;  %2680 = vrot.lane.b32.xlu2 %v2679_v35, %s2753_s23  ;;  %v2446_v22 = vpop.permute.xlu0 %2445  ;;  %2103 = vmatpush.bf16.msra.mxu3 %v2097_v48  ;;  %v4884_v47 = vld [vmem:[#allocation67_spill] sm:$0xff] }
 0x143   : > { %v2448_v27 = vunpack.i.h.bf16 %v2446_v22  ;;  %v2447_v40 = vunpack.i.l.bf16 %v2446_v22 }
 0x144   : > { %v4155_v7 = vpop.permute.xlu2 %2515  ;;  %1685 = vmatpush.bf16.msra.mxu0 %v2096_v42 }
 0x145   : > { %2675 = vrot.lane.b32.xlu1 %v3862_v54, %s2753_s23  ;;  %v4161_v50 = vsel %vm1457_vm7, %v3917_v18, %v2447_v40  ;;  %v4165_v55 = vsel %vm1457_vm7, %v3920_v25, %v2448_v27  ;;  %2104 = vmatpush.bf16.msra.mxu1 %v2096_v42  ;;  %v4881_v54 = vld [vmem:[#allocation11_spill] sm:$0xff] }
 0x146   : > { %2105 = vmatpush.bf16.msra.mxu2 %v2096_v42  ;;  %2106 = vmatpush.bf16.msra.mxu3 %v2096_v42  ;;  %v4887_v42 = vld [vmem:[#allocation64_spill] sm:$0xff] }
 0x147   : > { %v2466_v8 = vpop.permute.xlu1 %2465 }
 0x148   : > { %v2468_v3 = vunpack.i.h.bf16 %v2466_v8  ;;  %v2467_v39 = vunpack.i.l.bf16 %v2466_v8  ;;  %2670 = vrot.lane.b32.xlu0 %v4881_v54, %s2754_s24  ;;  %v948_v8 = vrot.slane %v4887_v42, 2 }
 0x14a   : > { %v4174_v18 = vsel %vm1457_vm7, %v4060_v4, %v2467_v39  ;;  %v4178_v25 = vsel %vm1457_vm7, %v4064_v41, %v2468_v3  ;;  %v4180_v53 = vpop.permute.xlu0 %2460  ;;  %2695 = vrot.lane.b32.xlu2 %v3824_v51, %s2753_s23  ;;  %v4883_v4 = vld [vmem:[#allocation60_spill] sm:$0xff]  ;;  %v950_v3 = vrot.slane %v3642_v17, 2 }
 0x14c   : > { %v4186_v23 = vpop.permute.xlu2 %2530  ;;  %v951_v17 = vsel %vm577_vm2, %v948_v8, %v950_v3 }
 0x14d   : > { %2690 = vrot.lane.b32.xlu1 %v4882_v43, %s2754_s24 }
 0x14f   : > { %v2481_v60 = vpop.permute.xlu1 %2480 }
 0x150   : > { %v2483_v12 = vunpack.i.h.bf16 %v2481_v60  ;;  %v2482_v62 = vunpack.i.l.bf16 %v2481_v60  ;;  %2685 = vrot.lane.b32.xlu0 %v4883_v4, %s2755_s25 }
 0x152   : > { %v4192_v41 = vsel %vm1457_vm7, %v4078_v9, %v2482_v62  ;;  %v4196_v44 = vsel %vm1457_vm7, %v4082_v16, %v2483_v12  ;;  %v4198_v51 = vpop.permute.xlu0 %2475  ;;  %2710 = vrot.lane.b32.xlu2 %v4884_v47, %s2755_s25  ;;  %v4886_v9 = vld [vmem:[#allocation65_spill] sm:$0xff]  ;;  %v2437_v12 = vunpack.i.l.bf16 %v4114_v29  ;;  %v2518_v47 = vunpack.i.h.bf16 %v4155_v7 }
 0x153   : > { %v947_v27 = vrot.slane %v4886_v9, 2 }
 0x154   : > { %v4204_v22 = vpop.permute.xlu2 %2545 }
 0x155   : > { %2705 = vrot.lane.b32.xlu1 %v4885_v52, %s2755_s25  ;;  %v949_v43 = vsel %vm577_vm2, %v947_v27, %v948_v8  ;;  %v4888_v52 = vmov 0.0  }
 0x157   : > { %v2496_v46 = vpop.permute.xlu1 %2495 }
 0x158   : > { %v2498_v10 = vunpack.i.h.bf16 %v2496_v46  ;;  %v2497_v48 = vunpack.i.l.bf16 %v2496_v46  ;;  %2700 = vrot.lane.b32.xlu0 %v2679_v35, %s2752_s22 }
 0x15a   : > { %v4210_v16 = vsel %vm1457_vm7, %v4102_v32, %v2497_v48  ;;  %v4214_v40 = vsel %vm1457_vm7, %v4106_v5, %v2498_v10  ;;  %v2491_v39 = vpop.permute.xlu0 %2490  ;;  %2725 = vrot.lane.b32.xlu2 %v3850_v28, %s2753_s23  ;;  %v2438_v28 = vunpack.i.h.bf16 %v4114_v29  ;;  %v2517_v48 = vunpack.i.l.bf16 %v4155_v7 }
 0x15b   : > { %v2493_v54 = vunpack.i.h.bf16 %v2491_v39  ;;  %v2492_v35 = vunpack.i.l.bf16 %v2491_v39 }
 0x15c   : > { %v4236_v62 = vpop.permute.xlu2 %2560  ;;  %v1459_v29 = vsel %vm1457_vm7, %v4014_v15, %v2438_v28  ;;  %v2442_v15 = vunpack.i.l.bf16 %v4034_v19 }
 0x15d   : > { %2720 = vrot.lane.b32.xlu1 %v3694_v2, %s2754_s24  ;;  %v4224_v32 = vsel %vm1457_vm7, %v3989_v63, %v2492_v35  ;;  %v4228_v5 = vsel %vm1457_vm7, %v3992_v11, %v2493_v54  ;;  %v2734_v2 = vpack.i.bf16 %v951_v17, %v949_v43 }
 0x15e   : > { %v1460_v28 = vsel %vm1457_vm7, %v3998_v61, %v2442_v15 }
 0x15f   : > { %v2511_v60 = vpop.permute.xlu1 %2510 }
 0x160   : > { %2715 = vrot.lane.b32.xlu0 %v3648_v1, %s2754_s24  ;;  %v2513_v63 = vunpack.i.h.bf16 %v2511_v60  ;;  %v2512_v4 = vunpack.i.l.bf16 %v2511_v60  ;;  %v1458_v1 = vsel %vm1457_vm7, %v4010_v24, %v2437_v12  ;;  %v2443_v24 = vunpack.i.h.bf16 %v4034_v19 }
 0x161   : > { %v2532_v19 = vunpack.i.l.bf16 %v4186_v23 }
 0x162   : > { %v2506_v11 = vpop.permute.xlu0 %2505  ;;  %1108 = vrot.lane.b32.xlu2 %v4888_v52, %s2755_s25  ;;  %v1461_v12 = vsel %vm1457_vm7, %v4002_v13, %v2443_v24  ;;  %v2458_v52 = vunpack.i.h.bf16 %v4054_v49 }
 0x163   : > { %v2508_v46 = vunpack.i.h.bf16 %v2506_v11  ;;  %v2507_v10 = vunpack.i.l.bf16 %v2506_v11 }
 0x164   : > { %v4257_v60 = vpop.permute.xlu2 %2575 }
 0x165   : > { %2735 = vrot.lane.b32.xlu1 %v2734_v2, %s2752_s22  ;;  %v1491_v9 = vsel %vm1490_vm9, %v1458_v1, %v2507_v10  ;;  %v1492_v27 = vsel %vm1490_vm9, %v1459_v29, %v2508_v46  ;;  %v2457_v46 = vunpack.i.l.bf16 %v4054_v49  ;;  %v4890_v29 = vld [vmem:[#allocation4_spill] sm:$0xff]  ;;  %v2547_v49 = vunpack.i.l.bf16 %v4204_v22 }
 0x166   : > { %v1524_v8 = vsel %vm1523_vm10, %v1491_v9, %v2512_v4  ;;  %v1525_v3 = vsel %vm1523_vm10, %v1492_v27, %v2513_v63  ;;  %v2533_v63 = vunpack.i.h.bf16 %v4186_v23 }
 0x167   : > { %v2526_v42 = vpop.permute.xlu1 %2525  ;;  %v1557_v7 = vsel %vm1556_vm11, %v1524_v8, %v2517_v48  ;;  %v1558_v39 = vsel %vm1556_vm11, %v1525_v3, %v2518_v47  ;;  %v2548_v3 = vunpack.i.h.bf16 %v4204_v22 }
 0x168   : > { %2730 = vrot.lane.b32.xlu0 %v2734_v2, %s2753_s23  ;;  %v1589_v54 = vpack.c.bf16 %v1558_v39, %v1557_v7  ;;  %v4889_v2 = vld [vmem:[#allocation33_spill] sm:$0xff]  ;;  %v2528_v48 = vunpack.i.h.bf16 %v2526_v42  ;;  %v2527_v13 = vunpack.i.l.bf16 %v2526_v42  ;;  %v1466_v42 = vsel %vm1457_vm7, %v4026_v58, %v2457_v46 }
 0x169   : > { %v1467_v39 = vsel %vm1457_vm7, %v4030_v36, %v2458_v52  ;;  %v2478_v36 = vunpack.i.h.bf16 %v4198_v51  ;;  %v2563_v46 = vunpack.i.h.bf16 %v4236_v62 }
 0x16a   : > { %v2521_v35 = vpop.permute.xlu0 %2520  ;;  %2076 = vmatmul.msk.bf16.vlgmr.msra.gmra.mxu0 %vm1625_vm12, %v1589_v54  ;;  %v1499_v54 = vsel %vm1490_vm9, %v1466_v42, %v2527_v13 }
 0x16b   : > { %v2523_v43 = vunpack.i.h.bf16 %v2521_v35  ;;  %v2522_v17 = vunpack.i.l.bf16 %v2521_v35  ;;  %v1500_v35 = vsel %vm1490_vm9, %v1467_v39, %v2528_v48  ;;  %v1475_v48 = vsel %vm1457_vm7, %v3968_v30, %v2478_v36 }
 0x16d   : > { %1294 = vrot.lane.b32.xlu1 %v4889_v2, %s2753_s23  ;;  %v1493_v4 = vsel %vm1490_vm9, %v1460_v28, %v2522_v17  ;;  %v1494_v11 = vsel %vm1490_vm9, %v1461_v12, %v2523_v43  ;;  %v4287_v28 = vpop.permute.xlu2 %2590 }
 0x16e   : > { %v1526_v1 = vsel %vm1523_vm10, %v1493_v4, %v2532_v19  ;;  %v1527_v23 = vsel %vm1523_vm10, %v1494_v11, %v2533_v63  ;;  %v2477_v19 = vunpack.i.l.bf16 %v4198_v51 }
 0x16f   : > { %v2541_v47 = vpop.permute.xlu1 %2540 }
 0x170   : > { %v2543_v61 = vunpack.i.h.bf16 %v2541_v47  ;;  %v2542_v10 = vunpack.i.l.bf16 %v2541_v47  ;;  %1201 = vrot.lane.b32.xlu0 %v4890_v29, %s2754_s24 }
 0x172   : > { %v1559_v9 = vsel %vm1556_vm11, %v1526_v1, %v2542_v10  ;;  %v1560_v27 = vsel %vm1556_vm11, %v1527_v23, %v2543_v61  ;;  %v2536_v8 = vpop.permute.xlu0 %2535  ;;  %v2562_v61 = vunpack.i.l.bf16 %v4236_v62  ;;  %v1474_v10 = vsel %vm1457_vm7, %v3965_v59, %v2477_v19 }
 0x173   : > { %v1590_v7 = vpack.c.bf16 %v1560_v27, %v1559_v9  ;;  %v2538_v24 = vunpack.i.h.bf16 %v2536_v8  ;;  %v2537_v15 = vunpack.i.l.bf16 %v2536_v8  ;;  %v2592_v19 = vunpack.i.l.bf16 %v4287_v28 }
 0x175   : > { %v1532_v43 = vsel %vm1523_vm10, %v1499_v54, %v2537_v15  ;;  %v1533_v17 = vsel %vm1523_vm10, %v1500_v35, %v2538_v24  ;;  %v2606_v62 = vpop.permute.xlu2 %2605  ;;  %v2463_v15 = vunpack.i.h.bf16 %v4180_v53  ;;  %v2462_v54 = vunpack.i.l.bf16 %v4180_v53 }
 0x176   : > { %v1565_v22 = vsel %vm1556_vm11, %v1532_v43, %v2547_v49  ;;  %v1566_v12 = vsel %vm1556_vm11, %v1533_v17, %v2548_v3  ;;  %v2578_v49 = vunpack.i.h.bf16 %v4257_v60 }
 0x177   : > { %v2556_v58 = vpop.permute.xlu1 %2555  ;;  %v1593_v63 = vpack.c.bf16 %v1566_v12, %v1565_v22  ;;  %v1468_v53 = vsel %vm1457_vm7, %v3941_v37, %v2462_v54 }
 0x178   : > { %v2558_v2 = vunpack.i.h.bf16 %v2556_v58  ;;  %v2557_v4 = vunpack.i.l.bf16 %v2556_v58 }
 0x179   : > { %2080 = vmatmul.msk.bf16.vlgmr.msra.gmra.mxu1 %vm1625_vm12, %v1593_v63 }
 0x17a   : > { %v2551_v11 = vpop.permute.xlu0 %2550  ;;  %2077 = vmatmul.msk.bf16.gmra.mxu0 %vm1625_vm12, %v1590_v7  ;;  %v2577_v7 = vunpack.i.l.bf16 %v4257_v60 }
 0x17b   : > { %v2553_v47 = vunpack.i.h.bf16 %v2551_v11  ;;  %v2552_v52 = vunpack.i.l.bf16 %v2551_v11 }
 0x17d   : > { %v1507_v51 = vsel %vm1490_vm9, %v1474_v10, %v2552_v52  ;;  %v1508_v13 = vsel %vm1490_vm9, %v1475_v48, %v2553_v47  ;;  %v2621_v63 = vpop.permute.xlu2 %2620 }
 0x17e   : > { %v1540_v23 = vsel %vm1523_vm10, %v1507_v51, %v2557_v4  ;;  %v1541_v29 = vsel %vm1523_vm10, %v1508_v13, %v2558_v2  ;;  %v1469_v4 = vsel %vm1457_vm7, %v3944_v0, %v2463_v15  ;;  %v2623_v54 = vunpack.i.h.bf16 %v2621_v63 }
 0x17f   : > { %v2571_v1 = vpop.permute.xlu1 %2570  ;;  %v1573_v9 = vsel %vm1556_vm11, %v1540_v23, %v2562_v61  ;;  %v1574_v27 = vsel %vm1556_vm11, %v1541_v29, %v2563_v46  ;;  %v2608_v29 = vunpack.i.h.bf16 %v2606_v62 }
 0x180   : > { %v1597_v8 = vpack.c.bf16 %v1574_v27, %v1573_v9  ;;  %v2573_v17 = vunpack.i.h.bf16 %v2571_v1  ;;  %v2572_v22 = vunpack.i.l.bf16 %v2571_v1  ;;  %v2607_v9 = vunpack.i.l.bf16 %v2606_v62 }
 0x182   : > { %v2566_v3 = vpop.permute.xlu0 %2565  ;;  %2084 = vmatmul.msk.bf16.vlgmr.msra.gmra.mxu2 %vm1625_vm12, %v1597_v8  ;;  %v1501_v52 = vsel %vm1490_vm9, %v1468_v53, %v2572_v22  ;;  %v1502_v46 = vsel %vm1490_vm9, %v1469_v4, %v2573_v17 }
 0x183   : > { %v2568_v59 = vunpack.i.h.bf16 %v2566_v3  ;;  %v2567_v30 = vunpack.i.l.bf16 %v2566_v3 }
 0x185   : > { %v1495_v42 = vsel %vm1490_vm9, %v4161_v50, %v2567_v30  ;;  %v1496_v39 = vsel %vm1490_vm9, %v4165_v55, %v2568_v59  ;;  %v2593_v55 = vunpack.i.h.bf16 %v4287_v28  ;;  %v2636_v23 = vpop.permute.xlu2 %2635 }
 0x186   : > { %v1528_v12 = vsel %vm1523_vm10, %v1495_v42, %v2577_v7  ;;  %v1529_v58 = vsel %vm1523_vm10, %v1496_v39, %v2578_v49  ;;  %v2638_v53 = vunpack.i.h.bf16 %v2636_v23 }
 0x187   : > { %v2586_v24 = vpop.permute.xlu1 %2585 }
 0x188   : > { %v2588_v35 = vunpack.i.h.bf16 %v2586_v24  ;;  %v2587_v43 = vunpack.i.l.bf16 %v2586_v24 }
 0x18a   : > { %v1561_v60 = vsel %vm1556_vm11, %v1528_v12, %v2587_v43  ;;  %v1562_v50 = vsel %vm1556_vm11, %v1529_v58, %v2588_v35  ;;  %v2581_v36 = vpop.permute.xlu0 %2580  ;;  %v2622_v35 = vunpack.i.l.bf16 %v2621_v63 }
 0x18b   : > { %v1591_v2 = vpack.c.bf16 %v1562_v50, %v1561_v60  ;;  %v2583_v11 = vunpack.i.h.bf16 %v2581_v36  ;;  %v2582_v47 = vunpack.i.l.bf16 %v2581_v36 }
 0x18d   : > { %2078 = vmatmul.msk.bf16.gmra.mxu0 %vm1625_vm12, %v1591_v2  ;;  %v1534_v61 = vsel %vm1523_vm10, %v1501_v52, %v2582_v47  ;;  %v1535_v10 = vsel %vm1523_vm10, %v1502_v46, %v2583_v11  ;;  %v2651_v60 = vpop.permute.xlu2 %2650 }
 0x18e   : > { %v1567_v28 = vsel %vm1556_vm11, %v1534_v61, %v2592_v19  ;;  %v1568_v48 = vsel %vm1556_vm11, %v1535_v10, %v2593_v55 }
 0x18f   : > { %v2601_v37 = vpop.permute.xlu1 %2600  ;;  %v1594_v51 = vpack.c.bf16 %v1568_v48, %v1567_v28 }
 0x190   : > { %v2603_v49 = vunpack.i.h.bf16 %v2601_v37  ;;  %v2602_v7 = vunpack.i.l.bf16 %v2601_v37 }
 0x191   : > { %2081 = vmatmul.msk.bf16.gmra.mxu1 %vm1625_vm12, %v1594_v51 }
 0x192   : > { %v2596_v0 = vpop.permute.xlu0 %2595  ;;  %v1516_v22 = vsel %vm1490_vm9, %v4214_v40, %v2603_v49  ;;  %v2637_v40 = vunpack.i.l.bf16 %v2636_v23 }
 0x193   : > { %v2598_v13 = vunpack.i.h.bf16 %v2596_v0  ;;  %v2597_v1 = vunpack.i.l.bf16 %v2596_v0 }
 0x195   : > { %v1509_v27 = vsel %vm1490_vm9, %v4192_v41, %v2597_v1  ;;  %v1510_v8 = vsel %vm1490_vm9, %v4196_v44, %v2598_v13  ;;  %v1515_v44 = vsel %vm1490_vm9, %v4210_v16, %v2602_v7  ;;  %v2666_v61 = vpop.permute.xlu2 %2665  ;;  %v2653_v1 = vunpack.i.h.bf16 %v2651_v60 }
 0x196   : > { %v1542_v42 = vsel %vm1523_vm10, %v1509_v27, %v2607_v9  ;;  %v1543_v39 = vsel %vm1523_vm10, %v1510_v8, %v2608_v29 }
 0x197   : > { %v2616_v3 = vpop.permute.xlu1 %2615 }
 0x198   : > { %v2618_v59 = vunpack.i.h.bf16 %v2616_v3  ;;  %v2617_v30 = vunpack.i.l.bf16 %v2616_v3 }
 0x19a   : > { %v1575_v24 = vsel %vm1556_vm11, %v1542_v42, %v2617_v30  ;;  %v1576_v15 = vsel %vm1556_vm11, %v1543_v39, %v2618_v59  ;;  %v2611_v62 = vpop.permute.xlu0 %2610 }
 0x19b   : > { %v1598_v41 = vpack.c.bf16 %v1576_v15, %v1575_v24  ;;  %v2613_v43 = vunpack.i.h.bf16 %v2611_v62  ;;  %v2612_v17 = vunpack.i.l.bf16 %v2611_v62  ;;  %v2668_v15 = vunpack.i.h.bf16 %v2666_v61 }
 0x19d   : > { %2085 = vmatmul.msk.bf16.gmra.mxu2 %vm1625_vm12, %v1598_v41  ;;  %v1548_v12 = vsel %vm1523_vm10, %v1515_v44, %v2612_v17  ;;  %v1549_v58 = vsel %vm1523_vm10, %v1516_v22, %v2613_v43  ;;  %v2681_v42 = vpop.permute.xlu2 %2680 }
 0x19e   : > { %v1581_v50 = vsel %vm1556_vm11, %v1548_v12, %v2622_v35  ;;  %v1582_v63 = vsel %vm1556_vm11, %v1549_v58, %v2623_v54 }
 0x19f   : > { %v2631_v36 = vpop.permute.xlu1 %2630  ;;  %v1601_v55 = vpack.c.bf16 %v1582_v63, %v1581_v50  ;;  %v2683_v63 = vunpack.i.h.bf16 %v2681_v42 }
 0x1a0   : > { %v2633_v10 = vunpack.i.h.bf16 %v2631_v36  ;;  %v2632_v28 = vunpack.i.l.bf16 %v2631_v36  ;;  %v2682_v36 = vunpack.i.l.bf16 %v2681_v42 }
 0x1a1   : > { %2088 = vmatmul.msk.bf16.vlgmr.msra.gmra.mxu3 %vm1625_vm12, %v1601_v55 }
 0x1a2   : > { %v2626_v19 = vpop.permute.xlu0 %2625  ;;  %v1503_v9 = vsel %vm1490_vm9, %v4174_v18, %v2632_v28  ;;  %v1504_v27 = vsel %vm1490_vm9, %v4178_v25, %v2633_v10  ;;  %v2667_v25 = vunpack.i.l.bf16 %v2666_v61 }
 0x1a3   : > { %v2628_v16 = vunpack.i.h.bf16 %v2626_v19  ;;  %v2627_v2 = vunpack.i.l.bf16 %v2626_v19 }
 0x1a5   : > { %v1497_v4 = vsel %vm1490_vm9, %v4145_v34, %v2627_v2  ;;  %v1498_v11 = vsel %vm1490_vm9, %v4149_v45, %v2628_v16  ;;  %v2652_v34 = vunpack.i.l.bf16 %v2651_v60 }
 0x1a6   : > { %v1530_v48 = vsel %vm1523_vm10, %v1497_v4, %v2637_v40  ;;  %v1531_v37 = vsel %vm1523_vm10, %v1498_v11, %v2638_v53 }
 0x1a7   : > { %v2646_v47 = vpop.permute.xlu1 %2645 }
 0x1a8   : > { %v2648_v52 = vunpack.i.h.bf16 %v2646_v47  ;;  %v2647_v46 = vunpack.i.l.bf16 %v2646_v47 }
 0x1aa   : > { %v1563_v51 = vsel %vm1556_vm11, %v1530_v48, %v2647_v46  ;;  %v1564_v0 = vsel %vm1556_vm11, %v1531_v37, %v2648_v52  ;;  %v2641_v13 = vpop.permute.xlu0 %2640 }
 0x1ab   : > { %v1592_v23 = vpack.c.bf16 %v1564_v0, %v1563_v51  ;;  %v2643_v29 = vunpack.i.h.bf16 %v2641_v13  ;;  %v2642_v45 = vunpack.i.l.bf16 %v2641_v13 }
 0x1ad   : > { %2079 = vmatmul.msk.bf16.gmra.mxu0 %vm1625_vm12, %v1592_v23  ;;  %v1536_v8 = vsel %vm1523_vm10, %v1503_v9, %v2642_v45  ;;  %v1537_v3 = vsel %vm1523_vm10, %v1504_v27, %v2643_v29 }
 0x1ae   : > { %v1569_v59 = vsel %vm1556_vm11, %v1536_v8, %v2652_v34  ;;  %v1570_v30 = vsel %vm1556_vm11, %v1537_v3, %v2653_v1 }
 0x1af   : > { %v2661_v49 = vpop.permute.xlu1 %2660  ;;  %v1595_v7 = vpack.c.bf16 %v1570_v30, %v1569_v59 }
 0x1b0   : > { %v2663_v17 = vunpack.i.h.bf16 %v2661_v49  ;;  %v2662_v44 = vunpack.i.l.bf16 %v2661_v49 }
 0x1b1   : > { %2082 = vmatmul.msk.bf16.gmra.mxu1 %vm1625_vm12, %v1595_v7 }
 0x1b2   : > { %v2656_v39 = vpop.permute.xlu0 %2655  ;;  %v1517_v16 = vsel %vm1490_vm9, %v4130_v20, %v2662_v44  ;;  %v1518_v2 = vsel %vm1490_vm9, %v4133_v6, %v2663_v17 }
 0x1b3   : > { %v2658_v18 = vunpack.i.h.bf16 %v2656_v39  ;;  %v2657_v24 = vunpack.i.l.bf16 %v2656_v39 }
 0x1b5   : > { %v1511_v62 = vsel %vm1490_vm9, %v4109_v33, %v2657_v24  ;;  %v1512_v54 = vsel %vm1490_vm9, %v4112_v14, %v2658_v18  ;;  %v2696_v14 = vpop.permute.xlu2 %2695 }
 0x1b6   : > { %v1544_v22 = vsel %vm1523_vm10, %v1511_v62, %v2667_v25  ;;  %v1545_v12 = vsel %vm1523_vm10, %v1512_v54, %v2668_v15  ;;  %v2698_v6 = vunpack.i.h.bf16 %v2696_v14  ;;  %v2697_v48 = vunpack.i.l.bf16 %v2696_v14 }
 0x1b7   : > { %v2676_v35 = vpop.permute.xlu1 %2675 }
 0x1b8   : > { %v2678_v41 = vunpack.i.h.bf16 %v2676_v35  ;;  %v2677_v43 = vunpack.i.l.bf16 %v2676_v35 }
 0x1ba   : > { %v1577_v58 = vsel %vm1556_vm11, %v1544_v22, %v2677_v43  ;;  %v1578_v60 = vsel %vm1556_vm11, %v1545_v12, %v2678_v41  ;;  %v2671_v50 = vpop.permute.xlu0 %2670 }
 0x1bb   : > { %v1599_v33 = vpack.c.bf16 %v1578_v60, %v1577_v58  ;;  %v2673_v55 = vunpack.i.h.bf16 %v2671_v50  ;;  %v2672_v19 = vunpack.i.l.bf16 %v2671_v50 }
 0x1bd   : > { %2086 = vmatmul.msk.bf16.gmra.mxu2 %vm1625_vm12, %v1599_v33  ;;  %v1550_v53 = vsel %vm1523_vm10, %v1517_v16, %v2672_v19  ;;  %v1551_v40 = vsel %vm1523_vm10, %v1518_v2, %v2673_v55  ;;  %v2711_v0 = vpop.permute.xlu2 %2710 }
 0x1be   : > { %v1583_v4 = vsel %vm1556_vm11, %v1550_v53, %v2682_v36  ;;  %v1584_v11 = vsel %vm1556_vm11, %v1551_v40, %v2683_v63  ;;  %v2713_v62 = vunpack.i.h.bf16 %v2711_v0  ;;  %v2712_v54 = vunpack.i.l.bf16 %v2711_v0 }
 0x1bf   : > { %v2691_v47 = vpop.permute.xlu1 %2690  ;;  %v1602_v52 = vpack.c.bf16 %v1584_v11, %v1583_v4 }
 0x1c0   : > { %v2693_v46 = vunpack.i.h.bf16 %v2691_v47  ;;  %v2692_v61 = vunpack.i.l.bf16 %v2691_v47 }
 0x1c1   : > { %2089 = vmatmul.msk.bf16.gmra.mxu3 %vm1625_vm12, %v1602_v52 }
 0x1c2   : > { %v2686_v20 = vpop.permute.xlu0 %2685 }
 0x1c3   : > { %v2688_v10 = vunpack.i.h.bf16 %v2686_v20  ;;  %v2687_v28 = vunpack.i.l.bf16 %v2686_v20 }
 0x1c5   : > { %v1505_v37 = vsel %vm1490_vm9, %v4085_v31, %v2687_v28  ;;  %v1506_v51 = vsel %vm1490_vm9, %v4088_v21, %v2688_v10  ;;  %v2726_v8 = vpop.permute.xlu2 %2725 }
 0x1c6   : > { %v1538_v1 = vsel %vm1523_vm10, %v1505_v37, %v2692_v61  ;;  %v1539_v34 = vsel %vm1523_vm10, %v1506_v51, %v2693_v46  ;;  %v2728_v21 = vunpack.i.h.bf16 %v2726_v8  ;;  %v2727_v30 = vunpack.i.l.bf16 %v2726_v8 }
 0x1c7   : > { %v2706_v13 = vpop.permute.xlu1 %2705  ;;  %v1571_v23 = vsel %vm1556_vm11, %v1538_v1, %v2697_v48  ;;  %v1572_v29 = vsel %vm1556_vm11, %v1539_v34, %v2698_v6 }
 0x1c8   : > { %v1596_v45 = vpack.c.bf16 %v1572_v29, %v1571_v23  ;;  %v2708_v31 = vunpack.i.h.bf16 %v2706_v13  ;;  %v2707_v3 = vunpack.i.l.bf16 %v2706_v13 }
 0x1ca   : > { %v2701_v9 = vpop.permute.xlu0 %2700  ;;  %2083 = vmatmul.msk.bf16.gmra.mxu1 %vm1625_vm12, %v1596_v45  ;;  %v1513_v18 = vsel %vm1490_vm9, %v4224_v32, %v2707_v3  ;;  %v1514_v24 = vsel %vm1490_vm9, %v4228_v5, %v2708_v31 }
 0x1cb   : > { %v2703_v49 = vunpack.i.h.bf16 %v2701_v9  ;;  %v2702_v7 = vunpack.i.l.bf16 %v2701_v9 }
 0x1cd   : > { %v1486_v43 = vsel %vm1457_vm7, %v4017_v56, %v2702_v7  ;;  %v1487_v17 = vsel %vm1457_vm7, %v4020_v38, %v2703_v49  ;;  %v1109_v16 = vpop.permute.xlu2 %1108 }
 0x1ce   : > { %v1519_v12 = vsel %vm1490_vm9, %v1486_v43, %v2712_v54  ;;  %v1520_v58 = vsel %vm1490_vm9, %v1487_v17, %v2713_v62 }
 0x1cf   : > { %v2721_v27 = vpop.permute.xlu1 %2720 }
 0x1d0   : > { %v2723_v22 = vunpack.i.h.bf16 %v2721_v27  ;;  %v2722_v5 = vunpack.i.l.bf16 %v2721_v27 }
 0x1d2   : > { %v2716_v59 = vpop.permute.xlu0 %2715  ;;  %v1552_v56 = vsel %vm1523_vm10, %v1519_v12, %v2722_v5  ;;  %v1553_v55 = vsel %vm1523_vm10, %v1520_v58, %v2723_v22 }
 0x1d3   : > { %v2718_v42 = vunpack.i.h.bf16 %v2716_v59  ;;  %v2717_v39 = vunpack.i.l.bf16 %v2716_v59 }
 0x1d5   : > { %v1546_v15 = vsel %vm1523_vm10, %v1513_v18, %v2717_v39  ;;  %v1547_v25 = vsel %vm1523_vm10, %v1514_v24, %v2718_v42 }
 0x1d6   : > { %v1579_v35 = vsel %vm1556_vm11, %v1546_v15, %v2727_v30  ;;  %v1580_v41 = vsel %vm1556_vm11, %v1547_v25, %v2728_v21 }
 0x1d7   : > { %v1600_v32 = vpack.c.bf16 %v1580_v41, %v1579_v35  ;;  %v2736_v44 = vpop.permute.xlu1 %2735 }
 0x1d8   : > { %v2738_v50 = vunpack.i.h.bf16 %v2736_v44  ;;  %v2737_v63 = vunpack.i.l.bf16 %v2736_v44 }
 0x1d9   : > { %2087 = vmatmul.msk.bf16.gmra.mxu2 %vm1625_vm12, %v1600_v32 }
 0x1da   : > { %v2731_v60 = vpop.permute.xlu0 %2730  ;;  %v1488_v2 = vsel %vm1457_vm7, %v4127_v57, %v2737_v63  ;;  %v1489_v53 = vsel %vm1457_vm7, %v4137_v26, %v2738_v50 }
 0x1db   : > { %v2733_v36 = vunpack.i.h.bf16 %v2731_v60  ;;  %v2732_v33 = vunpack.i.l.bf16 %v2731_v60  ;;  %v1521_v4 = vsel %vm1490_vm9, %v1488_v2, %v1109_v16  ;;  %v1522_v11 = vsel %vm1490_vm9, %v1489_v53, %v1109_v16 }
 0x1dd   : > { %v1585_v38 = vsel %vm1556_vm11, %v1552_v56, %v2732_v33  ;;  %v1586_v19 = vsel %vm1556_vm11, %v1553_v55, %v2733_v36 }
 0x1de   : > { %v1603_v14 = vpack.c.bf16 %v1586_v19, %v1585_v38 }
 0x1df   : > { %v1295_v40 = vpop.permute.xlu1 %1294 }
 0x1e0   : > { %2090 = vmatmul.msk.bf16.gmra.mxu3 %vm1625_vm12, %v1603_v14 }
 0x1e2   : > { %v1202_v47 = vpop.permute.xlu0 %1201 }
 0x1e3   : > { %v1554_v52 = vsel %vm1523_vm10, %v1521_v4, %v1202_v47  ;;  %v1555_v46 = vsel %vm1523_vm10, %v1522_v11, %v1202_v47 }
 0x1e4   : > { %v1587_v61 = vsel %vm1556_vm11, %v1554_v52, %v1295_v40  ;;  %v1588_v20 = vsel %vm1556_vm11, %v1555_v46, %v1295_v40 }
 0x1e5   : > { %v1604_v57 = vpack.c.bf16 %v1588_v20, %v1587_v61 }
 0x1e7   : > { %v1687_v26 = vpop.f32.mrf.mxu0 }
 0x1e8   : > { %1767 = vst.msk [vmem:[%s4432_s7] sm:$0xff] %vm1327_vm4, %v1687_v26  ;;  %v1868_v10 = vmul.f32 %v1687_v26, %v1687_v26  ;;  %v1799_v6 = vsel %vm1327_vm4, %v1687_v26, 0.0 }
 0x1ea   : > { %v1900_v0 = vsel %vm1327_vm4, %v1868_v10, 0.0 }
 0x1ef   : > { %v1689_v28 = vpop.f32.mrf.mxu0 }
 0x1f0   : > { %1768 = vst.msk [vmem:[%s4432_s7 + $0x8] sm:$0xff] %vm1327_vm4, %v1689_v28  ;;  %v1800_v48 = vsel %vm1327_vm4, %v1689_v28, 0.0  ;;  %v1869_v37 = vmul.f32 %v1689_v28, %v1689_v28  ;;  %2091 = vmatmul.msk.bf16.gmra.mxu3 %vm1625_vm12, %v1604_v57 }
 0x1f1   : > { %v1801_v51 = vadd.f32 %v1800_v48, %v1799_v6 }
 0x1f2   : > { %v1901_v13 = vsel %vm1327_vm4, %v1869_v37, 0.0 }
 0x1f3   : > { %v1902_v1 = vadd.f32 %v1901_v13, %v1900_v0 }
 0x1f6   : > { %v4443_v34 = vpop.f32.mrf.mxu1 }
 0x1f7   : > { %1775 = vst.msk [vmem:[%s4432_s7 + $0x40] sm:$0xff] %vm1327_vm4, %v4443_v34  ;;  %v1692_v23 = vpop.f32.mrf.mxu0  ;;  %v1876_v14 = vmul.f32 %v4443_v34, %v4443_v34  ;;  %v1814_v4 = vsel %vm1327_vm4, %v4443_v34, 0.0 }
 0x1f8   : > { %1769 = vst.msk [vmem:[%s4432_s7 + $0x10] sm:$0xff] %vm1327_vm4, %v1692_v23  ;;  %v1802_v29 = vsel %vm1327_vm4, %v1692_v23, 0.0  ;;  %v1870_v45 = vmul.f32 %v1692_v23, %v1692_v23 }
 0x1f9   : > { %v1803_v9 = vadd.f32 %v1802_v29, %v1801_v51  ;;  %v1915_v61 = vsel %vm1327_vm4, %v1876_v14, 0.0 }
 0x1fa   : > { %v1903_v27 = vsel %vm1327_vm4, %v1870_v45, 0.0 }
 0x1fb   : > { %v1904_v8 = vadd.f32 %v1903_v27, %v1902_v1 }
 0x1fe   : > { %v1709_v31 = vpop.f32.mrf.mxu1 }
 0x1ff   : > { %1776 = vst.msk [vmem:[%s4432_s7 + $0x48] sm:$0xff] %vm1327_vm4, %v1709_v31  ;;  %v1694_v3 = vpop.f32.mrf.mxu0  ;;  %v1877_v11 = vmul.f32 %v1709_v31, %v1709_v31  ;;  %v1816_v20 = vsel %vm1327_vm4, %v1709_v31, 0.0 }
 0x200   : > { %1770 = vst.msk [vmem:[%s4432_s7 + $0x18] sm:$0xff] %vm1327_vm4, %v1694_v3  ;;  %v1804_v59 = vsel %vm1327_vm4, %v1694_v3, 0.0  ;;  %v1871_v21 = vmul.f32 %v1694_v3, %v1694_v3 }
 0x201   : > { %v1805_v30 = vadd.f32 %v1804_v59, %v1803_v9  ;;  %v1917_v6 = vsel %vm1327_vm4, %v1877_v11, 0.0 }
 0x202   : > { %v1905_v49 = vsel %vm1327_vm4, %v1871_v21, 0.0 }
 0x203   : > { %v1906_v7 = vadd.f32 %v1905_v49, %v1904_v8 }
 0x205   : > { %v4458_v42 = vpop.f32.mrf.mxu2 }
 0x206   : > { %1783 = vst.msk [vmem:[%s4432_s7 + $0x80] sm:$0xff] %vm1327_vm4, %v4458_v42 }
 0x20a   : > { %v1697_v39 = vpop.f32.mrf.mxu0 }
 0x20b   : > { %1771 = vst.msk [vmem:[%s4432_s7 + $0x20] sm:$0xff] %vm1327_vm4, %v1697_v39  ;;  %v1872_v41 = vmul.f32 %v1697_v39, %v1697_v39  ;;  %v1806_v17 = vsel %vm1327_vm4, %v1697_v39, 0.0 }
 0x20c   : > { %v1807_v58 = vadd.f32 %v1806_v17, %v1805_v30 }
 0x20d   : > { %v4465_v18 = vpop.f32.mrf.mxu2  ;;  %v1907_v44 = vsel %vm1327_vm4, %v1872_v41, 0.0 }
 0x20e   : > { %1784 = vst.msk [vmem:[%s4432_s7 + $0x88] sm:$0xff] %vm1327_vm4, %v4465_v18  ;;  %v1712_v24 = vpop.f32.mrf.mxu1  ;;  %v1908_v36 = vadd.f32 %v1907_v44, %v1906_v7  ;;  %v1832_v14 = vsel %vm1327_vm4, %v4465_v18, 0.0 }
 0x20f   : > { %1777 = vst.msk [vmem:[%s4432_s7 + $0x50] sm:$0xff] %vm1327_vm4, %v1712_v24  ;;  %v1878_v57 = vmul.f32 %v1712_v24, %v1712_v24  ;;  %v1818_v48 = vsel %vm1327_vm4, %v1712_v24, 0.0 }
 0x211   : > { %v1919_v0 = vsel %vm1327_vm4, %v1878_v57, 0.0 }
 0x212   : > { %v1699_v15 = vpop.f32.mrf.mxu0 }
 0x213   : > { %1772 = vst.msk [vmem:[%s4432_s7 + $0x28] sm:$0xff] %vm1327_vm4, %v1699_v15  ;;  %v1873_v32 = vmul.f32 %v1699_v15, %v1699_v15  ;;  %v1808_v22 = vsel %vm1327_vm4, %v1699_v15, 0.0 }
 0x214   : > { %v1809_v33 = vadd.f32 %v1808_v22, %v1807_v58 }
 0x215   : > { %v1909_v60 = vsel %vm1327_vm4, %v1873_v32, 0.0 }
 0x216   : > { %v1714_v25 = vpop.f32.mrf.mxu1  ;;  %v1910_v55 = vadd.f32 %v1909_v60, %v1908_v36  ;;  %v1830_v36 = vsel %vm1327_vm4, %v4458_v42, 0.0 }
 0x217   : > { %1778 = vst.msk [vmem:[%s4432_s7 + $0x58] sm:$0xff] %vm1327_vm4, %v1714_v25  ;;  %v1879_v34 = vmul.f32 %v1714_v25, %v1714_v25  ;;  %v1820_v23 = vsel %vm1327_vm4, %v1714_v25, 0.0 }
 0x219   : > { %v1921_v9 = vsel %vm1327_vm4, %v1879_v34, 0.0 }
 0x220   : > { %v4476_v62 = vpop.f32.mrf.mxu2 }
 0x221   : > { %1785 = vst.msk [vmem:[%s4432_s7 + $0x90] sm:$0xff] %vm1327_vm4, %v4476_v62 }
 0x224   : > { %v4481_v54 = vpop.f32.mrf.mxu3 }
 0x225   : > { %1791 = vst.msk [vmem:[%s4432_s7 + $0xc0] sm:$0xff] %vm1327_vm4, %v4481_v54 }
 0x228   : > { %v4486_v35 = vpop.f32.mrf.mxu2 }
 0x229   : > { %1786 = vst.msk [vmem:[%s4432_s7 + $0x98] sm:$0xff] %vm1327_vm4, %v4486_v35 }
 0x22a   : > { %v1702_v43 = vpop.f32.mrf.mxu0 }
 0x22b   : > { %1773 = vst.msk [vmem:[%s4432_s7 + $0x30] sm:$0xff] %vm1327_vm4, %v1702_v43  ;;  %v1874_v12 = vmul.f32 %v1702_v43, %v1702_v43  ;;  %v1810_v50 = vsel %vm1327_vm4, %v1702_v43, 0.0 }
 0x22c   : > { %v4496_v5 = vpop.f32.mrf.mxu3  ;;  %v1811_v38 = vadd.f32 %v1810_v50, %v1809_v33  ;;  %v1885_v33 = vmul.f32 %v4465_v18, %v4465_v18  ;;  %v1836_v18 = vsel %vm1327_vm4, %v4486_v35, 0.0 }
 0x22d   : > { %1792 = vst.msk [vmem:[%s4432_s7 + $0xc8] sm:$0xff] %vm1327_vm4, %v4496_v5  ;;  %v1911_v56 = vsel %vm1327_vm4, %v1874_v12, 0.0  ;;  %v1884_v12 = vmul.f32 %v4458_v42, %v4458_v42  ;;  %v1834_v42 = vsel %vm1327_vm4, %v4476_v62, 0.0 }
 0x22e   : > { %v1717_v63 = vpop.f32.mrf.mxu1  ;;  %v1912_v53 = vadd.f32 %v1911_v56, %v1910_v55 }
 0x22f   : > { %1779 = vst.msk [vmem:[%s4432_s7 + $0x60] sm:$0xff] %vm1327_vm4, %v1717_v63  ;;  %v1880_v27 = vmul.f32 %v1717_v63, %v1717_v63  ;;  %v1822_v59 = vsel %vm1327_vm4, %v1717_v63, 0.0 }
 0x231   : > { %v1923_v30 = vsel %vm1327_vm4, %v1880_v27, 0.0 }
 0x232   : > { %v1704_v19 = vpop.f32.mrf.mxu0 }
 0x233   : > { %1774 = vst.msk [vmem:[%s4432_s7 + $0x38] sm:$0xff] %vm1327_vm4, %v1704_v19  ;;  %v1812_v16 = vsel %vm1327_vm4, %v1704_v19, 0.0  ;;  %v1875_v2 = vmul.f32 %v1704_v19, %v1704_v19  ;;  %v1931_v19 = vsel %vm1327_vm4, %v1884_v12, 0.0 }
 0x234   : > { %v1813_v40 = vadd.f32 %v1812_v16, %v1811_v38  ;;  %v1886_v16 = vmul.f32 %v4476_v62, %v4476_v62 }
 0x235   : > { %v1913_v47 = vsel %vm1327_vm4, %v1875_v2, 0.0 }
 0x236   : > { %v1815_v52 = vadd.f32 %v1814_v4, %v1813_v40  ;;  %v1914_v46 = vadd.f32 %v1913_v47, %v1912_v53  ;;  %v1719_v26 = vpop.f32.mrf.mxu1  ;;  %v1933_v40 = vsel %vm1327_vm4, %v1885_v33, 0.0  ;;  %v1887_v4 = vmul.f32 %v4486_v35, %v4486_v35 }
 0x237   : > { %1780 = vst.msk [vmem:[%s4432_s7 + $0x68] sm:$0xff] %vm1327_vm4, %v1719_v26  ;;  %v1881_v49 = vmul.f32 %v1719_v26, %v1719_v26  ;;  %v1824_v24 = vsel %vm1327_vm4, %v1719_v26, 0.0 }
 0x238   : > { %v1817_v10 = vadd.f32 %v1816_v20, %v1815_v52  ;;  %v1916_v28 = vadd.f32 %v1915_v61, %v1914_v46  ;;  %v1935_v52 = vsel %vm1327_vm4, %v1886_v16, 0.0  ;;  %v1937_v57 = vsel %vm1327_vm4, %v1887_v4, 0.0 }
 0x239   : > { %v1925_v43 = vsel %vm1327_vm4, %v1881_v49, 0.0  ;;  %v1893_v49 = vmul.f32 %v4496_v5, %v4496_v5 }
 0x23a   : > { %v1819_v37 = vadd.f32 %v1818_v48, %v1817_v10  ;;  %v1918_v51 = vadd.f32 %v1917_v6, %v1916_v28 }
 0x23c   : > { %v1920_v13 = vadd.f32 %v1919_v0, %v1918_v51  ;;  %v1821_v45 = vadd.f32 %v1820_v23, %v1819_v37 }
 0x23e   : > { %v1922_v8 = vadd.f32 %v1921_v9, %v1920_v13  ;;  %v1823_v21 = vadd.f32 %v1822_v59, %v1821_v45 }
 0x240   : > { %v1737_v1 = vpop.f32.mrf.mxu2  ;;  %v1924_v39 = vadd.f32 %v1923_v30, %v1922_v8  ;;  %v1825_v41 = vadd.f32 %v1824_v24, %v1823_v21  ;;  %v1892_v8 = vmul.f32 %v4481_v54, %v4481_v54  ;;  %v1846_v30 = vsel %vm1327_vm4, %v4481_v54, 0.0 }
 0x241   : > { %1787 = vst.msk [vmem:[%s4432_s7 + $0xa0] sm:$0xff] %vm1327_vm4, %v1737_v1  ;;  %v1888_v46 = vmul.f32 %v1737_v1, %v1737_v1  ;;  %v1838_v26 = vsel %vm1327_vm4, %v1737_v1, 0.0  ;;  %v1949_v54 = vsel %vm1327_vm4, %v1893_v49, 0.0 }
 0x242   : > { %v1926_v32 = vadd.f32 %v1925_v43, %v1924_v39 }
 0x243   : > { %v1939_v6 = vsel %vm1327_vm4, %v1888_v46, 0.0 }
 0x244   : > { %v4524_v29 = vpop.f32.mrf.mxu3 }
 0x245   : > { %1793 = vst.msk [vmem:[%s4432_s7 + $0xd0] sm:$0xff] %vm1327_vm4, %v4524_v29  ;;  %v1894_v43 = vmul.f32 %v4524_v29, %v4524_v29 }
 0x247   : > { %v1722_v31 = vpop.f32.mrf.mxu1 }
 0x248   : > { %v1739_v3 = vpop.f32.mrf.mxu2  ;;  %1781 = vst.msk [vmem:[%s4432_s7 + $0x70] sm:$0xff] %vm1327_vm4, %v1722_v31  ;;  %v1882_v7 = vmul.f32 %v1722_v31, %v1722_v31  ;;  %v1826_v15 = vsel %vm1327_vm4, %v1722_v31, 0.0 }
 0x249   : > { %1788 = vst.msk [vmem:[%s4432_s7 + $0xa8] sm:$0xff] %vm1327_vm4, %v1739_v3  ;;  %v1827_v44 = vadd.f32 %v1826_v15, %v1825_v41  ;;  %v1889_v48 = vmul.f32 %v1739_v3, %v1739_v3  ;;  %v1840_v35 = vsel %vm1327_vm4, %v1739_v3, 0.0  ;;  %v1947_v15 = vsel %vm1327_vm4, %v1892_v8, 0.0 }
 0x24a   : > { %v1927_v17 = vsel %vm1327_vm4, %v1882_v7, 0.0  ;;  %v1848_v41 = vsel %vm1327_vm4, %v4496_v5, 0.0  ;;  %v1951_v5 = vsel %vm1327_vm4, %v1894_v43, 0.0 }
 0x24b   : > { %v1928_v50 = vadd.f32 %v1927_v17, %v1926_v32  ;;  %v1941_v13 = vsel %vm1327_vm4, %v1889_v48, 0.0 }
 0x24c   : > { %v4538_v25 = vpop.f32.mrf.mxu3 }
 0x24d   : > { %1794 = vst.msk [vmem:[%s4432_s7 + $0xd8] sm:$0xff] %vm1327_vm4, %v4538_v25  ;;  %v1895_v12 = vmul.f32 %v4538_v25, %v4538_v25 }
 0x24f   : > { %v1724_v22 = vpop.f32.mrf.mxu1  ;;  %v1953_v33 = vsel %vm1327_vm4, %v1895_v12, 0.0 }
 0x250   : > { %1782 = vst.msk [vmem:[%s4432_s7 + $0x78] sm:$0xff] %vm1327_vm4, %v1724_v22  ;;  %v1828_v58 = vsel %vm1327_vm4, %v1724_v22, 0.0  ;;  %v1883_v60 = vmul.f32 %v1724_v22, %v1724_v22 }
 0x251   : > { %v1829_v63 = vadd.f32 %v1828_v58, %v1827_v44  ;;  %v1850_v44 = vsel %vm1327_vm4, %v4524_v29, 0.0 }
 0x252   : > { %v1929_v56 = vsel %vm1327_vm4, %v1883_v60, 0.0 }
 0x253   : > { %v1831_v55 = vadd.f32 %v1830_v36, %v1829_v63  ;;  %v1930_v38 = vadd.f32 %v1929_v56, %v1928_v50  ;;  %v1852_v50 = vsel %vm1327_vm4, %v4538_v25, 0.0 }
 0x255   : > { %v1833_v2 = vadd.f32 %v1832_v14, %v1831_v55  ;;  %v1932_v53 = vadd.f32 %v1931_v19, %v1930_v38 }
 0x257   : > { %v1835_v11 = vadd.f32 %v1834_v42, %v1833_v2  ;;  %v1934_v47 = vadd.f32 %v1933_v40, %v1932_v53 }
 0x259   : > { %v1936_v61 = vadd.f32 %v1935_v52, %v1934_v47  ;;  %v1837_v20 = vadd.f32 %v1836_v18, %v1835_v11 }
 0x25b   : > { %v1938_v10 = vadd.f32 %v1937_v57, %v1936_v61  ;;  %v1839_v28 = vadd.f32 %v1838_v26, %v1837_v20 }
 0x25c   : > { %v1742_v62 = vpop.f32.mrf.mxu2 }
 0x25d   : > { %1789 = vst.msk [vmem:[%s4432_s7 + $0xb0] sm:$0xff] %vm1327_vm4, %v1742_v62  ;;  %v1940_v37 = vadd.f32 %v1939_v6, %v1938_v10  ;;  %v1890_v51 = vmul.f32 %v1742_v62, %v1742_v62  ;;  %v1841_v0 = vadd.f32 %v1840_v35, %v1839_v28  ;;  %v1842_v34 = vsel %vm1327_vm4, %v1742_v62, 0.0 }
 0x25f   : > { %v1942_v1 = vadd.f32 %v1941_v13, %v1940_v37  ;;  %v1943_v23 = vsel %vm1327_vm4, %v1890_v51, 0.0  ;;  %v1843_v9 = vadd.f32 %v1842_v34, %v1841_v0 }
 0x261   : > { %v1944_v59 = vadd.f32 %v1943_v23, %v1942_v1 }
 0x263   : > { %v1757_v45 = vpop.f32.mrf.mxu3 }
 0x264   : > { %1795 = vst.msk [vmem:[%s4432_s7 + $0xe0] sm:$0xff] %vm1327_vm4, %v1757_v45  ;;  %v1744_v27 = vpop.f32.mrf.mxu2  ;;  %v1896_v56 = vmul.f32 %v1757_v45, %v1757_v45  ;;  %v1854_v55 = vsel %vm1327_vm4, %v1757_v45, 0.0 }
 0x265   : > { %1790 = vst.msk [vmem:[%s4432_s7 + $0xb8] sm:$0xff] %vm1327_vm4, %v1744_v27  ;;  %v1844_v31 = vsel %vm1327_vm4, %v1744_v27, 0.0  ;;  %v1891_v3 = vmul.f32 %v1744_v27, %v1744_v27 }
 0x266   : > { %v1845_v21 = vadd.f32 %v1844_v31, %v1843_v9  ;;  %v1955_v14 = vsel %vm1327_vm4, %v1896_v56, 0.0 }
 0x267   : > { %v1945_v7 = vsel %vm1327_vm4, %v1891_v3, 0.0 }
 0x268   : > { %v1847_v39 = vadd.f32 %v1846_v30, %v1845_v21  ;;  %v1946_v24 = vadd.f32 %v1945_v7, %v1944_v59 }
 0x26a   : > { %v1849_v17 = vadd.f32 %v1848_v41, %v1847_v39  ;;  %v1948_v32 = vadd.f32 %v1947_v15, %v1946_v24 }
 0x26b   : > { %v1759_v22 = vpop.f32.mrf.mxu3 }
 0x26c   : > { %v1851_v58 = vadd.f32 %v1850_v44, %v1849_v17  ;;  %v1950_v60 = vadd.f32 %v1949_v54, %v1948_v32  ;;  %1796 = vst.msk [vmem:[%s4432_s7 + $0xe8] sm:$0xff] %vm1327_vm4, %v1759_v22  ;;  %v1897_v16 = vmul.f32 %v1759_v22, %v1759_v22  ;;  %v1856_v53 = vsel %vm1327_vm4, %v1759_v22, 0.0 }
 0x26e   : > { %v1952_v63 = vadd.f32 %v1951_v5, %v1950_v60  ;;  %v1853_v36 = vadd.f32 %v1852_v50, %v1851_v58  ;;  %v1957_v42 = vsel %vm1327_vm4, %v1897_v16, 0.0 }
 0x270   : > { %v1954_v29 = vadd.f32 %v1953_v33, %v1952_v63  ;;  %v1855_v38 = vadd.f32 %v1854_v55, %v1853_v36 }
 0x272   : > { %v1956_v2 = vadd.f32 %v1955_v14, %v1954_v29  ;;  %v1857_v40 = vadd.f32 %v1856_v53, %v1855_v38 }
 0x273   : > { %v1762_v19 = vpop.f32.mrf.mxu3 }
 0x274   : > { %1797 = vst.msk [vmem:[%s4432_s7 + $0xf0] sm:$0xff] %vm1327_vm4, %v1762_v19  ;;  %v1898_v25 = vmul.f32 %v1762_v19, %v1762_v19  ;;  %v1858_v4 = vsel %vm1327_vm4, %v1762_v19, 0.0  ;;  %v1958_v11 = vadd.f32 %v1957_v42, %v1956_v2 }
 0x275   : > { %v1859_v52 = vadd.f32 %v1858_v4, %v1857_v40 }
 0x276   : > { %v1959_v47 = vsel %vm1327_vm4, %v1898_v25, 0.0 }
 0x277   : > { %v1960_v20 = vadd.f32 %v1959_v47, %v1958_v11 }
 0x27b   : > { %v1764_v18 = vpop.f32.mrf.mxu3 }
 0x27c   : > { %1798 = vst.msk [vmem:[%s4432_s7 + $0xf8] sm:$0xff] %vm1327_vm4, %v1764_v18  ;;  %v1860_v46 = vsel %vm1327_vm4, %v1764_v18, 0.0  ;;  %v1899_v61 = vmul.f32 %v1764_v18, %v1764_v18 }
 0x27d   : > { %v1861_v57 = vadd.f32 %v1860_v46, %v1859_v52 }
 0x27e   : > { %v1961_v26 = vsel %vm1327_vm4, %v1899_v61, 0.0 }
 0x27f   : > { %v1862_v10 = vrot.slane %v1861_v57, 4  ;;  %v1962_v62 = vadd.f32 %v1961_v26, %v1960_v20 }
 0x281   : > { %v1863_v28 = vadd.f32 %v1862_v10, %v1861_v57  ;;  %v1963_v6 = vrot.slane %v1962_v62, 4 }
 0x283   : > { %v1864_v48 = vrot.slane %v1863_v28, 2  ;;  %v1964_v37 = vadd.f32 %v1963_v6, %v1962_v62 }
 0x285   : > { %v1865_v35 = vadd.f32 %v1864_v48, %v1863_v28  ;;  %v1965_v51 = vrot.slane %v1964_v37, 2 }
 0x287   : > { %v1866_v0 = vrot.slane %v1865_v35, 1  ;;  %v1966_v13 = vadd.f32 %v1965_v51, %v1964_v37 }
 0x289   : > { %v1967_v34 = vrot.slane %v1966_v13, 1  ;;  %v1867_v1 = vadd.f32 %v1866_v0, %v1865_v35 }
 0x28b   : > { %v1968_v23 = vadd.f32 %v1967_v34, %v1966_v13 }
 0x28d   : > { %v1969_v45 = vsel %vm247_vm0, %v1867_v1, %v1968_v23 }
 0x28e   : > { %1971 = vst.msk [vmem:[%s181_s11] sm:$0x3] %vm1970_vm13, %v1969_v45 }
 0x28f PF: > { %s14_s12 = sadd.s32 1, %s2745_s12  }
 0x290   : > { %p11_p4 = scmp.ge.s32.totalorder %s14_s12, 4  }
 0x292   :  { %13 = sbr.rel (!%p11_p4) target bundleno = 1 (0x1), region = 70 }

// kernel: res_block_forward.4
= control target key start
LH: loop header
LB: loop body
LE: loop exit
PB: predicated region body
PF: predicated region fallthrough
CT: control target
= control target key end

     0   :  { %s2946_s18 = smov 0   ;;  %s4829_s0 = inlined_call_operand.vmem [shape: f32[2,16,16,4], index: 0, kind: input, shape index: {}]   ;;  %s4830_s1 = inlined_call_operand.vmem [shape: f32[1,4], index: 1, kind: input, shape index: {}]   ;;  %s4831_s2 = inlined_call_operand.vmem [shape: f32[1,4], index: 2, kind: input, shape index: {}]   ;;  %s4832_s3 = inlined_call_operand.vmem [shape: bf16[36,4], index: 3, kind: input, shape index: {}]   ;;  %s4833_s4 = inlined_call_operand.vmem [shape: f32[2,16,16,4], index: 4, kind: output, shape index: {0}]   ;;  %s4834_s5 = inlined_call_operand.vmem [shape: f32[2,2,4], index: 5, kind: output, shape index: {1}]  }
   0x1 LB: > { %s2216_s19 = sadd.s32 4294967295, %s2905_s18   ;;  %p2220_p0 = scmp.ge.s32.totalorder %s2905_s18, 1  ;;  %s2905_s18 = sphi %s2946_s18, %s16_s18  }
   0x2   : > { %p190_p1 = scmp.lt.s32.totalorder %s2905_s18, 3 }
   0x4   : > { %p191_p2 = pnand %p2220_p0, %p190_p1 }
   0x6   : > { %194 = sbr.rel (%p191_p2) target bundleno = 676 (0x2a4), region = 36 }
   0xb   : > { %p222_p3 = scmp.lt.s32.totalorder %s2216_s19, 1  ;;  %v2959_v0 = vld [vmem:[%s4830_s1] ss:$0 sm:$0xff]  ;;  %vm405_vm0 = vcmask 1040384   ;;  %vm564_vm1 = vcmask 1046528   ;;  %s2908_s28 = smov 4  }
   0xc   : > { %v2972_v1 = vld [vmem:[%s4831_s2] ss:$0 sm:$0xff]  ;;  %vm735_vm2 = vcmask 1045504   ;;  %s2909_s29 = smov 8   ;;  %s2910_s30 = smov 12   ;;  %vm1517_vm3 = vcmask 64512  }
   0xd   : > { %s5102_s19 = smov (!%p222_p3, %s2216_s19), 1  ;;  %s2911_s6 = smov 16   ;;  %vm1485_vm4 = vcmask 31744   ;;  %vm1549_vm5 = vcmask 97280   ;;  %vm1582_vm6 = vcmask 130048   ;;  %vm1615_vm7 = vcmask 162816  }
   0xe   : > { %s2252_s22 = sshll.u32 %s5102_s19, 8  ;;  %s2912_s7 = smov 20   ;;  %vm1832_vm8 = vcmask 1041408   ;;  %vm1648_vm9 = vcmask 195584   ;;  %vm1681_vm10 = vcmask 228352   ;;  %vm1714_vm11 = vcmask 261120  }
   0xf   : > { %s2967_s25 = scalar_lea.vmem %s4829_s0, %s2252_s22  ;;  %s2913_s8 = smov 32   ;;  %vm1783_vm12 = vcmask 293888   ;;  %vm2128_vm13 = vcmask 25600  }
  0x10   : > { %v243_v2 = vld [vmem:[%s2967_s25 + $0x30] sm:$0xff]  ;;  %v244_v3 = vld [vmem:[%s2967_s25 + $0x38] sm:$0xff]  ;;  %v245_v4 = vld [vmem:[%s2967_s25 + $0x40] sm:$0xff]  ;;  %s2914_s9 = smov 28   ;;  %s2915_s10 = smov 24  }
  0x11   : > { %v246_v5 = vld [vmem:[%s2967_s25 + $0x48] sm:$0xff]  ;;  %v279_v6 = vmul.f32 %v2959_v0, %v243_v2  ;;  %v280_v7 = vmul.f32 %v2959_v0, %v244_v3  ;;  %v281_v8 = vmul.f32 %v2959_v0, %v245_v4  ;;  %v239_v9 = vld [vmem:[%s2967_s25 + $0x10] sm:$0xff]  ;;  %v240_v10 = vld [vmem:[%s2967_s25 + $0x18] sm:$0xff]  ;;  %v4835_v4 = vmov 0.0   ;;  %s4636_s21 = scalar_lea.vmem %s4833_s4, %s2252_s22  ;;  %s2225_s22 = sshll.u32 %s5102_s19, 1 }
  0x12   : > { %v282_v11 = vmul.f32 %v2959_v0, %v246_v5  ;;  %v241_v12 = vld [vmem:[%s2967_s25 + $0x20] sm:$0xff]  ;;  %v242_v13 = vld [vmem:[%s2967_s25 + $0x28] sm:$0xff]  ;;  %v275_v14 = vmul.f32 %v2959_v0, %v239_v9  ;;  %v276_v15 = vmul.f32 %v2959_v0, %v240_v10  ;;  %v247_v57 = vld [vmem:[%s2967_s25 + $0x50] sm:$0xff]  ;;  %v3044_v5 = vrot.slane %v4835_v4, 1 }
  0x13   : > { %v315_v16 = vadd.f32 %v2972_v1, %v279_v6  ;;  %v316_v17 = vadd.f32 %v2972_v1, %v280_v7  ;;  %v317_v18 = vadd.f32 %v2972_v1, %v281_v8  ;;  %v277_v19 = vmul.f32 %v2959_v0, %v241_v12  ;;  %v237_v51 = vld [vmem:[%s2967_s25] sm:$0xff]  ;;  %v238_v56 = vld [vmem:[%s2967_s25 + $0x8] sm:$0xff]  ;;  %v248_v58 = vld [vmem:[%s2967_s25 + $0x58] sm:$0xff] }
  0x14   : > { %v318_v20 = vadd.f32 %v2972_v1, %v282_v11  ;;  %v278_v21 = vmul.f32 %v2959_v0, %v242_v13  ;;  %v311_v22 = vadd.f32 %v2972_v1, %v275_v14  ;;  %v312_v23 = vadd.f32 %v2972_v1, %v276_v15  ;;  %4926 = vst [vmem:[#allocation4_spill] sm:$0xff] %v3044_v5 }
  0x15   : > { %v347_v24 = vmax.f32 %v315_v16, 0.0  ;;  %v348_v25 = vmax.f32 %v316_v17, 0.0  ;;  %v349_v26 = vmax.f32 %v317_v18, 0.0  ;;  %v313_v27 = vadd.f32 %v2972_v1, %v277_v19 }
  0x16   : > { %v350_v28 = vmax.f32 %v318_v20, 0.0  ;;  %v314_v29 = vadd.f32 %v2972_v1, %v278_v21  ;;  %v343_v30 = vmax.f32 %v311_v22, 0.0  ;;  %v344_v31 = vmax.f32 %v312_v23, 0.0 }
  0x17   : > { %v415_v32 = vrot.slane %v347_v24, 7  ;;  %v416_v33 = vrot.slane %v348_v25, 7  ;;  %v418_v34 = vrot.slane %v349_v26, 7  ;;  %v345_v35 = vmax.f32 %v313_v27, 0.0  ;;  %v251_v26 = vld [vmem:[%s2967_s25 + $0x70] sm:$0xff] }
  0x18   : > { %v419_v36 = vrot.slane %v350_v28, 7  ;;  %v346_v37 = vmax.f32 %v314_v29, 0.0  ;;  %v409_v38 = vrot.slane %v343_v30, 7  ;;  %v410_v39 = vrot.slane %v344_v31, 7 }
  0x19   : > { %v2999_v40 = vsel %vm405_vm0, %v415_v32, %v416_v33  ;;  %v3002_v41 = vsel %vm405_vm0, 0.0, %v418_v34  ;;  %v3005_v42 = vsel %vm405_vm0, %v416_v33, 0.0  ;;  %v412_v43 = vrot.slane %v345_v35, 7 }
  0x1a   : > { %v3008_v44 = vsel %vm405_vm0, %v418_v34, %v419_v36  ;;  %v583_v45 = vrot.slane %v2999_v40, 1  ;;  %v585_v46 = vrot.slane %v3005_v42, 1  ;;  %v587_v47 = vrot.slane %v3002_v41, 1 }
  0x1b   : > { %v588_v48 = vrot.slane %v3008_v44, 1  ;;  %v3015_v49 = vsel %vm405_vm0, %v409_v38, %v410_v39  ;;  %v413_v50 = vrot.slane %v346_v37, 7  ;;  %v3022_v53 = vsel %vm405_vm0, 0.0, %v412_v43 }
  0x1c   : > { %v3019_v52 = vsel %vm564_vm1, %v583_v45, %v585_v46  ;;  %v3025_v54 = vsel %vm405_vm0, %v410_v39, 0.0  ;;  %v573_v55 = vrot.slane %v3015_v49, 1  ;;  %v577_v62 = vrot.slane %v3022_v53, 1  ;;  %v252_v39 = vld [vmem:[%s2967_s25 + $0x78] sm:$0xff] }
  0x1d   : > { %4924 = vst [vmem:[#allocation2_spill] sm:$0xff] %v3019_v52  ;;  %v3032_v59 = vsel %vm564_vm1, %v587_v47, %v588_v48  ;;  %v3035_v60 = vsel %vm405_vm0, %v412_v43, %v413_v50  ;;  %v575_v61 = vrot.slane %v3025_v54, 1  ;;  %v273_v3 = vmul.f32 %v2959_v0, %v237_v51  ;;  %v253_v43 = vld [vmem:[%s2967_s25 + $0x80] sm:$0xff] }
  0x1e   : > { %4925 = vst [vmem:[#allocation3_spill] sm:$0xff] %v3032_v59  ;;  %v2302_v63 = vpack.i.bf16 %v3032_v59, %v3019_v52  ;;  %v578_v2 = vrot.slane %v3035_v60, 1  ;;  %v274_v7 = vmul.f32 %v2959_v0, %v238_v56  ;;  %v283_v8 = vmul.f32 %v2959_v0, %v247_v57 }
  0x1f   : > { %v3047_v6 = vsel %vm564_vm1, %v573_v55, %v575_v61  ;;  %v284_v9 = vmul.f32 %v2959_v0, %v248_v58  ;;  %v309_v11 = vadd.f32 %v2972_v1, %v273_v3  ;;  %v3058_v12 = vsel %vm405_vm0, %v419_v36, 0.0 }
  0x20   : > { %4927 = vst [vmem:[#allocation5_spill] sm:$0xff] %v3047_v6  ;;  %2303 = vrot.lane.b32.xlu2 %v2302_v63, %s2908_s28  ;;  %v3054_v10 = vsel %vm564_vm1, %v577_v62, %v578_v2  ;;  %v3061_v13 = vsel %vm405_vm0, 0.0, %v415_v32  ;;  %v310_v15 = vadd.f32 %v2972_v1, %v274_v7  ;;  %v319_v16 = vadd.f32 %v2972_v1, %v283_v8 }
  0x21   : > { %v2292_v14 = vpack.i.bf16 %v3054_v10, %v3047_v6  ;;  %v320_v17 = vadd.f32 %v2972_v1, %v284_v9  ;;  %v341_v18 = vmax.f32 %v309_v11, 0.0  ;;  %v590_v19 = vrot.slane %v3058_v12, 1  ;;  %v249_v11 = vld [vmem:[%s2967_s25 + $0x60] sm:$0xff] }
  0x22   : > { %v3070_v20 = vsel %vm405_vm0, %v413_v50, 0.0  ;;  %v582_v21 = vrot.slane %v3061_v13, 1  ;;  %v342_v22 = vmax.f32 %v310_v15, 0.0  ;;  %v351_v23 = vmax.f32 %v319_v16, 0.0  ;;  %v254_v50 = vld [vmem:[%s2967_s25 + $0x88] sm:$0xff] }
  0x23   : > { %2293 = vrot.lane.b32.xlu1 %v2292_v14, %s2908_s28  ;;  %v352_v24 = vmax.f32 %v320_v17, 0.0  ;;  %v580_v25 = vrot.slane %v3070_v20, 1  ;;  %v406_v27 = vrot.slane %v341_v18, 7  ;;  %v3077_v28 = vsel %vm564_vm1, %v588_v48, %v590_v19  ;;  %v250_v14 = vld [vmem:[%s2967_s25 + $0x68] sm:$0xff] }
  0x24   : > { %4928 = vst [vmem:[#allocation6_spill] sm:$0xff] %v3077_v28  ;;  %v3080_v29 = vsel %vm564_vm1, %v582_v21, %v583_v45  ;;  %v3083_v30 = vsel %vm405_vm0, 0.0, %v409_v38  ;;  %v407_v31 = vrot.slane %v342_v22, 7  ;;  %v421_v32 = vrot.slane %v351_v23, 7  ;;  %v257_v23 = vld [vmem:[%s2967_s25 + $0xa0] sm:$0xff] }
  0x25   : > { %4929 = vst [vmem:[#allocation7_spill] sm:$0xff] %v3080_v29  ;;  %v422_v33 = vrot.slane %v352_v24, 7  ;;  %v3086_v34 = vsel %vm564_vm1, %v578_v2, %v580_v25  ;;  %v3089_v35 = vsel %vm405_vm0, 0.0, %v406_v27  ;;  %v572_v37 = vrot.slane %v3083_v30, 1 }
  0x26   : > { %4930 = vst [vmem:[#allocation8_spill] sm:$0xff] %v3086_v34  ;;  %v2297_v36 = vpack.i.bf16 %v3080_v29, %v3086_v34  ;;  %v287_v45 = vmul.f32 %v2959_v0, %v251_v26  ;;  %v3098_v38 = vsel %vm405_vm0, %v406_v27, %v407_v31  ;;  %v3101_v46 = vsel %vm405_vm0, %v407_v31, 0.0 }
  0x27   : > { %v567_v47 = vrot.slane %v3089_v35, 1  ;;  %v3105_v48 = vsel %vm405_vm0, %v421_v32, %v422_v33  ;;  %v568_v51 = vrot.slane %v3098_v38, 1  ;;  %v570_v56 = vrot.slane %v3101_v46, 1 }
  0x28   : > { %v3111_v57 = vsel %vm405_vm0, 0.0, %v421_v32  ;;  %v593_v58 = vrot.slane %v3105_v48, 1  ;;  %v3116_v62 = vsel %vm564_vm1, %v572_v37, %v573_v55  ;;  %v288_v63 = vmul.f32 %v2959_v0, %v252_v39  ;;  %v258_v39 = vld [vmem:[%s2967_s25 + $0xa8] sm:$0xff] }
  0x29   : > { %v592_v61 = vrot.slane %v3111_v57, 1  ;;  %4931 = vst [vmem:[#allocation9_spill] sm:$0xff] %v3116_v62  ;;  %v289_v2 = vmul.f32 %v2959_v0, %v253_v43  ;;  %v3121_v3 = vsel %vm564_vm1, %v567_v47, %v568_v51  ;;  %v3124_v7 = vsel %vm564_vm1, %v568_v51, %v570_v56 }
  0x2a   : > { %4932 = vst [vmem:[#allocation10_spill] sm:$0xff] %v3121_v3  ;;  %v290_v8 = vmul.f32 %v2959_v0, %v254_v50  ;;  %v323_v9 = vadd.f32 %v2972_v1, %v287_v45  ;;  %v2282_v15 = vpack.i.bf16 %v3121_v3, %v3044_v5  ;;  %v2287_v17 = vpack.i.bf16 %v3116_v62, %v3124_v7 }
  0x2b   : > { %4933 = vst [vmem:[#allocation11_spill] sm:$0xff] %v3124_v7  ;;  %v3135_v16 = vsel %vm564_vm1, %v592_v61, %v593_v58  ;;  %2298 = vrot.lane.b32.xlu1 %v2297_v36, %s2908_s28  ;;  %v324_v19 = vadd.f32 %v2972_v1, %v288_v63  ;;  %v325_v21 = vadd.f32 %v2972_v1, %v289_v2  ;;  %v3150_v27 = vsel %vm405_vm0, %v422_v33, 0.0 }
  0x2c   : > { %4934 = vst [vmem:[#allocation12_spill] sm:$0xff] %v3135_v16  ;;  %v2307_v18 = vpack.i.bf16 %v3135_v16, %v3077_v28  ;;  %v326_v22 = vadd.f32 %v2972_v1, %v290_v8  ;;  %2283 = vrot.lane.b32.xlu0 %v2282_v15, %s2908_s28  ;;  %v355_v24 = vmax.f32 %v323_v9, 0.0  ;;  %v285_v25 = vmul.f32 %v2959_v0, %v249_v11  ;;  %v259_v9 = vld [vmem:[%s2967_s25 + $0xb0] sm:$0xff] }
  0x2d   : > { %v286_v26 = vmul.f32 %v2959_v0, %v250_v14  ;;  %v356_v31 = vmax.f32 %v324_v19, 0.0  ;;  %v357_v32 = vmax.f32 %v325_v21, 0.0  ;;  %v595_v37 = vrot.slane %v3150_v27, 1  ;;  %v260_v19 = vld [vmem:[%s2967_s25 + $0xb8] sm:$0xff] }
  0x2e   : > { %2308 = vrot.lane.b32.xlu2 %v2307_v18, %s2908_s28  ;;  %v358_v36 = vmax.f32 %v326_v22, 0.0  ;;  %v427_v43 = vrot.slane %v355_v24, 7  ;;  %v321_v45 = vadd.f32 %v2972_v1, %v285_v25  ;;  %v293_v50 = vmul.f32 %v2959_v0, %v257_v23 }
  0x2f   : > { %v322_v47 = vadd.f32 %v2972_v1, %v286_v26  ;;  %v428_v51 = vrot.slane %v356_v31, 7  ;;  %v430_v33 = vrot.slane %v357_v32, 7  ;;  %v3159_v61 = vsel %vm564_vm1, %v593_v58, %v595_v37 }
  0x30   : > { %v431_v56 = vrot.slane %v358_v36, 7  ;;  %4935 = vst [vmem:[#allocation13_spill] sm:$0xff] %v3159_v61  ;;  %v353_v63 = vmax.f32 %v321_v45, 0.0  ;;  %v3162_v8 = vsel %vm405_vm0, 0.0, %v427_v43  ;;  %v294_v11 = vmul.f32 %v2959_v0, %v258_v39 }
  0x31   : > { %v354_v2 = vmax.f32 %v322_v47, 0.0  ;;  %v3167_v14 = vsel %vm405_vm0, %v427_v43, %v428_v51  ;;  %v3173_v18 = vsel %vm405_vm0, 0.0, %v430_v33  ;;  %v3176_v58 = vsel %vm405_vm0, %v428_v51, 0.0 }
  0x32   : > { %v3170_v15 = vsel %vm405_vm0, %v430_v33, %v431_v56  ;;  %v603_v21 = vrot.slane %v3167_v14, 1  ;;  %v605_v22 = vrot.slane %v3176_v58, 1  ;;  %v607_v23 = vrot.slane %v3173_v18, 1  ;;  %v255_v33 = vld [vmem:[%s2967_s25 + $0x90] sm:$0xff] }
  0x33   : > { %v4837_v24 = vrot.slane %v3170_v15, 1  ;;  %v424_v25 = vrot.slane %v353_v63, 7  ;;  %v425_v26 = vrot.slane %v354_v2, 7  ;;  %v602_v31 = vrot.slane %v3162_v8, 1  ;;  %v256_v63 = vld [vmem:[%s2967_s25 + $0x98] sm:$0xff] }
  0x34   : > { %v295_v32 = vmul.f32 %v2959_v0, %v259_v9  ;;  %2288 = vrot.lane.b32.xlu0 %v2287_v17, %s2908_s28  ;;  %v3187_v36 = vsel %vm564_vm1, %v603_v21, %v605_v22  ;;  %v296_v39 = vmul.f32 %v2959_v0, %v260_v19  ;;  %v329_v43 = vadd.f32 %v2972_v1, %v293_v50 }
  0x35   : > { %4936 = vst [vmem:[#allocation14_spill] sm:$0xff] %v3187_v36  ;;  %v3192_v37 = vsel %vm564_vm1, %v607_v23, %v4837_v24  ;;  %v3199_v47 = vsel %vm405_vm0, %v424_v25, %v425_v26  ;;  %v3202_v17 = vsel %vm405_vm0, %v425_v26, 0.0  ;;  %v3205_v51 = vsel %vm564_vm1, %v602_v31, %v603_v21 }
  0x36   : > { %4937 = vst [vmem:[#allocation15_spill] sm:$0xff] %v3192_v37  ;;  %v2322_v45 = vpack.i.bf16 %v3192_v37, %v3187_v36  ;;  %v598_v2 = vrot.slane %v3199_v47, 1  ;;  %v600_v9 = vrot.slane %v3202_v17, 1  ;;  %v3212_v50 = vsel %vm405_vm0, 0.0, %v424_v25  ;;  %v266_v36 = vld [vmem:[%s2967_s25 + $0xe8] sm:$0xff] }
  0x37   : > { %4938 = vst [vmem:[#allocation16_spill] sm:$0xff] %v3205_v51  ;;  %v330_v19 = vadd.f32 %v2972_v1, %v294_v11  ;;  %v597_v22 = vrot.slane %v3212_v50, 1  ;;  %v331_v23 = vadd.f32 %v2972_v1, %v295_v32  ;;  %v332_v21 = vadd.f32 %v2972_v1, %v296_v39 }
  0x38   : > { %2323 = vrot.lane.b32.xlu2 %v2322_v45, %s2908_s28  ;;  %v361_v26 = vmax.f32 %v329_v43, 0.0  ;;  %v3220_v31 = vsel %vm564_vm1, %v598_v2, %v600_v9  ;;  %v291_v4 = vmul.f32 %v2959_v0, %v255_v33  ;;  %v292_v25 = vmul.f32 %v2959_v0, %v256_v63 }
  0x39   : > { %4939 = vst [vmem:[#allocation17_spill] sm:$0xff] %v3220_v31  ;;  %v362_v55 = vmax.f32 %v330_v19, 0.0  ;;  %v2317_v11 = vpack.i.bf16 %v3205_v51, %v3220_v31  ;;  %v3227_v45 = vsel %vm564_vm1, %v597_v22, %v598_v2  ;;  %v363_v24 = vmax.f32 %v331_v23, 0.0  ;;  %v263_v23 = vld [vmem:[%s2967_s25 + $0xd0] sm:$0xff] }
  0x3a   : > { %4940 = vst [vmem:[#allocation18_spill] sm:$0xff] %v3227_v45  ;;  %v364_v32 = vmax.f32 %v332_v21, 0.0  ;;  %v2312_v39 = vpack.i.bf16 %v3227_v45, %v3159_v61  ;;  %v436_v43 = vrot.slane %v361_v26, 7  ;;  %v327_v19 = vadd.f32 %v2972_v1, %v291_v4  ;;  %v265_v45 = vld [vmem:[%s2967_s25 + $0xe0] sm:$0xff] }
  0x3b   : > { %v437_v9 = vrot.slane %v362_v55, 7  ;;  %2318 = vrot.lane.b32.xlu1 %v2317_v11, %s2908_s28  ;;  %v439_v33 = vrot.slane %v363_v24, 7  ;;  %v328_v5 = vadd.f32 %v2972_v1, %v292_v25  ;;  %v3237_v2 = vsel %vm405_vm0, %v431_v56, 0.0  ;;  %v264_v11 = vld [vmem:[%s2967_s25 + $0xd8] sm:$0xff] }
  0x3c   : > { %v3233_v63 = vrot.slane %v364_v32, 7  ;;  %2313 = vrot.lane.b32.xlu0 %v2312_v39, %s2908_s28  ;;  %v359_v4 = vmax.f32 %v327_v19, 0.0  ;;  %v3247_v24 = vsel %vm405_vm0, 0.0, %v436_v43  ;;  %v299_v51 = vmul.f32 %v2959_v0, %v263_v23 }
  0x3d   : > { %v3241_v22 = vsel %vm405_vm0, %v436_v43, %v437_v9  ;;  %v3244_v55 = vsel %vm405_vm0, %v437_v9, 0.0  ;;  %v3255_v56 = vsel %vm405_vm0, 0.0, %v439_v33  ;;  %v360_v9 = vmax.f32 %v328_v5, 0.0 }
  0x3e   : > { %4941 = vst [vmem:[#allocation19_spill] sm:$0xff] %v3241_v22  ;;  %v3252_v21 = vsel %vm405_vm0, %v439_v33, %v3233_v63  ;;  %v618_v26 = vrot.slane %v3241_v22, 1  ;;  %v620_v25 = vrot.slane %v3244_v55, 1  ;;  %v622_v32 = vrot.slane %v3255_v56, 1 }
  0x3f   : > { %v4847_v39 = vrot.slane %v3252_v21, 1  ;;  %v433_v43 = vrot.slane %v359_v4, 7  ;;  %v617_v31 = vrot.slane %v3247_v24, 1  ;;  %v610_v33 = vrot.slane %v3237_v2, 1 }
  0x40   : > { %v3263_v19 = vsel %vm564_vm1, %v618_v26, %v620_v25  ;;  %v434_v5 = vrot.slane %v360_v9, 7  ;;  %v300_v25 = vmul.f32 %v2959_v0, %v264_v11  ;;  %v4945_v28 = vrot.slane %v3170_v15, 1  ;;  %v262_v9 = vld [vmem:[%s2967_s25 + $0xc8] sm:$0xff] }
  0x41   : > { %4942 = vst [vmem:[#allocation20_spill] sm:$0xff] %v3263_v19  ;;  %v3273_v37 = vsel %vm564_vm1, %v622_v32, %v4847_v39  ;;  %v3276_v4 = vsel %vm405_vm0, 0.0, %v433_v43  ;;  %v3282_v29 = vsel %vm564_vm1, %v617_v31, %v618_v26  ;;  %v261_v39 = vld [vmem:[%s2967_s25 + $0xc0] sm:$0xff]  ;;  %v302_v31 = vmul.f32 %v2959_v0, %v266_v36 }
  0x42   : > { %4943 = vst [vmem:[#allocation21_spill] sm:$0xff] %v3273_v37  ;;  %v2337_v52 = vpack.i.bf16 %v3273_v37, %v3263_v19  ;;  %v3287_v23 = vsel %vm564_vm1, %v4945_v28, %v610_v33  ;;  %v612_v32 = vrot.slane %v3276_v4, 1  ;;  %v3293_v59 = vsel %vm405_vm0, %v433_v43, %v434_v5 }
  0x43   : > { %4944 = vst [vmem:[#allocation22_spill] sm:$0xff] %v3282_v29  ;;  %v3296_v11 = vsel %vm405_vm0, %v434_v5, 0.0  ;;  %v301_v19 = vmul.f32 %v2959_v0, %v265_v45  ;;  %v613_v26 = vrot.slane %v3293_v59, 1  ;;  %v335_v33 = vadd.f32 %v2972_v1, %v299_v51 }
  0x44   : > { %4946 = vst [vmem:[#allocation23_spill] sm:$0xff] %v3287_v23  ;;  %2338 = vrot.lane.b32.xlu2 %v2337_v52, %s2908_s28  ;;  %v615_v28 = vrot.slane %v3296_v11, 1  ;;  %v336_v37 = vadd.f32 %v2972_v1, %v300_v25  ;;  %v338_v61 = vadd.f32 %v2972_v1, %v302_v31  ;;  %v297_v5 = vmul.f32 %v2959_v0, %v261_v39 }
  0x45   : > { %v337_v43 = vadd.f32 %v2972_v1, %v301_v19  ;;  %v298_v45 = vmul.f32 %v2959_v0, %v262_v9  ;;  %v3313_v52 = vsel %vm564_vm1, %v612_v32, %v613_v26  ;;  %v367_v16 = vmax.f32 %v335_v33, 0.0 }
  0x46   : > { %v3310_v36 = vsel %vm564_vm1, %v613_v26, %v615_v28  ;;  %4948 = vst [vmem:[#allocation25_spill] sm:$0xff] %v3313_v52  ;;  %v368_v3 = vmax.f32 %v336_v37, 0.0  ;;  %v2327_v19 = vpack.i.bf16 %v3313_v52, %v3287_v23  ;;  %v370_v31 = vmax.f32 %v338_v61, 0.0 }
  0x47   : > { %4947 = vst [vmem:[#allocation24_spill] sm:$0xff] %v3310_v36  ;;  %v2332_v51 = vpack.i.bf16 %v3282_v29, %v3310_v36  ;;  %v369_v25 = vmax.f32 %v337_v43, 0.0  ;;  %v445_v7 = vrot.slane %v367_v16, 7  ;;  %v333_v9 = vadd.f32 %v2972_v1, %v297_v5 }
  0x48   : > { %v446_v39 = vrot.slane %v368_v3, 7  ;;  %v334_v28 = vadd.f32 %v2972_v1, %v298_v45  ;;  %2328 = vrot.lane.b32.xlu0 %v2327_v19, %s2908_s28  ;;  %v449_v37 = vrot.slane %v370_v31, 7  ;;  %v3325_v26 = vsel %vm405_vm0, %v3233_v63, 0.0 }
  0x49   : > { %2333 = vrot.lane.b32.xlu1 %v2332_v51, %s2908_s28  ;;  %v448_v32 = vrot.slane %v369_v25, 7  ;;  %v365_v16 = vmax.f32 %v333_v9, 0.0  ;;  %v3347_v9 = vsel %vm405_vm0, 0.0, %v445_v7  ;;  %v4955_v6 = vrot.slane %v3252_v21, 1 }
  0x4a   : > { %v3328_v33 = vsel %vm405_vm0, %v445_v7, %v446_v39  ;;  %v3331_v3 = vsel %vm405_vm0, %v446_v39, 0.0  ;;  %v366_v61 = vmax.f32 %v334_v28, 0.0  ;;  %v625_v28 = vrot.slane %v3325_v26, 1 }
  0x4b   : > { %4949 = vst [vmem:[#allocation26_spill] sm:$0xff] %v3328_v33  ;;  %v3334_v43 = vsel %vm405_vm0, %v448_v32, %v449_v37  ;;  %v3337_v5 = vsel %vm405_vm0, 0.0, %v448_v32  ;;  %v633_v45 = vrot.slane %v3328_v33, 1  ;;  %v635_v63 = vrot.slane %v3331_v3, 1 }
  0x4c   : > { %4950 = vst [vmem:[#allocation27_spill] sm:$0xff] %v3334_v43  ;;  %v637_v51 = vrot.slane %v3337_v5, 1  ;;  %v638_v19 = vrot.slane %v3334_v43, 1  ;;  %v442_v25 = vrot.slane %v365_v16, 7  ;;  %v443_v31 = vrot.slane %v366_v61, 7 }
  0x4d   : > { %4951 = vst [vmem:[#allocation28_spill] sm:$0xff] %v3337_v5  ;;  %v3344_v39 = vsel %vm564_vm1, %v633_v45, %v635_v63  ;;  %v739_v32 = vrot.slane %v3098_v38, 2  ;;  %v632_v16 = vrot.slane %v3347_v9, 1  ;;  %v741_v34 = vrot.slane %v3101_v46, 2 }
  0x4e   : > { %4952 = vst [vmem:[#allocation29_spill] sm:$0xff] %v3344_v39  ;;  %v3352_v36 = vsel %vm564_vm1, %v637_v51, %v638_v19  ;;  %v3355_v52 = vsel %vm405_vm0, %v442_v25, %v443_v31  ;;  %v3358_v29 = vsel %vm405_vm0, %v443_v31, 0.0  ;;  %v3366_v23 = vsel %vm405_vm0, 0.0, %v442_v25 }
  0x4f   : > { %4953 = vst [vmem:[#allocation30_spill] sm:$0xff] %v3352_v36  ;;  %v2352_v61 = vpack.i.bf16 %v3352_v36, %v3344_v39  ;;  %v628_v7 = vrot.slane %v3355_v52, 1  ;;  %v630_v63 = vrot.slane %v3358_v29, 1  ;;  %v3369_v51 = vsel %vm564_vm1, %v632_v16, %v633_v45 }
  0x50   : > { %4954 = vst [vmem:[#allocation31_spill] sm:$0xff] %v3369_v51  ;;  %v3374_v31 = vsel %vm564_vm1, %v4955_v6, %v625_v28  ;;  %v627_v62 = vrot.slane %v3366_v23, 1  ;;  %v743_v25 = vrot.slane %v3083_v30, 2  ;;  %v744_v36 = vrot.slane %v3015_v49, 2 }
  0x51   : > { %2353 = vrot.lane.b32.xlu2 %v2352_v61, %s2908_s28  ;;  %v3380_v39 = vsel %vm564_vm1, %v628_v7, %v630_v63  ;;  %v3390_v6 = vsel %vm735_vm2, %v739_v32, %v741_v34  ;;  %v738_v46 = vrot.slane %v3089_v35, 2  ;;  %v3399_v63 = vsel %vm405_vm0, %v449_v37, 0.0 }
  0x52   : > { %4956 = vst [vmem:[#allocation32_spill] sm:$0xff] %v3380_v39  ;;  %v2347_v45 = vpack.i.bf16 %v3369_v51, %v3380_v39  ;;  %v3387_v16 = vsel %vm564_vm1, %v627_v62, %v628_v7  ;;  %v3396_v61 = vsel %vm735_vm2, %v743_v25, %v744_v36  ;;  %v4960_v39 = vmov 0.0  }
  0x53   : > { %4957 = vst [vmem:[#allocation33_spill] sm:$0xff] %v3387_v16  ;;  %v2342_v28 = vpack.i.bf16 %v3387_v16, %v3374_v31  ;;  %v3403_v51 = vrot.slane %v4960_v39, 2  ;;  %v756_v62 = vrot.slane %v3005_v42, 2  ;;  %v2362_v34 = vpack.i.bf16 %v3396_v61, %v3390_v6 }
  0x54   : > { %4958 = vst [vmem:[#allocation34_spill] sm:$0xff] %v3390_v6  ;;  %2348 = vrot.lane.b32.xlu1 %v2347_v45, %s2908_s28  ;;  %v3410_v7 = vsel %vm735_vm2, %v738_v46, %v739_v32  ;;  %v640_v25 = vrot.slane %v3399_v63, 1  ;;  %v754_v37 = vrot.slane %v2999_v40, 2  ;;  %v758_v16 = vrot.slane %v3002_v41, 2 }
  0x55   : > { %4959 = vst [vmem:[#allocation35_spill] sm:$0xff] %v3396_v61  ;;  %2343 = vrot.lane.b32.xlu0 %v2342_v28, %s2908_s28  ;;  %v759_v45 = vrot.slane %v3008_v44, 2  ;;  %v746_v39 = vrot.slane %v3025_v54, 2  ;;  %v2357_v42 = vpack.i.bf16 %v3410_v7, %v3403_v51  ;;  %v749_v28 = vrot.slane %v3035_v60, 2 }
  0x56   : > { %4961 = vst [vmem:[#allocation36_spill] sm:$0xff] %v3403_v51  ;;  %v751_v32 = vrot.slane %v3070_v20, 2  ;;  %v753_v46 = vrot.slane %v3061_v13, 2  ;;  %v3424_v6 = vsel %vm564_vm1, %v638_v19, %v640_v25  ;;  %v3427_v61 = vsel %vm735_vm2, %v754_v37, %v756_v62 }
  0x57   : > { %4962 = vst [vmem:[#allocation37_spill] sm:$0xff] %v3427_v61  ;;  %v3430_v54 = vsel %vm735_vm2, %v758_v16, %v759_v45  ;;  %v748_v51 = vrot.slane %v3022_v53, 2  ;;  %v769_v16 = vrot.slane %v3199_v47, 2 }
  0x58   : > { %4963 = vst [vmem:[#allocation38_spill] sm:$0xff] %v3430_v54  ;;  %v2377_v20 = vpack.i.bf16 %v3430_v54, %v3427_v61  ;;  %v3442_v19 = vsel %vm735_vm2, %v749_v28, %v751_v32  ;;  %v3445_v62 = vsel %vm735_vm2, %v753_v46, %v754_v37  ;;  %v764_v32 = vrot.slane %v3105_v48, 2 }
  0x59   : > { %2363 = vrot.lane.b32.xlu2 %v2362_v34, %s2909_s29  ;;  %v3435_v34 = vsel %vm735_vm2, %v744_v36, %v746_v39  ;;  %4964 = vst [vmem:[#allocation39_spill] sm:$0xff] %v3442_v19  ;;  %v3449_v25 = vsel %vm735_vm2, %v748_v51, %v749_v28  ;;  %v771_v36 = vrot.slane %v3202_v17, 2  ;;  %v773_v39 = vrot.slane %v3162_v8, 2 }
  0x5a   : > { %4965 = vst [vmem:[#allocation40_spill] sm:$0xff] %v3445_v62  ;;  %v2372_v61 = vpack.i.bf16 %v3445_v62, %v3442_v19  ;;  %v2367_v37 = vpack.i.bf16 %v3449_v25, %v3435_v34  ;;  %v766_v46 = vrot.slane %v3150_v27, 2  ;;  %v768_v51 = vrot.slane %v3212_v50, 2 }
  0x5b   : > { %4966 = vst [vmem:[#allocation41_spill] sm:$0xff] %v3449_v25  ;;  %v3463_v17 = vsel %vm735_vm2, %v769_v16, %v771_v36  ;;  %v761_v54 = vrot.slane %v3058_v12, 2  ;;  %v763_v19 = vrot.slane %v3111_v57, 2  ;;  %v788_v62 = vrot.slane %v3247_v24, 2 }
  0x5c   : > { %2358 = vrot.lane.b32.xlu1 %v2357_v42, %s2909_s29  ;;  %v774_v42 = vrot.slane %v3167_v14, 2  ;;  %4967 = vst [vmem:[#allocation42_spill] sm:$0xff] %v3463_v17  ;;  %v3476_v25 = vsel %vm735_vm2, %v764_v32, %v766_v46  ;;  %v3479_v36 = vsel %vm735_vm2, %v768_v51, %v769_v16  ;;  %v776_v46 = vrot.slane %v3176_v58, 2 }
  0x5d   : > { %702 = vrot.lane.b32.xlu0 %v3424_v6, %s2908_s28  ;;  %4968 = vst [vmem:[#allocation43_spill] sm:$0xff] %v3476_v25  ;;  %v3483_v12 = vsel %vm735_vm2, %v759_v45, %v761_v54  ;;  %v781_v45 = vrot.slane %v3237_v2, 2  ;;  %v783_v54 = vrot.slane %v3276_v4, 2  ;;  %v778_v51 = vrot.slane %v3173_v18, 2 }
  0x5e   : > { %v3466_v28 = vsel %vm735_vm2, %v773_v39, %v774_v42  ;;  %v786_v39 = vrot.slane %v3296_v11, 2  ;;  %v779_v11 = vrot.slane %v3170_v15, 2  ;;  %v3519_v58 = vsel %vm735_vm2, %v774_v42, %v776_v46 }
  0x5f   : > { %v2392_v27 = vpack.i.bf16 %v3466_v28, %v3463_v17  ;;  %v2387_v17 = vpack.i.bf16 %v3479_v36, %v3476_v25  ;;  %v796_v42 = vrot.slane %v3325_v26, 2  ;;  %v791_v46 = vrot.slane %v3244_v55, 2 }
  0x60   : > { %v3512_v25 = vsel %vm735_vm2, %v779_v11, %v781_v45  ;;  %v798_v45 = vrot.slane %v3366_v23, 2 }
  0x61   : > { %2378 = vrot.lane.b32.xlu2 %v2377_v20, %s2909_s29  ;;  %v784_v20 = vrot.slane %v3293_v59, 2  ;;  %4971 = vst [vmem:[#allocation46_spill] sm:$0xff] %v3512_v25 }
  0x64   : > { %2373 = vrot.lane.b32.xlu1 %v2372_v61, %s2909_s29  ;;  %v3486_v61 = vsel %vm735_vm2, %v763_v19, %v764_v32  ;;  %v3499_v19 = vsel %vm735_vm2, %v784_v20, %v786_v39  ;;  %v3515_v39 = vsel %vm735_vm2, %v783_v54, %v784_v20 }
  0x65   : > { %2368 = vrot.lane.b32.xlu0 %v2367_v37, %s2909_s29  ;;  %4969 = vst [vmem:[#allocation44_spill] sm:$0xff] %v3486_v61  ;;  %v789_v37 = vrot.slane %v3241_v22, 2  ;;  %v2382_v16 = vpack.i.bf16 %v3486_v61, %v3483_v12  ;;  %v803_v61 = vrot.slane %v3347_v9, 2 }
  0x66   : > { %4970 = vst [vmem:[#allocation45_spill] sm:$0xff] %v3499_v19 }
  0x67   : > { %v3502_v32 = vsel %vm735_vm2, %v788_v62, %v789_v37  ;;  %v801_v62 = vrot.slane %v3358_v29, 2  ;;  %v794_v29 = vrot.slane %v3252_v21, 2 }
  0x68   : > { %v2407_v2 = vpack.i.bf16 %v3502_v32, %v3499_v19  ;;  %v2402_v19 = vpack.i.bf16 %v3515_v39, %v3512_v25  ;;  %v5008_v25 = vld [vmem:[#allocation13_spill] sm:$0xff] }
  0x69   : > { %2393 = vrot.lane.b32.xlu2 %v2392_v27, %s2909_s29  ;;  %v799_v27 = vrot.slane %v3355_v52, 2  ;;  %v3547_v26 = vsel %vm735_vm2, %v794_v29, %v796_v42  ;;  %v809_v42 = vrot.slane %v3334_v43, 2 }
  0x6a   : > { %4975 = vst [vmem:[#allocation50_spill] sm:$0xff] %v3547_v26 }
  0x6c   : > { %2388 = vrot.lane.b32.xlu1 %v2387_v17, %s2909_s29  ;;  %v3522_v17 = vsel %vm735_vm2, %v778_v51, %v779_v11  ;;  %v3535_v11 = vsel %vm735_vm2, %v799_v27, %v801_v62  ;;  %v793_v51 = vrot.slane %v3255_v56, 2  ;;  %v3550_v62 = vsel %vm735_vm2, %v798_v45, %v799_v27 }
  0x6d   : > { %2383 = vrot.lane.b32.xlu0 %v2382_v16, %s2909_s29  ;;  %4972 = vst [vmem:[#allocation47_spill] sm:$0xff] %v3522_v17  ;;  %v804_v16 = vrot.slane %v3328_v33, 2  ;;  %v2397_v20 = vpack.i.bf16 %v3522_v17, %v3519_v58  ;;  %v808_v27 = vrot.slane %v3337_v5, 2 }
  0x6e   : > { %4973 = vst [vmem:[#allocation48_spill] sm:$0xff] %v3535_v11  ;;  %v3556_v55 = vsel %vm735_vm2, %v793_v51, %v794_v29  ;;  %v811_v29 = vrot.slane %v3399_v63, 2  ;;  %v3590_v63 = vpack.i.bf16 %v2999_v40, %v3061_v13 }
  0x6f   : > { %v3538_v54 = vsel %vm735_vm2, %v803_v61, %v804_v16  ;;  %4976 = vst [vmem:[#allocation51_spill] sm:$0xff] %v3550_v62  ;;  %v3553_v61 = vsel %vm735_vm2, %v789_v37, %v791_v46  ;;  %v2432_v37 = vpack.i.bf16 %v3098_v38, %v3089_v35  ;;  %v3575_v46 = vsel %vm735_vm2, %v808_v27, %v809_v42  ;;  %v268_v27 = vld [vmem:[%s2967_s25 + $0xf8] sm:$0xff] }
  0x70   : > { %4974 = vst [vmem:[#allocation49_spill] sm:$0xff] %v3538_v54 }
  0x71   : > { %2408 = vrot.lane.b32.xlu2 %v2407_v2, %s2909_s29  ;;  %v2422_v2 = vpack.i.bf16 %v3538_v54, %v3535_v11  ;;  %4977 = vst [vmem:[#allocation52_spill] sm:$0xff] %v3556_v55  ;;  %v806_v11 = vrot.slane %v3331_v3, 2  ;;  %v3579_v3 = vsel %vm735_vm2, %v809_v42, %v811_v29  ;;  %v267_v42 = vld [vmem:[%s2967_s25 + $0xf0] sm:$0xff]  ;;  %v3622_v29 = vpack.i.bf16 %v3008_v44, %v3002_v41  ;;  %s235_s25 = scalar_lea.vmem %s4834_s5, %s2225_s22 }
  0x72   : > { %4979 = vst [vmem:[#allocation54_spill] sm:$0xff] %v3575_v46 }
  0x73   : > { %v3572_v45 = vsel %vm735_vm2, %v804_v16, %v806_v11  ;;  %4980 = vst [vmem:[#allocation55_spill] sm:$0xff] %v3579_v3  ;;  %v3594_v16 = vpack.i.bf16 %v3035_v60, %v3022_v53  ;;  %v3600_v11 = vpack.i.bf16 %v3015_v49, %v3083_v30 }
  0x74   : > { %2403 = vrot.lane.b32.xlu1 %v2402_v19, %s2909_s29  ;;  %v2417_v19 = vpack.i.bf16 %v3550_v62, %v3547_v26  ;;  %4978 = vst [vmem:[#allocation53_spill] sm:$0xff] %v3572_v45  ;;  %v2427_v51 = vpack.i.bf16 %v3575_v46, %v3572_v45  ;;  %v3632_v46 = vpack.i.bf16 %v3293_v59, %v3276_v4  ;;  %v5002_v62 = vld [vmem:[#allocation5_spill] sm:$0xff] }
  0x75   : > { %2398 = vrot.lane.b32.xlu0 %v2397_v20, %s2909_s29  ;;  %v2412_v20 = vpack.i.bf16 %v3556_v55, %v3553_v61  ;;  %4981 = vst [vmem:[#allocation56_spill] sm:$0xff] %v3590_v63 }
  0x76   : > { %4982 = vst [vmem:[#allocation57_spill] sm:$0xff] %v3594_v16 }
  0x77   : > { %4983 = vst [vmem:[#allocation58_spill] sm:$0xff] %v3600_v11 }
  0x78   : > { %4986 = vst [vmem:[#allocation61_spill] sm:$0xff] %v3622_v29 }
  0x79   : > { %2423 = vrot.lane.b32.xlu2 %v2422_v2, %s2909_s29  ;;  %4987 = vst [vmem:[#allocation62_spill] sm:$0xff] %v3632_v46 }
  0x7a   : > { %v3583_v2 = vpop.permute.xlu2 %2303 }
  0x7c   : > { %2418 = vrot.lane.b32.xlu1 %v2417_v19, %s2909_s29  ;;  %v3608_v19 = vpack.i.bf16 %v3199_v47, %v3212_v50 }
  0x7d   : > { %2413 = vrot.lane.b32.xlu0 %v2412_v20, %s2909_s29 }
  0x7e   : > { %4984 = vst [vmem:[#allocation59_spill] sm:$0xff] %v3608_v19 }
  0x81   : > { %2433 = vrot.lane.b32.xlu2 %v2432_v37, %s2910_s30  ;;  %v3616_v37 = vpack.i.bf16 %v3105_v48, %v3111_v57 }
  0x83   : > { %4985 = vst [vmem:[#allocation60_spill] sm:$0xff] %v3616_v37 }
  0x84   : > { %873 = vrot.lane.b32.xlu1 %v3579_v3, %s2909_s29  ;;  %v304_v3 = vmul.f32 %v2959_v0, %v268_v27 }
  0x85   : > { %2428 = vrot.lane.b32.xlu0 %v2427_v51, %s2909_s29  ;;  %v303_v51 = vmul.f32 %v2959_v0, %v267_v42  ;;  %v3640_v42 = vpack.i.bf16 %v3170_v15, %v3173_v18  ;;  %v3646_v0 = vpack.i.bf16 %v3167_v14, %v3162_v8 }
  0x87   : > { %4988 = vst [vmem:[#allocation63_spill] sm:$0xff] %v3640_v42 }
  0x88   : > { %v3610_v20 = vpop.permute.xlu2 %2308  ;;  %4989 = vst [vmem:[#allocation64_spill] sm:$0xff] %v3646_v0 }
  0x89   : > { %2448 = vrot.lane.b32.xlu2 %v3590_v63, %s2910_s30  ;;  %v339_v63 = vadd.f32 %v2972_v1, %v303_v51 }
  0x8b   : > { %v371_v27 = vmax.f32 %v339_v63, 0.0  ;;  %v3664_v63 = vpack.i.bf16 %v3252_v21, %v3255_v56 }
  0x8c   : > { %2443 = vrot.lane.b32.xlu1 %v3594_v16, %s2910_s30 }
  0x8d   : > { %2438 = vrot.lane.b32.xlu0 %v3600_v11, %s2910_s30  ;;  %v451_v51 = vrot.slane %v371_v27, 7  ;;  %4991 = vst [vmem:[#allocation66_spill] sm:$0xff] %v3664_v63 }
  0x91   : > { %2463 = vrot.lane.b32.xlu2 %v3608_v19, %s2910_s30  ;;  %v340_v19 = vadd.f32 %v2972_v1, %v304_v3  ;;  %v3654_v1 = vpack.i.bf16 %v3355_v52, %v3366_v23 }
  0x92   : > { %v3636_v16 = vpop.permute.xlu2 %2323 }
  0x93   : > { %4990 = vst [vmem:[#allocation65_spill] sm:$0xff] %v3654_v1 }
  0x94   : > { %2458 = vrot.lane.b32.xlu1 %v3616_v37, %s2910_s30 }
  0x95   : > { %2453 = vrot.lane.b32.xlu0 %v3622_v29, %s2910_s30  ;;  %v372_v29 = vmax.f32 %v340_v19, 0.0  ;;  %v3656_v3 = vpop.permute.xlu1 %2293  ;;  %v3670_v19 = vpack.i.bf16 %v3241_v22, %v3247_v24 }
  0x97   : > { %4992 = vst [vmem:[#allocation67_spill] sm:$0xff] %v3670_v19 }
  0x99   : > { %2478 = vrot.lane.b32.xlu2 %v3632_v46, %s2910_s30  ;;  %v3658_v46 = vrot.slane %v372_v29, 7  ;;  %v3679_v29 = vsel %vm405_vm0, 0.0, %v451_v51 }
  0x9a   : > { %4994 = vst [vmem:[#allocation69_spill] sm:$0xff] %v3679_v29 }
  0x9b   : > { %v3676_v27 = vsel %vm405_vm0, %v451_v51, %v3658_v46  ;;  %v3699_v51 = vpack.i.bf16 %v3328_v33, %v3347_v9 }
  0x9c   : > { %2473 = vrot.lane.b32.xlu1 %v3640_v42, %s2910_s30  ;;  %4993 = vst [vmem:[#allocation68_spill] sm:$0xff] %v3676_v27 }
  0x9d   : > { %2468 = vrot.lane.b32.xlu0 %v3646_v0, %s2910_s30  ;;  %v3691_v0 = vpack.i.bf16 %v3334_v43, %v3337_v5  ;;  %v3693_v11 = vpop.permute.xlu1 %2298  ;;  %4997 = vst [vmem:[#allocation72_spill] sm:$0xff] %v3699_v51  ;;  %v5001_v5 = vld [vmem:[#allocation9_spill] sm:$0xff] }
  0x9e   : > { %v3660_v37 = vpop.permute.xlu0 %2283  ;;  %v3672_v42 = vpop.permute.xlu2 %2338 }
  0x9f   : > { %4996 = vst [vmem:[#allocation71_spill] sm:$0xff] %v3691_v0 }
  0xa1   : > { %2493 = vrot.lane.b32.xlu2 %v3654_v1, %s2910_s30  ;;  %v3687_v1 = vpack.i.bf16 %v3676_v27, %v3679_v29 }
  0xa3   : > { %4995 = vst [vmem:[#allocation70_spill] sm:$0xff] %v3687_v1 }
  0xa4   : > { %2488 = vrot.lane.b32.xlu1 %v3664_v63, %s2910_s30 }
  0xa5   : > { %2483 = vrot.lane.b32.xlu0 %v3670_v19, %s2910_s30  ;;  %v4999_v19 = vld [vmem:[#allocation8_spill] sm:$0xff] }
  0xa6   : > { %v2289_v63 = vpop.permute.xlu0 %2288  ;;  %v3709_v55 = vpack.i.bf16 %v4999_v19, %v3054_v10 }
  0xa7   : > { %v2291_v43 = vunpack.i.h.bf16 %v2289_v63  ;;  %v2290_v33 = vunpack.i.l.bf16 %v2289_v63  ;;  %v5004_v63 = vld [vmem:[#allocation11_spill] sm:$0xff] }
  0xa8   : > { %5000 = vst [vmem:[#allocation8_spill] sm:$0xff] %v3709_v55 }
  0xa9   : > { %2508 = vrot.lane.b32.xlu2 %v3687_v1, %s2910_s30  ;;  %v3713_v1 = vpack.i.bf16 %v5002_v62, %v5001_v5  ;;  %v1489_v5 = vsel %vm1485_vm4, %v3083_v30, %v2291_v43  ;;  %v1488_v62 = vsel %vm1485_vm4, %v3098_v38, %v2290_v33  ;;  %v5012_v30 = vld [vmem:[#allocation6_spill] sm:$0xff]  ;;  %v2306_v38 = vunpack.i.h.bf16 %v3583_v2 }
  0xaa   : > { %v2305_v33 = vunpack.i.l.bf16 %v3583_v2 }
  0xab   : > { %v3701_v26 = vpop.permute.xlu2 %2353  ;;  %5003 = vst [vmem:[#allocation9_spill] sm:$0xff] %v3713_v1 }
  0xac   : > { %4998 = vst [vmem:[#allocation73_spill] sm:$0xff] %v3701_v26  ;;  %2503 = vrot.lane.b32.xlu1 %v3691_v0, %s2910_s30  ;;  %v5007_v26 = vld [vmem:[#allocation12_spill] sm:$0xff]  ;;  %v1494_v2 = vsel %vm1485_vm4, %v2999_v40, %v2305_v33 }
  0xad   : > { %2498 = vrot.lane.b32.xlu0 %v3699_v51, %s2910_s30  ;;  %v2319_v45 = vpop.permute.xlu1 %2318  ;;  %v5005_v51 = vld [vmem:[#allocation10_spill] sm:$0xff]  ;;  %v3731_v17 = vpack.i.bf16 %v5008_v25, %v5007_v26 }
  0xae   : > { %v3717_v54 = vpop.permute.xlu0 %2313  ;;  %v5015_v25 = vld [vmem:[#allocation2_spill] sm:$0xff]  ;;  %v2321_v40 = vunpack.i.h.bf16 %v2319_v45  ;;  %v2320_v33 = vunpack.i.l.bf16 %v2319_v45  ;;  %v5026_v45 = vld [vmem:[#allocation21_spill] sm:$0xff] }
  0xaf   : > { %5009 = vst [vmem:[#allocation5_spill] sm:$0xff] %v3731_v17 }
  0xb1   : > { %2523 = vrot.lane.b32.xlu2 %v3709_v55, %s2911_s6  ;;  %v5006_v55 = vpack.i.bf16 %v5004_v63, %v5005_v51  ;;  %v5017_v63 = vld [vmem:[#allocation15_spill] sm:$0xff] }
  0xb3   : > { %v2364_v0 = vpop.permute.xlu2 %2363 }
  0xb4   : > { %2518 = vrot.lane.b32.xlu1 %v3713_v1, %s2911_s6  ;;  %v2366_v10 = vunpack.i.h.bf16 %v2364_v0  ;;  %v2365_v19 = vunpack.i.l.bf16 %v2364_v0  ;;  %v5011_v1 = vld [vmem:[#allocation3_spill] sm:$0xff] }
  0xb5   : > { %2513 = vrot.lane.b32.xlu0 %v5006_v55, %s2911_s6  ;;  %v3741_v43 = vpack.i.bf16 %v5012_v30, %v5011_v1  ;;  %v5014_v55 = vld [vmem:[#allocation7_spill] sm:$0xff]  ;;  %v1495_v1 = vsel %vm1485_vm4, %v3002_v41, %v2306_v38  ;;  %v5021_v41 = vld [vmem:[#allocation14_spill] sm:$0xff] }
  0xb6   : > { %v3734_v22 = vsel %vm1517_vm3, %v1488_v62, %v2365_v19  ;;  %v3737_v0 = vsel %vm1517_vm3, %v1489_v5, %v2366_v10  ;;  %v3749_v26 = vpack.i.bf16 %v5015_v25, %v5014_v55  ;;  %v5018_v30 = vld [vmem:[#allocation23_spill] sm:$0xff] }
  0xb7   : > { %5010 = vst [vmem:[#allocation11_spill] sm:$0xff] %v3734_v22  ;;  %v3763_v55 = vpack.i.bf16 %v5018_v30, %v5017_v63 }
  0xb8   : > { %5013 = vst [vmem:[#allocation10_spill] sm:$0xff] %v3741_v43 }
  0xb9   : > { %2538 = vrot.lane.b32.xlu2 %v3731_v17, %s2911_s6  ;;  %5016 = vst [vmem:[#allocation12_spill] sm:$0xff] %v3749_v26  ;;  %v5024_v17 = vld [vmem:[#allocation17_spill] sm:$0xff] }
  0xba   : > { %v3759_v62 = vpop.permute.xlu0 %2328  ;;  %5019 = vst [vmem:[#allocation13_spill] sm:$0xff] %v3763_v55 }
  0xbb   : > { %v2379_v51 = vpop.permute.xlu2 %2378  ;;  %v2334_v10 = vpop.permute.xlu1 %2333 }
  0xbc   : > { %2533 = vrot.lane.b32.xlu1 %v3741_v43, %s2911_s6  ;;  %v2381_v19 = vunpack.i.h.bf16 %v2379_v51  ;;  %v2380_v5 = vunpack.i.l.bf16 %v2379_v51  ;;  %v5020_v43 = vld [vmem:[#allocation16_spill] sm:$0xff] }
  0xbd   : > { %2528 = vrot.lane.b32.xlu0 %v3749_v26, %s2911_s6  ;;  %v3773_v38 = vpack.i.bf16 %v5021_v41, %v5020_v43  ;;  %v5023_v26 = vld [vmem:[#allocation18_spill] sm:$0xff]  ;;  %v1500_v43 = vsel %vm1485_vm4, %v3199_v47, %v2320_v33  ;;  %v2336_v47 = vunpack.i.h.bf16 %v2334_v10  ;;  %v2335_v33 = vunpack.i.l.bf16 %v2334_v10 }
  0xbe   : > { %v3766_v25 = vsel %vm1517_vm3, %v1495_v1, %v2381_v19  ;;  %v3769_v51 = vsel %vm1517_vm3, %v1494_v2, %v2380_v5  ;;  %v3779_v22 = vpack.i.bf16 %v5024_v17, %v5023_v26  ;;  %v1501_v1 = vsel %vm1485_vm4, %v3162_v8, %v2321_v40  ;;  %v5028_v8 = vld [vmem:[#allocation22_spill] sm:$0xff]  ;;  %v5029_v40 = vld [vmem:[#allocation20_spill] sm:$0xff] }
  0xbf   : > { %5022 = vst [vmem:[#allocation3_spill] sm:$0xff] %v3773_v38  ;;  %v3791_v2 = vpack.i.bf16 %v3374_v31, %v5026_v45  ;;  %v5031_v31 = vld [vmem:[#allocation25_spill] sm:$0xff]  ;;  %v5032_v45 = vld [vmem:[#allocation24_spill] sm:$0xff]  ;;  %v1507_v10 = vsel %vm1485_vm4, %v3247_v24, %v2336_v47 }
  0xc0   : > { %5025 = vst [vmem:[#allocation6_spill] sm:$0xff] %v3779_v22 }
  0xc1   : > { %2553 = vrot.lane.b32.xlu2 %v3763_v55, %s2911_s6  ;;  %5027 = vst [vmem:[#allocation7_spill] sm:$0xff] %v3791_v2  ;;  %v3809_v55 = vpack.i.bf16 %v5032_v45, %v5031_v31  ;;  %v5034_v31 = vld [vmem:[#allocation30_spill] sm:$0xff] }
  0xc2   : > { %v3823_v45 = vpack.i.bf16 %v3424_v6, %v5034_v31 }
  0xc3   : > { %v2394_v63 = vpop.permute.xlu2 %2393  ;;  %5033 = vst [vmem:[#allocation15_spill] sm:$0xff] %v3809_v55 }
  0xc4   : > { %2548 = vrot.lane.b32.xlu1 %v3773_v38, %s2911_s6  ;;  %v2396_v19 = vunpack.i.h.bf16 %v2394_v63  ;;  %v2395_v5 = vunpack.i.l.bf16 %v2394_v63  ;;  %v3803_v63 = vpack.i.bf16 %v5029_v40, %v5028_v8  ;;  %v1506_v40 = vsel %vm1485_vm4, %v3293_v59, %v2335_v33  ;;  %v5036_v33 = vld [vmem:[#allocation31_spill] sm:$0xff] }
  0xc5   : > { %2543 = vrot.lane.b32.xlu0 %v3779_v22, %s2911_s6  ;;  %v3835_v59 = vsel %vm405_vm0, %v3658_v46, 0.0 }
  0xc6   : > { %v2349_v17 = vpop.permute.xlu1 %2348  ;;  %v3794_v26 = vsel %vm1517_vm3, %v1501_v1, %v2396_v19  ;;  %v3797_v30 = vsel %vm1517_vm3, %v1500_v43, %v2395_v5  ;;  %5030 = vst [vmem:[#allocation2_spill] sm:$0xff] %v3803_v63  ;;  %v2286_v1 = vunpack.i.h.bf16 %v3660_v37  ;;  %v2285_v5 = vunpack.i.l.bf16 %v3660_v37 }
  0xc7   : > { %v3799_v41 = vpop.permute.xlu0 %2343  ;;  %5035 = vst [vmem:[#allocation23_spill] sm:$0xff] %v3835_v59  ;;  %v2350_v22 = vunpack.i.l.bf16 %v2349_v17 }
  0xc8   : > { %v1487_v47 = vsel %vm1485_vm4, %v3089_v35, %v2286_v1  ;;  %v1486_v6 = vsel %vm1485_vm4, 0.0, %v2285_v5  ;;  %v1004_v35 = vrot.slane %v3679_v29, 1  ;;  %v1005_v1 = vrot.slane %v3676_v27, 1 }
  0xc9   : > { %2568 = vrot.lane.b32.xlu2 %v3791_v2, %s2911_s6  ;;  %v1007_v5 = vrot.slane %v3835_v59, 1  ;;  %v5041_v59 = vld [vmem:[#allocation35_spill] sm:$0xff] }
  0xca   : > { %v3871_v27 = vpack.i.bf16 %v3435_v34, %v5041_v59  ;;  %v1006_v29 = vsel %vm564_vm1, %v1004_v35, %v1005_v1 }
  0xcb   : > { %v2409_v19 = vpop.permute.xlu2 %2408 }
  0xcc   : > { %2563 = vrot.lane.b32.xlu1 %v3803_v63, %s2911_s6  ;;  %v2411_v43 = vunpack.i.h.bf16 %v2409_v19  ;;  %v2410_v8 = vunpack.i.l.bf16 %v2409_v19 }
  0xcd   : > { %2558 = vrot.lane.b32.xlu0 %v3809_v55, %s2911_s6 }
  0xce   : > { %v3826_v37 = vsel %vm1517_vm3, %v1507_v10, %v2411_v43  ;;  %v3829_v2 = vsel %vm1517_vm3, %v1506_v40, %v2410_v8  ;;  %v2359_v19 = vpop.permute.xlu1 %2358  ;;  %v5037_v43 = vld [vmem:[#allocation29_spill] sm:$0xff]  ;;  %v5039_v40 = vld [vmem:[#allocation32_spill] sm:$0xff] }
  0xcf   : > { %v2361_v38 = vunpack.i.h.bf16 %v2359_v19  ;;  %v2360_v63 = vunpack.i.l.bf16 %v2359_v19  ;;  %v3831_v24 = vpop.permute.xlu0 %702  ;;  %v3842_v10 = vpack.i.bf16 %v5037_v43, %v5036_v33  ;;  %v5038_v8 = vld [vmem:[#allocation33_spill] sm:$0xff]  ;;  %v2351_v19 = vunpack.i.h.bf16 %v2349_v17 }
  0xd0   : > { %v3846_v31 = vpack.i.bf16 %v5039_v40, %v5038_v8  ;;  %v2296_v33 = vunpack.i.h.bf16 %v3656_v3  ;;  %v2301_v43 = vunpack.i.h.bf16 %v3693_v11  ;;  %v2300_v17 = vunpack.i.l.bf16 %v3693_v11 }
  0xd1   : > { %v1518_v55 = vsel %vm1517_vm3, %v1486_v6, %v2360_v63  ;;  %v3850_v46 = vsel %vm1517_vm3, %v1487_v47, %v2361_v38  ;;  %2583 = vrot.lane.b32.xlu2 %v3823_v45, %s2911_s6  ;;  %v2295_v47 = vunpack.i.l.bf16 %v3656_v3  ;;  %v1513_v6 = vsel %vm1485_vm4, %v3347_v9, %v2351_v19 }
  0xd2   : > { %5040 = vst [vmem:[#allocation16_spill] sm:$0xff] %v3846_v31  ;;  %v1512_v40 = vsel %vm1485_vm4, %v3355_v52, %v2350_v22  ;;  %v1008_v9 = vsel %vm564_vm1, %v1005_v1, %v1007_v5  ;;  %v1491_v22 = vsel %vm1485_vm4, %v3022_v53, %v2296_v33  ;;  %v1493_v52 = vsel %vm1485_vm4, %v3061_v13, %v2301_v43 }
  0xd3   : > { %v2424_v8 = vpop.permute.xlu2 %2423  ;;  %v1490_v35 = vsel %vm1485_vm4, %v3015_v49, %v2295_v47  ;;  %v3897_v13 = vpack.i.bf16 %v1008_v9, %v1006_v29  ;;  %v2316_v49 = vunpack.i.h.bf16 %v3717_v54  ;;  %v2315_v43 = vunpack.i.l.bf16 %v3717_v54 }
  0xd4   : > { %2578 = vrot.lane.b32.xlu1 %v3842_v10, %s2911_s6  ;;  %v2426_v38 = vunpack.i.h.bf16 %v2424_v8  ;;  %v2425_v63 = vunpack.i.l.bf16 %v2424_v8  ;;  %v2310_v29 = vunpack.i.l.bf16 %v3610_v20 }
  0xd5   : > { %2573 = vrot.lane.b32.xlu0 %v3846_v31, %s2911_s6 }
  0xd6   : > { %v3874_v11 = vsel %vm1517_vm3, %v1513_v6, %v2426_v38  ;;  %v3877_v8 = vsel %vm1517_vm3, %v1512_v40, %v2425_v63  ;;  %v2374_v3 = vpop.permute.xlu1 %2373  ;;  %v1492_v38 = vsel %vm1485_vm4, %v3035_v60, %v2300_v17  ;;  %v5042_v40 = vld [vmem:[#allocation34_spill] sm:$0xff] }
  0xd7   : > { %v2376_v19 = vunpack.i.h.bf16 %v2374_v3  ;;  %v2375_v34 = vunpack.i.l.bf16 %v2374_v3  ;;  %v2369_v59 = vpop.permute.xlu0 %2368  ;;  %v2592_v31 = vpack.i.bf16 %v5042_v40, %v3410_v7  ;;  %v2311_v7 = vunpack.i.h.bf16 %v3610_v20  ;;  %v5043_v3 = vld [vmem:[#allocation38_spill] sm:$0xff]  ;;  %v5045_v40 = vld [vmem:[#allocation37_spill] sm:$0xff] }
  0xd8   : > { %v2371_v6 = vunpack.i.h.bf16 %v2369_v59  ;;  %v2370_v63 = vunpack.i.l.bf16 %v2369_v59  ;;  %v3912_v9 = vpack.i.bf16 %v3483_v12, %v5043_v3  ;;  %v1499_v20 = vsel %vm1485_vm4, %v3212_v50, %v2316_v49  ;;  %v5046_v50 = vld [vmem:[#allocation41_spill] sm:$0xff]  ;;  %v5047_v49 = vld [vmem:[#allocation39_spill] sm:$0xff] }
  0xd9   : > { %v3892_v1 = vsel %vm1517_vm3, %v1493_v52, %v2376_v19  ;;  %v1524_v53 = vsel %vm1517_vm3, %v1492_v38, %v2375_v34  ;;  %2598 = vrot.lane.b32.xlu2 %v3871_v27, %s2912_s7  ;;  %v1498_v12 = vsel %vm1485_vm4, %v3105_v48, %v2315_v43  ;;  %v3940_v48 = vpack.i.bf16 %v5047_v49, %v5046_v50  ;;  %v5050_v50 = vld [vmem:[#allocation43_spill] sm:$0xff] }
  0xda   : > { %v1523_v60 = vsel %vm1517_vm3, %v1491_v22, %v2371_v6  ;;  %v3901_v5 = vsel %vm1517_vm3, %v1490_v35, %v2370_v63  ;;  %v5044_v63 = vld [vmem:[#allocation40_spill] sm:$0xff] }
  0xdb   : > { %v2434_v33 = vpop.permute.xlu2 %2433  ;;  %v3928_v35 = vpack.i.bf16 %v5045_v40, %v5044_v63 }
  0xdc   : > { %2593 = vrot.lane.b32.xlu1 %v2592_v31, %s2912_s7  ;;  %v2436_v17 = vunpack.i.h.bf16 %v2434_v33  ;;  %v2435_v47 = vunpack.i.l.bf16 %v2434_v33  ;;  %v1497_v31 = vsel %vm1485_vm4, %v3111_v57, %v2311_v7 }
  0xdd   : > { %2588 = vrot.lane.b32.xlu0 %v3897_v13, %s2911_s6 }
  0xde   : > { %v3915_v22 = vsel %vm1549_vm5, %v1518_v55, %v2435_v47  ;;  %v3918_v52 = vsel %vm1549_vm5, %v1518_v55, %v2436_v17  ;;  %v2389_v54 = vpop.permute.xlu1 %2388  ;;  %v1496_v55 = vsel %vm1485_vm4, %v3008_v44, %v2310_v29  ;;  %v2326_v17 = vunpack.i.h.bf16 %v3636_v16 }
  0xdf   : > { %v2391_v19 = vunpack.i.h.bf16 %v2389_v54  ;;  %v2390_v34 = vunpack.i.l.bf16 %v2389_v54  ;;  %v2384_v59 = vpop.permute.xlu0 %2383  ;;  %v2331_v44 = vunpack.i.h.bf16 %v3759_v62  ;;  %v2330_v29 = vunpack.i.l.bf16 %v3759_v62 }
  0xe0   : > { %v2386_v38 = vunpack.i.h.bf16 %v2384_v59  ;;  %v2385_v6 = vunpack.i.l.bf16 %v2384_v59  ;;  %v1503_v59 = vsel %vm1485_vm4, %v3173_v18, %v2326_v17  ;;  %v2341_v17 = vunpack.i.h.bf16 %v3672_v42 }
  0xe1   : > { %v1530_v57 = vsel %vm1517_vm3, %v1498_v12, %v2390_v34  ;;  %v3934_v7 = vsel %vm1517_vm3, %v1499_v20, %v2391_v19  ;;  %2613 = vrot.lane.b32.xlu2 %v3912_v9, %s2912_s7  ;;  %v2325_v20 = vunpack.i.l.bf16 %v3636_v16  ;;  %v1505_v16 = vsel %vm1485_vm4, %v3276_v4, %v2331_v44  ;;  %v5049_v4 = vld [vmem:[#allocation44_spill] sm:$0xff] }
  0xe2   : > { %v1529_v33 = vsel %vm1517_vm3, %v1497_v31, %v2386_v38  ;;  %v3944_v43 = vsel %vm1517_vm3, %v1496_v55, %v2385_v6  ;;  %v3956_v31 = vpack.i.bf16 %v3519_v58, %v3466_v28  ;;  %v1504_v28 = vsel %vm1485_vm4, %v3170_v15, %v2330_v29 }
  0xe3   : > { %v2449_v47 = vpop.permute.xlu2 %2448  ;;  %v3984_v15 = vpack.i.bf16 %v5050_v50, %v5049_v4 }
  0xe4   : > { %2608 = vrot.lane.b32.xlu1 %v3928_v35, %s2912_s7  ;;  %v2451_v3 = vunpack.i.h.bf16 %v2449_v47  ;;  %v2450_v54 = vunpack.i.l.bf16 %v2449_v47  ;;  %v2345_v47 = vunpack.i.l.bf16 %v3799_v41 }
  0xe5   : > { %2603 = vrot.lane.b32.xlu0 %v3940_v48, %s2912_s7 }
  0xe6   : > { %v3959_v19 = vsel %vm1549_vm5, %v1523_v60, %v2450_v54  ;;  %v3962_v34 = vsel %vm1549_vm5, %v1524_v53, %v2451_v3  ;;  %v2404_v62 = vpop.permute.xlu1 %2403  ;;  %v5048_v60 = vld [vmem:[#allocation42_spill] sm:$0xff]  ;;  %v1502_v53 = vsel %vm1485_vm4, %v3167_v14, %v2325_v20  ;;  %v2346_v14 = vunpack.i.h.bf16 %v3799_v41 }
  0xe7   : > { %v2406_v12 = vunpack.i.h.bf16 %v2404_v62  ;;  %v2405_v38 = vunpack.i.l.bf16 %v2404_v62  ;;  %v2399_v6 = vpop.permute.xlu0 %2398  ;;  %v3972_v40 = vpack.i.bf16 %v5048_v60, %v3479_v36  ;;  %v2340_v54 = vunpack.i.l.bf16 %v3672_v42 }
  0xe8   : > { %v2401_v58 = vunpack.i.h.bf16 %v2399_v6  ;;  %v2400_v63 = vunpack.i.l.bf16 %v2399_v6  ;;  %v4000_v20 = vpack.i.bf16 %v3553_v61, %v3502_v32  ;;  %v1511_v42 = vsel %vm1485_vm4, %v3366_v23, %v2346_v14  ;;  %v5053_v23 = vld [vmem:[#allocation47_spill] sm:$0xff] }
  0xe9   : > { %v1536_v18 = vsel %vm1517_vm3, %v1504_v28, %v2405_v38  ;;  %v3978_v55 = vsel %vm1517_vm3, %v1505_v16, %v2406_v12  ;;  %2628 = vrot.lane.b32.xlu2 %v3956_v31, %s2912_s7  ;;  %v1509_v16 = vsel %vm1485_vm4, %v3255_v56, %v2341_v17  ;;  %v1510_v32 = vsel %vm1485_vm4, %v3252_v21, %v2345_v47 }
  0xea   : > { %v1535_v49 = vsel %vm1517_vm3, %v1503_v59, %v2401_v58  ;;  %v3988_v36 = vsel %vm1517_vm3, %v1502_v53, %v2400_v63  ;;  %v5054_v53 = vld [vmem:[#allocation46_spill] sm:$0xff] }
  0xeb   : > { %v2464_v44 = vpop.permute.xlu2 %2463  ;;  %v4028_v21 = vpack.i.bf16 %v5054_v53, %v5053_v23  ;;  %v5061_v53 = vld [vmem:[#allocation28_spill] sm:$0xff] }
  0xec   : > { %2623 = vrot.lane.b32.xlu1 %v3972_v40, %s2912_s7  ;;  %v2466_v29 = vunpack.i.h.bf16 %v2464_v44  ;;  %v2465_v3 = vunpack.i.l.bf16 %v2464_v44  ;;  %v5055_v44 = vld [vmem:[#allocation73_spill] sm:$0xff] }
  0xed   : > { %2618 = vrot.lane.b32.xlu0 %v3984_v15, %s2912_s7  ;;  %v2356_v47 = vunpack.i.h.bf16 %v5055_v44 }
  0xee   : > { %v4003_v62 = vsel %vm1549_vm5, %v1529_v33, %v2465_v3  ;;  %v4006_v59 = vsel %vm1549_vm5, %v1530_v57, %v2466_v29  ;;  %v2419_v41 = vpop.permute.xlu1 %2418  ;;  %v5051_v33 = vld [vmem:[#allocation45_spill] sm:$0xff]  ;;  %v5052_v57 = vld [vmem:[#allocation19_spill] sm:$0xff]  ;;  %v2355_v29 = vunpack.i.l.bf16 %v5055_v44 }
  0xef   : > { %v2421_v12 = vunpack.i.h.bf16 %v2419_v41  ;;  %v2420_v38 = vunpack.i.l.bf16 %v2419_v41  ;;  %v2414_v6 = vpop.permute.xlu0 %2413  ;;  %v4016_v58 = vpack.i.bf16 %v5051_v33, %v3515_v39  ;;  %v1508_v63 = vsel %vm1485_vm4, %v5052_v57, %v2340_v54  ;;  %v5056_v3 = vld [vmem:[#allocation49_spill] sm:$0xff]  ;;  %v5059_v57 = vld [vmem:[#allocation51_spill] sm:$0xff] }
  0xf0   : > { %v2416_v61 = vunpack.i.h.bf16 %v2414_v6  ;;  %v2415_v28 = vunpack.i.l.bf16 %v2414_v6  ;;  %v5057_v54 = vld [vmem:[#allocation53_spill] sm:$0xff] }
  0xf1   : > { %v1542_v56 = vsel %vm1517_vm3, %v1510_v32, %v2420_v38  ;;  %v4022_v60 = vsel %vm1517_vm3, %v1511_v42, %v2421_v12  ;;  %2643 = vrot.lane.b32.xlu2 %v4000_v20, %s2912_s7  ;;  %v4042_v41 = vpack.i.bf16 %v5057_v54, %v5056_v3 }
  0xf2   : > { %v1541_v4 = vsel %vm1517_vm3, %v1509_v16, %v2416_v61  ;;  %v4032_v39 = vsel %vm1517_vm3, %v1508_v63, %v2415_v28  ;;  %v5058_v16 = vld [vmem:[#allocation27_spill] sm:$0xff]  ;;  %v5060_v63 = vld [vmem:[#allocation48_spill] sm:$0xff] }
  0xf3   : > { %v2479_v50 = vpop.permute.xlu2 %2478  ;;  %v1516_v42 = vsel %vm1485_vm4, %v5058_v16, %v3831_v24  ;;  %v4056_v23 = vpack.i.bf16 %v5060_v63, %v5059_v57  ;;  %v5062_v24 = vld [vmem:[#allocation26_spill] sm:$0xff] }
  0xf4   : > { %2638 = vrot.lane.b32.xlu1 %v4016_v58, %s2912_s7  ;;  %v2481_v17 = vunpack.i.h.bf16 %v2479_v50  ;;  %v2480_v14 = vunpack.i.l.bf16 %v2479_v50  ;;  %v1515_v50 = vsel %vm1485_vm4, %v5061_v53, %v2356_v47 }
  0xf5   : > { %2633 = vrot.lane.b32.xlu0 %v4028_v21, %s2912_s7 }
  0xf6   : > { %v4048_v12 = vsel %vm1549_vm5, %v1535_v49, %v2480_v14  ;;  %v4051_v38 = vsel %vm1549_vm5, %v1536_v18, %v2481_v17  ;;  %v874_v6 = vpop.permute.xlu1 %873  ;;  %v1514_v49 = vsel %vm1485_vm4, %v5062_v24, %v2355_v29  ;;  %v5063_v18 = vld [vmem:[#allocation52_spill] sm:$0xff]  ;;  %v5064_v17 = vld [vmem:[#allocation50_spill] sm:$0xff] }
  0xf7   : > { %v1548_v32 = vsel %vm1517_vm3, %v1516_v42, %v874_v6  ;;  %v2429_v61 = vpop.permute.xlu0 %2428  ;;  %v4066_v14 = vpack.i.bf16 %v5064_v17, %v5063_v18  ;;  %v5066_v18 = vld [vmem:[#allocation9_spill] sm:$0xff] }
  0xf8   : > { %v2431_v28 = vunpack.i.h.bf16 %v2429_v61  ;;  %v2430_v33 = vunpack.i.l.bf16 %v2429_v61 }
  0xf9   : > { %2658 = vrot.lane.b32.xlu2 %v4042_v41, %s2912_s7 }
  0xfa   : > { %v1547_v44 = vsel %vm1517_vm3, %v1515_v50, %v2431_v28  ;;  %v4070_v3 = vsel %vm1517_vm3, %v1514_v49, %v2430_v33 }
  0xfb   : > { %v2494_v54 = vpop.permute.xlu2 %2493 }
  0xfc   : > { %2653 = vrot.lane.b32.xlu1 %v4056_v23, %s2912_s7  ;;  %v2496_v47 = vunpack.i.h.bf16 %v2494_v54  ;;  %v2495_v16 = vunpack.i.l.bf16 %v2494_v54 }
  0xfd   : > { %2648 = vrot.lane.b32.xlu0 %v4066_v14, %s2912_s7 }
  0xfe   : > { %v4077_v29 = vsel %vm1549_vm5, %v1541_v4, %v2495_v16  ;;  %v4080_v42 = vsel %vm1549_vm5, %v1542_v56, %v2496_v47  ;;  %v2444_v6 = vpop.permute.xlu1 %2443  ;;  %v5065_v4 = vld [vmem:[#allocation11_spill] sm:$0xff] }
  0xff   : > { %v2446_v61 = vunpack.i.h.bf16 %v2444_v6  ;;  %v2445_v28 = vunpack.i.l.bf16 %v2444_v6  ;;  %v2439_v33 = vpop.permute.xlu0 %2438 }
 0x100   : > { %v2441_v57 = vunpack.i.h.bf16 %v2439_v33  ;;  %v2440_v63 = vunpack.i.l.bf16 %v2439_v33 }
 0x101   : > { %v1554_v53 = vsel %vm1549_vm5, %v3737_v0, %v2445_v28  ;;  %v1555_v50 = vsel %vm1549_vm5, %v3901_v5, %v2446_v61  ;;  %2673 = vrot.lane.b32.xlu2 %v3871_v27, %s2913_s8  ;;  %v5067_v5 = vld [vmem:[#allocation58_spill] sm:$0xff] }
 0x102   : > { %v4090_v56 = vsel %vm1549_vm5, %v3850_v46, %v2440_v63  ;;  %v4094_v24 = vsel %vm1549_vm5, %v5065_v4, %v2441_v57  ;;  %v5068_v63 = vld [vmem:[#allocation8_spill] sm:$0xff] }
 0x103   : > { %v2509_v49 = vpop.permute.xlu2 %2508 }
 0x104   : > { %2668 = vrot.lane.b32.xlu1 %v5066_v18, %s2914_s9  ;;  %v2511_v0 = vunpack.i.h.bf16 %v2509_v49  ;;  %v2510_v17 = vunpack.i.l.bf16 %v2509_v49  ;;  %v5069_v49 = vld [vmem:[#allocation60_spill] sm:$0xff] }
 0x105   : > { %2663 = vrot.lane.b32.xlu0 %v5067_v5, %s2915_s10 }
 0x106   : > { %v4101_v27 = vsel %vm1549_vm5, %v1547_v44, %v2510_v17  ;;  %v4104_v46 = vsel %vm1549_vm5, %v1548_v32, %v2511_v0  ;;  %v2459_v54 = vpop.permute.xlu1 %2458 }
 0x107   : > { %v2461_v47 = vunpack.i.h.bf16 %v2459_v54  ;;  %v2460_v16 = vunpack.i.l.bf16 %v2459_v54  ;;  %v2454_v6 = vpop.permute.xlu0 %2453 }
 0x108   : > { %v2456_v61 = vunpack.i.h.bf16 %v2454_v6  ;;  %v2455_v28 = vunpack.i.l.bf16 %v2454_v6 }
 0x109   : > { %v1560_v33 = vsel %vm1549_vm5, %v3766_v25, %v2460_v16  ;;  %v1561_v57 = vsel %vm1549_vm5, %v3944_v43, %v2461_v47  ;;  %2688 = vrot.lane.b32.xlu2 %v5068_v63, %s2914_s9  ;;  %v5070_v43 = vld [vmem:[#allocation57_spill] sm:$0xff] }
 0x10a   : > { %v4114_v44 = vsel %vm1549_vm5, %v3769_v51, %v2456_v61  ;;  %v4118_v32 = vsel %vm1549_vm5, %v3892_v1, %v2455_v28 }
 0x10b   : > { %v2524_v4 = vpop.permute.xlu2 %2523 }
 0x10c   : > { %2683 = vrot.lane.b32.xlu1 %v5069_v49, %s2915_s10  ;;  %v2526_v25 = vunpack.i.h.bf16 %v2524_v4  ;;  %v2525_v18 = vunpack.i.l.bf16 %v2524_v4  ;;  %v5071_v4 = vld [vmem:[#allocation5_spill] sm:$0xff] }
 0x10d   : > { %2678 = vrot.lane.b32.xlu0 %v5070_v43, %s2915_s10 }
 0x10e   : > { %v4125_v0 = vsel %vm1582_vm6, %v1554_v53, %v2525_v18  ;;  %v4128_v51 = vsel %vm1582_vm6, %v1555_v50, %v2526_v25  ;;  %v2474_v17 = vpop.permute.xlu1 %2473 }
 0x10f   : > { %v2476_v5 = vunpack.i.h.bf16 %v2474_v17  ;;  %v2475_v1 = vunpack.i.l.bf16 %v2474_v17  ;;  %v2469_v54 = vpop.permute.xlu0 %2468 }
 0x110   : > { %v2471_v47 = vunpack.i.h.bf16 %v2469_v54  ;;  %v2470_v16 = vunpack.i.l.bf16 %v2469_v54 }
 0x111   : > { %v1566_v6 = vsel %vm1549_vm5, %v3794_v26, %v2475_v1  ;;  %v1567_v61 = vsel %vm1549_vm5, %v3988_v36, %v2476_v5  ;;  %2703 = vrot.lane.b32.xlu2 %v3984_v15, %s2913_s8  ;;  %v5072_v1 = vld [vmem:[#allocation15_spill] sm:$0xff] }
 0x112   : > { %v4138_v53 = vsel %vm1549_vm5, %v3797_v30, %v2471_v47  ;;  %v4142_v50 = vsel %vm1549_vm5, %v3934_v7, %v2470_v16  ;;  %v5073_v47 = vld [vmem:[#allocation62_spill] sm:$0xff] }
 0x113   : > { %v2539_v28 = vpop.permute.xlu2 %2538 }
 0x114   : > { %2698 = vrot.lane.b32.xlu1 %v3940_v48, %s2913_s8  ;;  %v2541_v63 = vunpack.i.h.bf16 %v2539_v28  ;;  %v2540_v26 = vunpack.i.l.bf16 %v2539_v28 }
 0x115   : > { %2693 = vrot.lane.b32.xlu0 %v5071_v4, %s2914_s9 }
 0x116   : > { %v4149_v36 = vsel %vm1582_vm6, %v1560_v33, %v2540_v26  ;;  %v4152_v15 = vsel %vm1582_vm6, %v1561_v57, %v2541_v63  ;;  %v2489_v30 = vpop.permute.xlu1 %2488 }
 0x117   : > { %v2491_v49 = vunpack.i.h.bf16 %v2489_v30  ;;  %v2490_v25 = vunpack.i.l.bf16 %v2489_v30  ;;  %v2484_v7 = vpop.permute.xlu0 %2483 }
 0x118   : > { %v2486_v18 = vunpack.i.h.bf16 %v2484_v7  ;;  %v2485_v43 = vunpack.i.l.bf16 %v2484_v7  ;;  %v5075_v7 = vld [vmem:[#allocation59_spill] sm:$0xff] }
 0x119   : > { %v1572_v48 = vsel %vm1549_vm5, %v3826_v37, %v2490_v25  ;;  %v1573_v17 = vsel %vm1549_vm5, %v4032_v39, %v2491_v49  ;;  %2718 = vrot.lane.b32.xlu2 %v4016_v58, %s2913_s8  ;;  %v5074_v49 = vld [vmem:[#allocation12_spill] sm:$0xff] }
 0x11a   : > { %v4162_v33 = vsel %vm1549_vm5, %v3829_v2, %v2486_v18  ;;  %v4166_v57 = vsel %vm1549_vm5, %v3978_v55, %v2485_v43  ;;  %v5076_v43 = vld [vmem:[#allocation56_spill] sm:$0xff] }
 0x11b   : > { %v2554_v5 = vpop.permute.xlu2 %2553 }
 0x11c   : > { %2713 = vrot.lane.b32.xlu1 %v5072_v1, %s2914_s9  ;;  %v2556_v54 = vunpack.i.h.bf16 %v2554_v5  ;;  %v2555_v37 = vunpack.i.l.bf16 %v2554_v5 }
 0x11d   : > { %2708 = vrot.lane.b32.xlu0 %v5073_v47, %s2915_s10 }
 0x11e   : > { %v4173_v39 = vsel %vm1582_vm6, %v1566_v6, %v2555_v37  ;;  %v4176_v58 = vsel %vm1582_vm6, %v1567_v61, %v2556_v54  ;;  %v2504_v2 = vpop.permute.xlu1 %2503 }
 0x11f   : > { %v2506_v16 = vunpack.i.h.bf16 %v2504_v2  ;;  %v2505_v28 = vunpack.i.l.bf16 %v2504_v2  ;;  %v2499_v55 = vpop.permute.xlu0 %2498 }
 0x120   : > { %v2501_v63 = vunpack.i.h.bf16 %v2499_v55  ;;  %v2500_v26 = vunpack.i.l.bf16 %v2499_v55 }
 0x121   : > { %v1578_v4 = vsel %vm1549_vm5, %v3874_v11, %v2505_v28  ;;  %v1579_v30 = vsel %vm1549_vm5, %v4070_v3, %v2506_v16  ;;  %2733 = vrot.lane.b32.xlu2 %v5074_v49, %s2914_s9 }
 0x122   : > { %v4186_v6 = vsel %vm1549_vm5, %v3877_v8, %v2501_v63  ;;  %v4190_v61 = vsel %vm1549_vm5, %v4022_v60, %v2500_v26 }
 0x123   : > { %v2569_v25 = vpop.permute.xlu2 %2568 }
 0x124   : > { %2728 = vrot.lane.b32.xlu1 %v5075_v7, %s2915_s10  ;;  %v2571_v18 = vunpack.i.h.bf16 %v2569_v25  ;;  %v2570_v11 = vunpack.i.l.bf16 %v2569_v25 }
 0x125   : > { %2723 = vrot.lane.b32.xlu0 %v5076_v43, %s2915_s10 }
 0x126   : > { %v4197_v3 = vsel %vm1582_vm6, %v1572_v48, %v2570_v11  ;;  %v4200_v5 = vsel %vm1582_vm6, %v1573_v17, %v2571_v18  ;;  %v2519_v8 = vpop.permute.xlu1 %2518 }
 0x127   : > { %v2521_v1 = vunpack.i.h.bf16 %v2519_v8  ;;  %v2520_v54 = vunpack.i.l.bf16 %v2519_v8  ;;  %v2514_v60 = vpop.permute.xlu0 %2513  ;;  %v5080_v8 = vld [vmem:[#allocation67_spill] sm:$0xff] }
 0x128   : > { %v2516_v37 = vunpack.i.h.bf16 %v2514_v60  ;;  %v2515_v47 = vunpack.i.l.bf16 %v2514_v60 }
 0x129   : > { %v4204_v2 = vsel %vm1582_vm6, %v4090_v56, %v2520_v54  ;;  %v4208_v16 = vsel %vm1582_vm6, %v4094_v24, %v2521_v1  ;;  %2748 = vrot.lane.b32.xlu2 %v3972_v40, %s2913_s8  ;;  %v5077_v24 = vld [vmem:[#allocation6_spill] sm:$0xff] }
 0x12a   : > { %v4214_v48 = vsel %vm1582_vm6, %v3915_v22, %v2515_v47  ;;  %v4218_v17 = vsel %vm1582_vm6, %v3918_v52, %v2516_v37 }
 0x12b   : > { %v2584_v28 = vpop.permute.xlu2 %2583 }
 0x12c   : > { %2743 = vrot.lane.b32.xlu1 %v3928_v35, %s2913_s8  ;;  %v2586_v56 = vunpack.i.h.bf16 %v2584_v28  ;;  %v2585_v55 = vunpack.i.l.bf16 %v2584_v28 }
 0x12d   : > { %2738 = vrot.lane.b32.xlu0 %v5077_v24, %s2914_s9 }
 0x12e   : > { %v4225_v63 = vsel %vm1582_vm6, %v1578_v4, %v2585_v55  ;;  %v4228_v40 = vsel %vm1582_vm6, %v1579_v30, %v2586_v56  ;;  %v2534_v22 = vpop.permute.xlu1 %2533  ;;  %v5078_v4 = vld [vmem:[#allocation2_spill] sm:$0xff] }
 0x12f   : > { %v2536_v26 = vunpack.i.h.bf16 %v2534_v22  ;;  %v2535_v49 = vunpack.i.l.bf16 %v2534_v22  ;;  %v2529_v52 = vpop.permute.xlu0 %2528 }
 0x130   : > { %v2531_v25 = vunpack.i.h.bf16 %v2529_v52  ;;  %v2530_v7 = vunpack.i.l.bf16 %v2529_v52 }
 0x131   : > { %v4232_v35 = vsel %vm1582_vm6, %v4118_v32, %v2535_v49  ;;  %v4236_v18 = vsel %vm1582_vm6, %v4114_v44, %v2536_v26  ;;  %2763 = vrot.lane.b32.xlu2 %v5078_v4, %s2914_s9  ;;  %v5079_v32 = vld [vmem:[#allocation72_spill] sm:$0xff]  ;;  %v5081_v49 = vld [vmem:[#allocation10_spill] sm:$0xff] }
 0x132   : > { %v4242_v30 = vsel %vm1582_vm6, %v3962_v34, %v2531_v25  ;;  %v4246_v11 = vsel %vm1582_vm6, %v3959_v19, %v2530_v7  ;;  %v5082_v25 = vld [vmem:[#allocation64_spill] sm:$0xff] }
 0x133   : > { %v4248_v43 = vpop.permute.xlu2 %2598 }
 0x134   : > { %2758 = vrot.lane.b32.xlu1 %v5079_v32, %s2915_s10 }
 0x135   : > { %2753 = vrot.lane.b32.xlu0 %v5080_v8, %s2915_s10 }
 0x136   : > { %v2549_v44 = vpop.permute.xlu1 %2548 }
 0x137   : > { %v2551_v1 = vunpack.i.h.bf16 %v2549_v44  ;;  %v2550_v54 = vunpack.i.l.bf16 %v2549_v44  ;;  %v2544_v60 = vpop.permute.xlu0 %2543 }
 0x138   : > { %v2546_v37 = vunpack.i.h.bf16 %v2544_v60  ;;  %v2545_v47 = vunpack.i.l.bf16 %v2544_v60 }
 0x139   : > { %v1597_v34 = vsel %vm1582_vm6, %v4142_v50, %v2550_v54  ;;  %v1598_v19 = vsel %vm1582_vm6, %v4138_v53, %v2551_v1  ;;  %2778 = vrot.lane.b32.xlu2 %v4042_v41, %s2913_s8 }
 0x13a   : > { %v4262_v28 = vsel %vm1582_vm6, %v4003_v62, %v2545_v47  ;;  %v4266_v56 = vsel %vm1582_vm6, %v4006_v59, %v2546_v37 }
 0x13b   : > { %v4268_v55 = vpop.permute.xlu2 %2613 }
 0x13c   : > { %2773 = vrot.lane.b32.xlu1 %v4000_v20, %s2913_s8 }
 0x13d   : > { %2768 = vrot.lane.b32.xlu0 %v3842_v10, %s2914_s9 }
 0x13e   : > { %v2564_v53 = vpop.permute.xlu1 %2563 }
 0x13f   : > { %v2566_v50 = vunpack.i.h.bf16 %v2564_v53  ;;  %v2565_v24 = vunpack.i.l.bf16 %v2564_v53  ;;  %v2559_v41 = vpop.permute.xlu0 %2558 }
 0x140   : > { %v2561_v22 = vunpack.i.h.bf16 %v2559_v41  ;;  %v2560_v26 = vunpack.i.l.bf16 %v2559_v41 }
 0x141   : > { %v1603_v62 = vsel %vm1582_vm6, %v4166_v57, %v2565_v24  ;;  %v1604_v59 = vsel %vm1582_vm6, %v4162_v33, %v2566_v50  ;;  %2793 = vrot.lane.b32.xlu2 %v5081_v49, %s2914_s9  ;;  %v5083_v33 = vld [vmem:[#allocation61_spill] sm:$0xff]  ;;  %v5084_v50 = vld [vmem:[#allocation3_spill] sm:$0xff] }
 0x142   : > { %v4282_v20 = vsel %vm1582_vm6, %v4048_v12, %v2560_v26  ;;  %v4286_v10 = vsel %vm1582_vm6, %v4051_v38, %v2561_v22  ;;  %v5085_v26 = vld [vmem:[#allocation7_spill] sm:$0xff] }
 0x143   : > { %v2629_v52 = vpop.permute.xlu2 %2628 }
 0x144   : > { %2788 = vrot.lane.b32.xlu1 %v5082_v25, %s2915_s10  ;;  %v2631_v7 = vunpack.i.h.bf16 %v2629_v52  ;;  %v2630_v57 = vunpack.i.l.bf16 %v2629_v52 }
 0x145   : > { %2783 = vrot.lane.b32.xlu0 %v5083_v33, %s2915_s10 }
 0x146   : > { %v4293_v4 = vsel %vm1615_vm7, %v1597_v34, %v2630_v57  ;;  %v4296_v12 = vsel %vm1615_vm7, %v1598_v19, %v2631_v7  ;;  %v2579_v32 = vpop.permute.xlu1 %2578  ;;  %v5086_v7 = vld [vmem:[#allocation71_spill] sm:$0xff] }
 0x147   : > { %v2581_v8 = vunpack.i.h.bf16 %v2579_v32  ;;  %v2580_v38 = vunpack.i.l.bf16 %v2579_v32  ;;  %v2574_v44 = vpop.permute.xlu0 %2573  ;;  %v5087_v32 = vld [vmem:[#allocation66_spill] sm:$0xff] }
 0x148   : > { %v2576_v1 = vunpack.i.h.bf16 %v2574_v44  ;;  %v2575_v54 = vunpack.i.l.bf16 %v2574_v44 }
 0x149   : > { %v1609_v60 = vsel %vm1582_vm6, %v4190_v61, %v2580_v38  ;;  %v1610_v37 = vsel %vm1582_vm6, %v4186_v6, %v2581_v8  ;;  %2808 = vrot.lane.b32.xlu2 %v3956_v31, %s2913_s8  ;;  %v5088_v8 = vld [vmem:[#allocation54_spill] sm:$0xff]  ;;  %v5089_v38 = vld [vmem:[#allocation55_spill] sm:$0xff] }
 0x14a   : > { %v4306_v47 = vsel %vm1582_vm6, %v4077_v29, %v2575_v54  ;;  %v4310_v34 = vsel %vm1582_vm6, %v4080_v42, %v2576_v1  ;;  %v1767_v42 = vld [vmem:[%s4832_s3 + $0x10] sm:$0x3]  ;;  %v2837_v44 = vpack.i.bf16 %v5089_v38, %v5088_v8  ;;  %v2255_v54 = vld [vmem:[%s4832_s3 + $0x8] sm:$0xff] }
 0x14b   : > { %v2644_v19 = vpop.permute.xlu2 %2643  ;;  %v1777_v41 = vunpack.c.l.b16 %v1767_v42 }
 0x14c   : > { %2803 = vrot.lane.b32.xlu1 %v3912_v9, %s2913_s8  ;;  %v2646_v53 = vunpack.i.h.bf16 %v2644_v19  ;;  %v2645_v61 = vunpack.i.l.bf16 %v2644_v19 }
 0x14d   : > { %2798 = vrot.lane.b32.xlu0 %v5084_v50, %s2914_s9  ;;  %v1780_v49 = vpack.c.b16 %v1777_v41, %v1777_v41 }
 0x14e   : > { %v4317_v6 = vsel %vm1615_vm7, %v1603_v62, %v2645_v61  ;;  %v4320_v31 = vsel %vm1615_vm7, %v1604_v59, %v2646_v53  ;;  %v4322_v29 = vpop.permute.xlu1 %2593 }
 0x14f   : > { %v2589_v24 = vpop.permute.xlu0 %2588  ;;  %v1834_v25 = vsel %vm1832_vm8, %v1780_v49, 0 }
 0x150   : > { %v2591_v9 = vunpack.i.h.bf16 %v2589_v24  ;;  %v2590_v22 = vunpack.i.l.bf16 %v2589_v24  ;;  %1841 = vmatpush.bf16.msra.mxu0 %v1834_v25  ;;  %2256 = vmatpush.bf16.msra.mxu1 %v1834_v25 }
 0x151   : > { %2823 = vrot.lane.b32.xlu2 %v5085_v26, %s2914_s9  ;;  %2257 = vmatpush.bf16.msra.mxu2 %v1834_v25 }
 0x152   : > { %v4331_v62 = vsel %vm1582_vm6, %v4101_v27, %v2590_v22  ;;  %v4335_v59 = vsel %vm1582_vm6, %v4104_v46, %v2591_v9  ;;  %2258 = vmatpush.bf16.msra.mxu3 %v1834_v25 }
 0x153   : > { %v2659_v52 = vpop.permute.xlu2 %2658 }
 0x154   : > { %2818 = vrot.lane.b32.xlu1 %v5086_v7, %s2915_s10  ;;  %v2661_v57 = vunpack.i.h.bf16 %v2659_v52  ;;  %v2660_v33 = vunpack.i.l.bf16 %v2659_v52  ;;  %1842 = vmatpush.bf16.msra.mxu0 %v2255_v54  ;;  %v5091_v52 = vld [vmem:[#allocation63_spill] sm:$0xff] }
 0x155   : > { %2813 = vrot.lane.b32.xlu0 %v5087_v32, %s2915_s10  ;;  %2259 = vmatpush.bf16.msra.mxu1 %v2255_v54  ;;  %v5093_v32 = vld [vmem:[#allocation65_spill] sm:$0xff] }
 0x156   : > { %v4344_v27 = vsel %vm1615_vm7, %v1609_v60, %v2660_v33  ;;  %v4347_v46 = vsel %vm1615_vm7, %v1610_v37, %v2661_v57  ;;  %v2609_v1 = vpop.permute.xlu1 %2608  ;;  %2260 = vmatpush.bf16.msra.mxu2 %v2255_v54  ;;  %2261 = vmatpush.bf16.msra.mxu3 %v2255_v54  ;;  %v5092_v33 = vld [vmem:[#allocation70_spill] sm:$0xff] }
 0x157   : > { %v2611_v19 = vunpack.i.h.bf16 %v2609_v1  ;;  %v2610_v53 = vunpack.i.l.bf16 %v2609_v1  ;;  %v2604_v61 = vpop.permute.xlu0 %2603 }
 0x158   : > { %v2606_v50 = vunpack.i.h.bf16 %v2604_v61  ;;  %v2605_v42 = vunpack.i.l.bf16 %v2604_v61  ;;  %v5095_v61 = vld [vmem:[#allocation68_spill] sm:$0xff] }
 0x159   : > { %v4354_v60 = vsel %vm1615_vm7, %v4246_v11, %v2610_v53  ;;  %v4358_v37 = vsel %vm1615_vm7, %v4242_v30, %v2611_v19  ;;  %2838 = vrot.lane.b32.xlu2 %v2837_v44, %s2913_s8  ;;  %v2254_v11 = vld [vmem:[%s4832_s3] sm:$0xff]  ;;  %v5094_v19 = vld [vmem:[#allocation69_spill] sm:$0xff] }
 0x15a   : > { %v4363_v24 = vsel %vm1615_vm7, %v4125_v0, %v2605_v42  ;;  %v4367_v41 = vsel %vm1615_vm7, %v4128_v51, %v2606_v50  ;;  %1843 = vmatpush.bf16.msra.mxu0 %v2254_v11  ;;  %2262 = vmatpush.bf16.msra.mxu1 %v2254_v11  ;;  %v1105_v53 = vrot.slane %v5094_v19, 2  ;;  %v5096_v50 = vld [vmem:[#allocation23_spill] sm:$0xff] }
 0x15b   : > { %v4372_v9 = vpop.permute.xlu2 %2673  ;;  %2263 = vmatpush.bf16.msra.mxu2 %v2254_v11  ;;  %2264 = vmatpush.bf16.msra.mxu3 %v2254_v11  ;;  %v1108_v42 = vrot.slane %v5096_v50, 2 }
 0x15c   : > { %2833 = vrot.lane.b32.xlu1 %v4066_v14, %s2913_s8  ;;  %v5090_v14 = vld [vmem:[#allocation13_spill] sm:$0xff] }
 0x15d   : > { %2828 = vrot.lane.b32.xlu0 %v3823_v45, %s2914_s9 }
 0x15e   : > { %v2624_v0 = vpop.permute.xlu1 %2623 }
 0x15f   : > { %v2626_v51 = vunpack.i.h.bf16 %v2624_v0  ;;  %v2625_v30 = vunpack.i.l.bf16 %v2624_v0  ;;  %v4378_v22 = vpop.permute.xlu0 %2618  ;;  %v2596_v0 = vunpack.i.h.bf16 %v4322_v29 }
 0x161   : > { %v4382_v26 = vsel %vm1615_vm7, %v4262_v28, %v2625_v30  ;;  %v4386_v49 = vsel %vm1615_vm7, %v4266_v56, %v2626_v51  ;;  %2853 = vrot.lane.b32.xlu2 %v4028_v21, %s2913_s8  ;;  %v2595_v51 = vunpack.i.l.bf16 %v4322_v29  ;;  %v5097_v30 = vld [vmem:[#allocation16_spill] sm:$0xff]  ;;  %v2675_v29 = vunpack.i.l.bf16 %v4372_v9 }
 0x163   : > { %v4390_v45 = vpop.permute.xlu2 %2688 }
 0x164   : > { %2848 = vrot.lane.b32.xlu1 %v5090_v14, %s2914_s9 }
 0x165   : > { %2843 = vrot.lane.b32.xlu0 %v5091_v52, %s2915_s10 }
 0x166   : > { %v2639_v25 = vpop.permute.xlu1 %2638 }
 0x167   : > { %v2641_v7 = vunpack.i.h.bf16 %v2639_v25  ;;  %v2640_v57 = vunpack.i.l.bf16 %v2639_v25  ;;  %v4396_v28 = vpop.permute.xlu0 %2633 }
 0x169   : > { %v4400_v56 = vsel %vm1615_vm7, %v4282_v20, %v2640_v57  ;;  %v4404_v21 = vsel %vm1615_vm7, %v4286_v10, %v2641_v7  ;;  %2868 = vrot.lane.b32.xlu2 %v5092_v33, %s2915_s10  ;;  %v1106_v10 = vrot.slane %v5095_v61, 2 }
 0x16b   : > { %v4410_v8 = vpop.permute.xlu2 %2703  ;;  %v1109_v14 = vsel %vm735_vm2, %v1106_v10, %v1108_v42 }
 0x16c   : > { %2863 = vrot.lane.b32.xlu1 %v5093_v32, %s2915_s10 }
 0x16d   : > { %2858 = vrot.lane.b32.xlu0 %v2837_v44, %s2912_s7 }
 0x16e   : > { %v4413_v38 = vpop.permute.xlu1 %2653 }
 0x16f   : > { %v2649_v1 = vpop.permute.xlu0 %2648 }
 0x170   : > { %v2651_v54 = vunpack.i.h.bf16 %v2649_v1  ;;  %v2650_v20 = vunpack.i.l.bf16 %v2649_v1  ;;  %v1616_v1 = vsel %vm1615_vm7, %v4214_v48, %v2595_v51  ;;  %v2600_v51 = vunpack.i.l.bf16 %v4248_v43 }
 0x171   : > { %2883 = vrot.lane.b32.xlu2 %v4056_v23, %s2913_s8  ;;  %v1107_v23 = vsel %vm735_vm2, %v1105_v53, %v1106_v10 }
 0x172   : > { %v4422_v11 = vsel %vm1615_vm7, %v4197_v3, %v2650_v20  ;;  %v4426_v44 = vsel %vm1615_vm7, %v4200_v5, %v2651_v54  ;;  %v2892_v32 = vpack.i.bf16 %v1109_v14, %v1107_v23  ;;  %v1617_v54 = vsel %vm1615_vm7, %v4218_v17, %v2596_v0 }
 0x173   : > { %v4436_v52 = vpop.permute.xlu2 %2718  ;;  %v5098_v20 = vmov 0.0   ;;  %v2601_v0 = vunpack.i.h.bf16 %v4248_v43  ;;  %v5099_v43 = vld [vmem:[#allocation36_spill] sm:$0xff] }
 0x174   : > { %2878 = vrot.lane.b32.xlu1 %v3897_v13, %s2914_s9  ;;  %v2676_v13 = vunpack.i.h.bf16 %v4372_v9 }
 0x175   : > { %2873 = vrot.lane.b32.xlu0 %v5097_v30, %s2914_s9 }
 0x176   : > { %v2669_v3 = vpop.permute.xlu1 %2668 }
 0x177   : > { %v2671_v5 = vunpack.i.h.bf16 %v2669_v3  ;;  %v2670_v25 = vunpack.i.l.bf16 %v2669_v3  ;;  %v2664_v7 = vpop.permute.xlu0 %2663  ;;  %v2616_v3 = vunpack.i.h.bf16 %v4268_v55 }
 0x178   : > { %v2666_v57 = vunpack.i.h.bf16 %v2664_v7  ;;  %v2665_v33 = vunpack.i.l.bf16 %v2664_v7  ;;  %v1619_v7 = vsel %vm1615_vm7, %v4208_v16, %v2601_v0 }
 0x179   : > { %1266 = vrot.lane.b32.xlu2 %v5098_v20, %s2915_s10  ;;  %v1625_v16 = vsel %vm1615_vm7, %v4236_v18, %v2616_v3 }
 0x17a   : > { %v1649_v19 = vsel %vm1648_vm9, %v1616_v1, %v2665_v33  ;;  %v1650_v53 = vsel %vm1648_vm9, %v1617_v54, %v2666_v57  ;;  %v2690_v57 = vunpack.i.l.bf16 %v4390_v45 }
 0x17b   : > { %v1682_v61 = vsel %vm1681_vm10, %v1649_v19, %v2670_v25  ;;  %v1683_v10 = vsel %vm1681_vm10, %v1650_v53, %v2671_v5  ;;  %v4457_v30 = vpop.permute.xlu2 %2733  ;;  %v2615_v5 = vunpack.i.l.bf16 %v4268_v55  ;;  %v1618_v25 = vsel %vm1615_vm7, %v4204_v2, %v2600_v51  ;;  %v5100_v55 = vld [vmem:[#allocation4_spill] sm:$0xff] }
 0x17c   : > { %2893 = vrot.lane.b32.xlu1 %v2892_v32, %s2912_s7  ;;  %v1715_v9 = vsel %vm1714_vm11, %v1682_v61, %v2675_v29  ;;  %v1716_v48 = vsel %vm1714_vm11, %v1683_v10, %v2676_v13  ;;  %v2691_v13 = vunpack.i.h.bf16 %v4390_v45  ;;  %v2706_v53 = vunpack.i.h.bf16 %v4410_v8 }
 0x17d   : > { %2888 = vrot.lane.b32.xlu0 %v2892_v32, %s2913_s8  ;;  %v1747_v17 = vpack.c.bf16 %v1716_v48, %v1715_v9  ;;  %v1624_v2 = vsel %vm1615_vm7, %v4232_v35, %v2615_v5  ;;  %v2705_v61 = vunpack.i.l.bf16 %v4410_v8 }
 0x17e   : > { %v2684_v50 = vpop.permute.xlu1 %2683 }
 0x17f   : > { %v2679_v42 = vpop.permute.xlu0 %2678  ;;  %2234 = vmatmul.msk.bf16.vlgmr.msra.gmra.mxu0 %vm1783_vm12, %v1747_v17  ;;  %v2686_v33 = vunpack.i.h.bf16 %v2684_v50  ;;  %v2685_v29 = vunpack.i.l.bf16 %v2684_v50 }
 0x180   : > { %v2681_v23 = vunpack.i.h.bf16 %v2679_v42  ;;  %v2680_v14 = vunpack.i.l.bf16 %v2679_v42 }
 0x181   : > { %v1657_v50 = vsel %vm1648_vm9, %v1624_v2, %v2685_v29  ;;  %v1658_v35 = vsel %vm1648_vm9, %v1625_v16, %v2686_v33 }
 0x182   : > { %v1651_v32 = vsel %vm1648_vm9, %v1618_v25, %v2680_v14  ;;  %v1652_v1 = vsel %vm1648_vm9, %v1619_v7, %v2681_v23  ;;  %v2636_v25 = vunpack.i.h.bf16 %v4396_v28  ;;  %v2635_v7 = vunpack.i.l.bf16 %v4396_v28 }
 0x183   : > { %v1684_v10 = vsel %vm1681_vm10, %v1651_v32, %v2690_v57  ;;  %v1685_v9 = vsel %vm1681_vm10, %v1652_v1, %v2691_v13  ;;  %v2749_v8 = vpop.permute.xlu2 %2748  ;;  %v2721_v1 = vunpack.i.h.bf16 %v4436_v52 }
 0x184   : > { %1452 = vrot.lane.b32.xlu1 %v5099_v43, %s2913_s8  ;;  %v1632_v2 = vsel %vm1615_vm7, %v4173_v39, %v2635_v7  ;;  %v1633_v28 = vsel %vm1615_vm7, %v4176_v58, %v2636_v25 }
 0x185   : > { %1359 = vrot.lane.b32.xlu0 %v5100_v55, %s2914_s9  ;;  %v2720_v55 = vunpack.i.l.bf16 %v4436_v52 }
 0x186   : > { %v2699_v54 = vpop.permute.xlu1 %2698 }
 0x187   : > { %v2701_v45 = vunpack.i.h.bf16 %v2699_v54  ;;  %v2700_v20 = vunpack.i.l.bf16 %v2699_v54  ;;  %v2694_v19 = vpop.permute.xlu0 %2693 }
 0x188   : > { %v2696_v48 = vunpack.i.h.bf16 %v2694_v19  ;;  %v2695_v17 = vunpack.i.l.bf16 %v2694_v19 }
 0x189   : > { %v1717_v18 = vsel %vm1714_vm11, %v1684_v10, %v2700_v20  ;;  %v1718_v42 = vsel %vm1714_vm11, %v1685_v9, %v2701_v45 }
 0x18a   : > { %v1690_v0 = vsel %vm1681_vm10, %v1657_v50, %v2695_v17  ;;  %v1691_v51 = vsel %vm1681_vm10, %v1658_v35, %v2696_v48  ;;  %v1748_v23 = vpack.c.bf16 %v1718_v42, %v1717_v18  ;;  %v2621_v48 = vunpack.i.h.bf16 %v4378_v22 }
 0x18b   : > { %v1723_v14 = vsel %vm1714_vm11, %v1690_v0, %v2705_v61  ;;  %v1724_v3 = vsel %vm1714_vm11, %v1691_v51, %v2706_v53  ;;  %v4505_v61 = vpop.permute.xlu2 %2763  ;;  %v2620_v17 = vunpack.i.l.bf16 %v4378_v22  ;;  %v2736_v50 = vunpack.i.h.bf16 %v4457_v30 }
 0x18c   : > { %v1751_v5 = vpack.c.bf16 %v1724_v3, %v1723_v14  ;;  %v2735_v35 = vunpack.i.l.bf16 %v4457_v30  ;;  %v1627_v14 = vsel %vm1615_vm7, %v4152_v15, %v2621_v48  ;;  %v2751_v30 = vunpack.i.h.bf16 %v2749_v8 }
 0x18e   : > { %2238 = vmatmul.msk.bf16.vlgmr.msra.gmra.mxu1 %vm1783_vm12, %v1751_v5  ;;  %v2714_v13 = vpop.permute.xlu1 %2713 }
 0x18f   : > { %v2716_v57 = vunpack.i.h.bf16 %v2714_v13  ;;  %v2715_v43 = vunpack.i.l.bf16 %v2714_v13  ;;  %v2709_v33 = vpop.permute.xlu0 %2708  ;;  %2235 = vmatmul.msk.bf16.gmra.mxu0 %vm1783_vm12, %v1748_v23  ;;  %v1626_v23 = vsel %vm1615_vm7, %v4149_v36, %v2620_v17  ;;  %v2750_v13 = vunpack.i.l.bf16 %v2749_v8 }
 0x190   : > { %v2711_v29 = vunpack.i.h.bf16 %v2709_v33  ;;  %v2710_v32 = vunpack.i.l.bf16 %v2709_v33 }
 0x192   : > { %v1665_v16 = vsel %vm1648_vm9, %v1632_v2, %v2710_v32  ;;  %v1666_v54 = vsel %vm1648_vm9, %v1633_v28, %v2711_v29 }
 0x193   : > { %v1698_v45 = vsel %vm1681_vm10, %v1665_v16, %v2715_v43  ;;  %v1699_v20 = vsel %vm1681_vm10, %v1666_v54, %v2716_v57  ;;  %v2779_v22 = vpop.permute.xlu2 %2778 }
 0x194   : > { %v1731_v19 = vsel %vm1714_vm11, %v1698_v45, %v2720_v55  ;;  %v1732_v53 = vsel %vm1714_vm11, %v1699_v20, %v2721_v1 }
 0x195   : > { %v1755_v52 = vpack.c.bf16 %v1732_v53, %v1731_v19  ;;  %v2656_v53 = vunpack.i.h.bf16 %v4413_v38 }
 0x196   : > { %v2729_v10 = vpop.permute.xlu1 %2728 }
 0x197   : > { %v2724_v39 = vpop.permute.xlu0 %2723  ;;  %2242 = vmatmul.msk.bf16.vlgmr.msra.gmra.mxu2 %vm1783_vm12, %v1755_v52  ;;  %v2731_v18 = vunpack.i.h.bf16 %v2729_v10  ;;  %v2730_v42 = vunpack.i.l.bf16 %v2729_v10  ;;  %v2655_v52 = vunpack.i.l.bf16 %v4413_v38  ;;  %v2766_v10 = vunpack.i.h.bf16 %v4505_v61 }
 0x198   : > { %v2726_v58 = vunpack.i.h.bf16 %v2724_v39  ;;  %v2725_v9 = vunpack.i.l.bf16 %v2724_v39  ;;  %v2765_v39 = vunpack.i.l.bf16 %v4505_v61  ;;  %v2780_v61 = vunpack.i.l.bf16 %v2779_v22 }
 0x199   : > { %v1660_v36 = vsel %vm1648_vm9, %v1627_v14, %v2731_v18 }
 0x19a   : > { %v1653_v0 = vsel %vm1648_vm9, %v4363_v24, %v2725_v9  ;;  %v1654_v51 = vsel %vm1648_vm9, %v4367_v41, %v2726_v58  ;;  %v1659_v41 = vsel %vm1648_vm9, %v1626_v23, %v2730_v42 }
 0x19b   : > { %v1686_v57 = vsel %vm1681_vm10, %v1653_v0, %v2735_v35  ;;  %v1687_v24 = vsel %vm1681_vm10, %v1654_v51, %v2736_v50  ;;  %v2794_v45 = vpop.permute.xlu2 %2793  ;;  %v1640_v50 = vsel %vm1615_vm7, %v4306_v47, %v2655_v52  ;;  %v1641_v35 = vsel %vm1615_vm7, %v4310_v34, %v2656_v53 }
 0x19c   : > { %v2781_v51 = vunpack.i.h.bf16 %v2779_v22 }
 0x19e   : > { %v2744_v3 = vpop.permute.xlu1 %2743 }
 0x19f   : > { %v2746_v5 = vunpack.i.h.bf16 %v2744_v3  ;;  %v2745_v25 = vunpack.i.l.bf16 %v2744_v3  ;;  %v2739_v7 = vpop.permute.xlu0 %2738 }
 0x1a0   : > { %v2741_v43 = vunpack.i.h.bf16 %v2739_v7  ;;  %v2740_v33 = vunpack.i.l.bf16 %v2739_v7 }
 0x1a1   : > { %v1719_v29 = vsel %vm1714_vm11, %v1686_v57, %v2745_v25  ;;  %v1720_v15 = vsel %vm1714_vm11, %v1687_v24, %v2746_v5 }
 0x1a2   : > { %v1692_v32 = vsel %vm1681_vm10, %v1659_v41, %v2740_v33  ;;  %v1693_v1 = vsel %vm1681_vm10, %v1660_v36, %v2741_v43  ;;  %v1749_v55 = vpack.c.bf16 %v1720_v15, %v1719_v29  ;;  %v2796_v29 = vunpack.i.h.bf16 %v2794_v45 }
 0x1a3   : > { %v1725_v8 = vsel %vm1714_vm11, %v1692_v32, %v2750_v13  ;;  %v1726_v2 = vsel %vm1714_vm11, %v1693_v1, %v2751_v30  ;;  %v2809_v22 = vpop.permute.xlu2 %2808  ;;  %v2795_v15 = vunpack.i.l.bf16 %v2794_v45 }
 0x1a4   : > { %2236 = vmatmul.msk.bf16.gmra.mxu0 %vm1783_vm12, %v1749_v55  ;;  %v1752_v28 = vpack.c.bf16 %v1726_v2, %v1725_v8  ;;  %v2810_v53 = vunpack.i.l.bf16 %v2809_v22 }
 0x1a6   : > { %2239 = vmatmul.msk.bf16.gmra.mxu1 %vm1783_vm12, %v1752_v28  ;;  %v2759_v16 = vpop.permute.xlu1 %2758 }
 0x1a7   : > { %v2754_v54 = vpop.permute.xlu0 %2753  ;;  %v2761_v58 = vunpack.i.h.bf16 %v2759_v16  ;;  %v2760_v9 = vunpack.i.l.bf16 %v2759_v16 }
 0x1a8   : > { %v2756_v20 = vunpack.i.h.bf16 %v2754_v54  ;;  %v2755_v19 = vunpack.i.l.bf16 %v2754_v54 }
 0x1a9   : > { %v1674_v5 = vsel %vm1648_vm9, %v1641_v35, %v2761_v58 }
 0x1aa   : > { %v1667_v48 = vsel %vm1648_vm9, %v4400_v56, %v2755_v19  ;;  %v1668_v17 = vsel %vm1648_vm9, %v4404_v21, %v2756_v20  ;;  %v1673_v21 = vsel %vm1648_vm9, %v1640_v50, %v2760_v9  ;;  %v2811_v19 = vunpack.i.h.bf16 %v2809_v22 }
 0x1ab   : > { %v1700_v23 = vsel %vm1681_vm10, %v1667_v48, %v2765_v39  ;;  %v1701_v14 = vsel %vm1681_vm10, %v1668_v17, %v2766_v10  ;;  %v2824_v32 = vpop.permute.xlu2 %2823 }
 0x1ae   : > { %v2774_v18 = vpop.permute.xlu1 %2773 }
 0x1af   : > { %v2776_v38 = vunpack.i.h.bf16 %v2774_v18  ;;  %v2775_v42 = vunpack.i.l.bf16 %v2774_v18  ;;  %v2769_v0 = vpop.permute.xlu0 %2768 }
 0x1b0   : > { %v2771_v56 = vunpack.i.h.bf16 %v2769_v0  ;;  %v2770_v3 = vunpack.i.l.bf16 %v2769_v0 }
 0x1b1   : > { %v1733_v47 = vsel %vm1714_vm11, %v1700_v23, %v2775_v42  ;;  %v1734_v34 = vsel %vm1714_vm11, %v1701_v14, %v2776_v38  ;;  %v2825_v23 = vunpack.i.l.bf16 %v2824_v32 }
 0x1b2   : > { %v1706_v25 = vsel %vm1681_vm10, %v1673_v21, %v2770_v3  ;;  %v1707_v7 = vsel %vm1681_vm10, %v1674_v5, %v2771_v56  ;;  %v1756_v30 = vpack.c.bf16 %v1734_v34, %v1733_v47 }
 0x1b3   : > { %v1739_v13 = vsel %vm1714_vm11, %v1706_v25, %v2780_v61  ;;  %v1740_v57 = vsel %vm1714_vm11, %v1707_v7, %v2781_v51  ;;  %v2826_v61 = vunpack.i.h.bf16 %v2824_v32 }
 0x1b4   : > { %2243 = vmatmul.msk.bf16.gmra.mxu2 %vm1783_vm12, %v1756_v30  ;;  %v1759_v24 = vpack.c.bf16 %v1740_v57, %v1739_v13 }
 0x1b6   : > { %2246 = vmatmul.msk.bf16.vlgmr.msra.gmra.mxu3 %vm1783_vm12, %v1759_v24  ;;  %v2789_v43 = vpop.permute.xlu1 %2788 }
 0x1b7   : > { %v2784_v33 = vpop.permute.xlu0 %2783  ;;  %v2791_v1 = vunpack.i.h.bf16 %v2789_v43  ;;  %v2790_v55 = vunpack.i.l.bf16 %v2789_v43 }
 0x1b8   : > { %v2786_v41 = vunpack.i.h.bf16 %v2784_v33  ;;  %v2785_v36 = vunpack.i.l.bf16 %v2784_v33 }
 0x1b9   : > { %v1661_v58 = vsel %vm1648_vm9, %v4382_v26, %v2790_v55 }
 0x1ba   : > { %v1655_v8 = vsel %vm1648_vm9, %v4354_v60, %v2785_v36  ;;  %v1656_v2 = vsel %vm1648_vm9, %v4358_v37, %v2786_v41  ;;  %v1662_v60 = vsel %vm1648_vm9, %v4386_v49, %v2791_v1  ;;  %v2839_v49 = vpop.permute.xlu2 %2838 }
 0x1bb   : > { %v1688_v52 = vsel %vm1681_vm10, %v1655_v8, %v2795_v15  ;;  %v1689_v10 = vsel %vm1681_vm10, %v1656_v2, %v2796_v29  ;;  %v2841_v7 = vunpack.i.h.bf16 %v2839_v49  ;;  %v2840_v30 = vunpack.i.l.bf16 %v2839_v49 }
 0x1be   : > { %v2804_v28 = vpop.permute.xlu1 %2803 }
 0x1bf   : > { %v2806_v16 = vunpack.i.h.bf16 %v2804_v28  ;;  %v2805_v54 = vunpack.i.l.bf16 %v2804_v28  ;;  %v2799_v20 = vpop.permute.xlu0 %2798 }
 0x1c0   : > { %v2801_v45 = vunpack.i.h.bf16 %v2799_v20  ;;  %v2800_v39 = vunpack.i.l.bf16 %v2799_v20 }
 0x1c1   : > { %v1721_v37 = vsel %vm1714_vm11, %v1688_v52, %v2805_v54  ;;  %v1722_v9 = vsel %vm1714_vm11, %v1689_v10, %v2806_v16 }
 0x1c2   : > { %v1694_v48 = vsel %vm1681_vm10, %v1661_v58, %v2800_v39  ;;  %v1695_v17 = vsel %vm1681_vm10, %v1662_v60, %v2801_v45  ;;  %v1750_v50 = vpack.c.bf16 %v1722_v9, %v1721_v37  ;;  %v2854_v43 = vpop.permute.xlu2 %2853 }
 0x1c3   : > { %v1727_v35 = vsel %vm1714_vm11, %v1694_v48, %v2810_v53  ;;  %v1728_v18 = vsel %vm1714_vm11, %v1695_v17, %v2811_v19  ;;  %v2856_v54 = vunpack.i.h.bf16 %v2854_v43  ;;  %v2855_v20 = vunpack.i.l.bf16 %v2854_v43 }
 0x1c4   : > { %2237 = vmatmul.msk.bf16.gmra.mxu0 %vm1783_vm12, %v1750_v50  ;;  %v1753_v38 = vpack.c.bf16 %v1728_v18, %v1727_v35 }
 0x1c6   : > { %2240 = vmatmul.msk.bf16.gmra.mxu1 %vm1783_vm12, %v1753_v38  ;;  %v2819_v26 = vpop.permute.xlu1 %2818 }
 0x1c7   : > { %v2814_v42 = vpop.permute.xlu0 %2813  ;;  %v2821_v14 = vunpack.i.h.bf16 %v2819_v26  ;;  %v2820_v56 = vunpack.i.l.bf16 %v2819_v26 }
 0x1c8   : > { %v2816_v0 = vunpack.i.h.bf16 %v2814_v42  ;;  %v2815_v51 = vunpack.i.l.bf16 %v2814_v42 }
 0x1c9   : > { %v1675_v33 = vsel %vm1648_vm9, %v4344_v27, %v2820_v56 }
 0x1ca   : > { %v1669_v3 = vsel %vm1648_vm9, %v4317_v6, %v2815_v51  ;;  %v1670_v21 = vsel %vm1648_vm9, %v4320_v31, %v2816_v0  ;;  %v1676_v6 = vsel %vm1648_vm9, %v4347_v46, %v2821_v14  ;;  %v2869_v52 = vpop.permute.xlu2 %2868 }
 0x1cb   : > { %v1702_v22 = vsel %vm1681_vm10, %v1669_v3, %v2825_v23  ;;  %v1703_v13 = vsel %vm1681_vm10, %v1670_v21, %v2826_v61  ;;  %v2871_v14 = vunpack.i.h.bf16 %v2869_v52  ;;  %v2870_v56 = vunpack.i.l.bf16 %v2869_v52 }
 0x1ce   : > { %v2834_v5 = vpop.permute.xlu1 %2833 }
 0x1cf   : > { %v2836_v47 = vunpack.i.h.bf16 %v2834_v5  ;;  %v2835_v34 = vunpack.i.l.bf16 %v2834_v5  ;;  %v2829_v25 = vpop.permute.xlu0 %2828 }
 0x1d0   : > { %v2831_v57 = vunpack.i.h.bf16 %v2829_v25  ;;  %v2830_v24 = vunpack.i.l.bf16 %v2829_v25 }
 0x1d1   : > { %v1735_v31 = vsel %vm1714_vm11, %v1702_v22, %v2835_v34  ;;  %v1736_v41 = vsel %vm1714_vm11, %v1703_v13, %v2836_v47 }
 0x1d2   : > { %v1708_v36 = vsel %vm1681_vm10, %v1675_v33, %v2830_v24  ;;  %v1709_v29 = vsel %vm1681_vm10, %v1676_v6, %v2831_v57  ;;  %v1757_v15 = vpack.c.bf16 %v1736_v41, %v1735_v31  ;;  %v2884_v48 = vpop.permute.xlu2 %2883 }
 0x1d3   : > { %v1741_v32 = vsel %vm1714_vm11, %v1708_v36, %v2840_v30  ;;  %v1742_v1 = vsel %vm1714_vm11, %v1709_v29, %v2841_v7  ;;  %v2885_v18 = vunpack.i.l.bf16 %v2884_v48 }
 0x1d4   : > { %2244 = vmatmul.msk.bf16.gmra.mxu2 %vm1783_vm12, %v1757_v15  ;;  %v1760_v55 = vpack.c.bf16 %v1742_v1, %v1741_v32 }
 0x1d6   : > { %2247 = vmatmul.msk.bf16.gmra.mxu3 %vm1783_vm12, %v1760_v55  ;;  %v2849_v27 = vpop.permute.xlu1 %2848 }
 0x1d7   : > { %v2851_v46 = vunpack.i.h.bf16 %v2849_v27  ;;  %v2850_v8 = vunpack.i.l.bf16 %v2849_v27  ;;  %v2844_v2 = vpop.permute.xlu0 %2843 }
 0x1d8   : > { %v2846_v28 = vunpack.i.h.bf16 %v2844_v2  ;;  %v2845_v16 = vunpack.i.l.bf16 %v2844_v2 }
 0x1da   : > { %v1663_v19 = vsel %vm1648_vm9, %v4293_v4, %v2845_v16  ;;  %v1664_v53 = vsel %vm1648_vm9, %v4296_v12, %v2846_v28  ;;  %v2886_v12 = vunpack.i.h.bf16 %v2884_v48  ;;  %v1267_v41 = vpop.permute.xlu2 %1266 }
 0x1db   : > { %v1696_v10 = vsel %vm1681_vm10, %v1663_v19, %v2850_v8  ;;  %v1697_v45 = vsel %vm1681_vm10, %v1664_v53, %v2851_v46 }
 0x1dc   : > { %v1729_v39 = vsel %vm1714_vm11, %v1696_v10, %v2855_v20  ;;  %v1730_v58 = vsel %vm1714_vm11, %v1697_v45, %v2856_v54 }
 0x1dd   : > { %v1754_v60 = vpack.c.bf16 %v1730_v58, %v1729_v39 }
 0x1de   : > { %v2864_v37 = vpop.permute.xlu1 %2863 }
 0x1df   : > { %v2859_v9 = vpop.permute.xlu0 %2858  ;;  %2241 = vmatmul.msk.bf16.gmra.mxu1 %vm1783_vm12, %v1754_v60  ;;  %v2866_v17 = vunpack.i.h.bf16 %v2864_v37  ;;  %v2865_v4 = vunpack.i.l.bf16 %v2864_v37 }
 0x1e0   : > { %v2861_v38 = vunpack.i.h.bf16 %v2859_v9  ;;  %v2860_v26 = vunpack.i.l.bf16 %v2859_v9 }
 0x1e1   : > { %v1671_v0 = vsel %vm1648_vm9, %v4422_v11, %v2865_v4  ;;  %v1672_v51 = vsel %vm1648_vm9, %v4426_v44, %v2866_v17 }
 0x1e2   : > { %v1644_v5 = vsel %vm1615_vm7, %v4225_v63, %v2860_v26  ;;  %v1645_v47 = vsel %vm1615_vm7, %v4228_v40, %v2861_v38 }
 0x1e3   : > { %v1677_v7 = vsel %vm1648_vm9, %v1644_v5, %v2870_v56  ;;  %v1678_v30 = vsel %vm1648_vm9, %v1645_v47, %v2871_v14 }
 0x1e6   : > { %v2879_v50 = vpop.permute.xlu1 %2878 }
 0x1e7   : > { %v2874_v35 = vpop.permute.xlu0 %2873  ;;  %v2881_v34 = vunpack.i.h.bf16 %v2879_v50  ;;  %v2880_v25 = vunpack.i.l.bf16 %v2879_v50 }
 0x1e8   : > { %v2876_v49 = vunpack.i.h.bf16 %v2874_v35  ;;  %v2875_v42 = vunpack.i.l.bf16 %v2874_v35 }
 0x1e9   : > { %v1710_v63 = vsel %vm1681_vm10, %v1677_v7, %v2880_v25  ;;  %v1711_v33 = vsel %vm1681_vm10, %v1678_v30, %v2881_v34 }
 0x1ea   : > { %v1704_v61 = vsel %vm1681_vm10, %v1671_v0, %v2875_v42  ;;  %v1705_v23 = vsel %vm1681_vm10, %v1672_v51, %v2876_v49 }
 0x1eb   : > { %v1737_v3 = vsel %vm1714_vm11, %v1704_v61, %v2885_v18  ;;  %v1738_v21 = vsel %vm1714_vm11, %v1705_v23, %v2886_v12 }
 0x1ec   : > { %v1758_v11 = vpack.c.bf16 %v1738_v21, %v1737_v3 }
 0x1ee   : > { %2245 = vmatmul.msk.bf16.gmra.mxu2 %vm1783_vm12, %v1758_v11  ;;  %v2894_v44 = vpop.permute.xlu1 %2893 }
 0x1ef   : > { %v2889_v22 = vpop.permute.xlu0 %2888  ;;  %v2896_v13 = vunpack.i.h.bf16 %v2894_v44  ;;  %v2895_v57 = vunpack.i.l.bf16 %v2894_v44 }
 0x1f0   : > { %v2891_v24 = vunpack.i.h.bf16 %v2889_v22  ;;  %v2890_v43 = vunpack.i.l.bf16 %v2889_v22 }
 0x1f1   : > { %v1646_v36 = vsel %vm1615_vm7, %v4331_v62, %v2895_v57  ;;  %v1647_v29 = vsel %vm1615_vm7, %v4335_v59, %v2896_v13 }
 0x1f2   : > { %v1743_v40 = vsel %vm1714_vm11, %v1710_v63, %v2890_v43  ;;  %v1744_v6 = vsel %vm1714_vm11, %v1711_v33, %v2891_v24  ;;  %v1679_v32 = vsel %vm1648_vm9, %v1646_v36, %v1267_v41  ;;  %v1680_v1 = vsel %vm1648_vm9, %v1647_v29, %v1267_v41 }
 0x1f3   : > { %v1761_v31 = vpack.c.bf16 %v1744_v6, %v1743_v40 }
 0x1f5   : > { %2248 = vmatmul.msk.bf16.gmra.mxu3 %vm1783_vm12, %v1761_v31 }
 0x1f6   : > { %v1453_v15 = vpop.permute.xlu1 %1452 }
 0x1f7   : > { %v1360_v55 = vpop.permute.xlu0 %1359 }
 0x1f8   : > { %v1712_v27 = vsel %vm1681_vm10, %v1679_v32, %v1360_v55  ;;  %v1713_v46 = vsel %vm1681_vm10, %v1680_v1, %v1360_v55 }
 0x1f9   : > { %v1745_v8 = vsel %vm1714_vm11, %v1712_v27, %v1453_v15  ;;  %v1746_v2 = vsel %vm1714_vm11, %v1713_v46, %v1453_v15 }
 0x1fa   : > { %v1762_v62 = vpack.c.bf16 %v1746_v2, %v1745_v8 }
 0x1fc   : > { %v1845_v59 = vpop.f32.mrf.mxu0 }
 0x1fd   : > { %1925 = vst.msk [vmem:[%s4636_s21] sm:$0xff] %vm1485_vm4, %v1845_v59  ;;  %v2026_v28 = vmul.f32 %v1845_v59, %v1845_v59  ;;  %v1957_v54 = vsel %vm1485_vm4, %v1845_v59, 0.0 }
 0x1ff   : > { %v2058_v52 = vsel %vm1485_vm4, %v2026_v28, 0.0 }
 0x204   : > { %v1847_v16 = vpop.f32.mrf.mxu0 }
 0x205   : > { %1926 = vst.msk [vmem:[%s4636_s21 + $0x8] sm:$0xff] %vm1485_vm4, %v1847_v16  ;;  %v1958_v20 = vsel %vm1485_vm4, %v1847_v16, 0.0  ;;  %v2027_v19 = vmul.f32 %v1847_v16, %v1847_v16  ;;  %2249 = vmatmul.msk.bf16.gmra.mxu3 %vm1783_vm12, %v1762_v62 }
 0x206   : > { %v1959_v53 = vadd.f32 %v1958_v20, %v1957_v54 }
 0x207   : > { %v2059_v10 = vsel %vm1485_vm4, %v2027_v19, 0.0 }
 0x208   : > { %v2060_v45 = vadd.f32 %v2059_v10, %v2058_v52 }
 0x20b   : > { %v4647_v39 = vpop.f32.mrf.mxu1 }
 0x20c   : > { %1933 = vst.msk [vmem:[%s4636_s21 + $0x40] sm:$0xff] %vm1485_vm4, %v4647_v39  ;;  %v1850_v58 = vpop.f32.mrf.mxu0  ;;  %v2034_v31 = vmul.f32 %v4647_v39, %v4647_v39  ;;  %v1972_v1 = vsel %vm1485_vm4, %v4647_v39, 0.0 }
 0x20d   : > { %1927 = vst.msk [vmem:[%s4636_s21 + $0x10] sm:$0xff] %vm1485_vm4, %v1850_v58  ;;  %v1960_v60 = vsel %vm1485_vm4, %v1850_v58, 0.0  ;;  %v2028_v37 = vmul.f32 %v1850_v58, %v1850_v58 }
 0x20e   : > { %v1961_v9 = vadd.f32 %v1960_v60, %v1959_v53  ;;  %v2073_v2 = vsel %vm1485_vm4, %v2034_v31, 0.0 }
 0x20f   : > { %v2061_v48 = vsel %vm1485_vm4, %v2028_v37, 0.0 }
 0x210   : > { %v2062_v17 = vadd.f32 %v2061_v48, %v2060_v45 }
 0x213   : > { %v1867_v4 = vpop.f32.mrf.mxu1 }
 0x214   : > { %1934 = vst.msk [vmem:[%s4636_s21 + $0x48] sm:$0xff] %vm1485_vm4, %v1867_v4  ;;  %v1852_v50 = vpop.f32.mrf.mxu0  ;;  %v2035_v55 = vmul.f32 %v1867_v4, %v1867_v4  ;;  %v1974_v62 = vsel %vm1485_vm4, %v1867_v4, 0.0 }
 0x215   : > { %1928 = vst.msk [vmem:[%s4636_s21 + $0x18] sm:$0xff] %vm1485_vm4, %v1852_v50  ;;  %v1962_v35 = vsel %vm1485_vm4, %v1852_v50, 0.0  ;;  %v2029_v12 = vmul.f32 %v1852_v50, %v1852_v50 }
 0x216   : > { %v1963_v18 = vadd.f32 %v1962_v35, %v1961_v9  ;;  %v2075_v54 = vsel %vm1485_vm4, %v2035_v55, 0.0 }
 0x217   : > { %v2063_v38 = vsel %vm1485_vm4, %v2029_v12, 0.0 }
 0x218   : > { %v2064_v26 = vadd.f32 %v2063_v38, %v2062_v17 }
 0x21a   : > { %v4662_v49 = vpop.f32.mrf.mxu2 }
 0x21b   : > { %1941 = vst.msk [vmem:[%s4636_s21 + $0x80] sm:$0xff] %vm1485_vm4, %v4662_v49 }
 0x221   : > { %v1855_v42 = vpop.f32.mrf.mxu0 }
 0x222   : > { %1929 = vst.msk [vmem:[%s4636_s21 + $0x20] sm:$0xff] %vm1485_vm4, %v1855_v42  ;;  %v4669_v0 = vpop.f32.mrf.mxu2  ;;  %v2030_v21 = vmul.f32 %v1855_v42, %v1855_v42  ;;  %v1964_v11 = vsel %vm1485_vm4, %v1855_v42, 0.0 }
 0x223   : > { %1942 = vst.msk [vmem:[%s4636_s21 + $0x88] sm:$0xff] %vm1485_vm4, %v4669_v0  ;;  %v1870_v51 = vpop.f32.mrf.mxu1  ;;  %v1965_v22 = vadd.f32 %v1964_v11, %v1963_v18  ;;  %v1990_v31 = vsel %vm1485_vm4, %v4669_v0, 0.0 }
 0x224   : > { %1935 = vst.msk [vmem:[%s4636_s21 + $0x50] sm:$0xff] %vm1485_vm4, %v1870_v51  ;;  %v2065_v44 = vsel %vm1485_vm4, %v2030_v21, 0.0  ;;  %v2036_v59 = vmul.f32 %v1870_v51, %v1870_v51  ;;  %v1976_v20 = vsel %vm1485_vm4, %v1870_v51, 0.0 }
 0x225   : > { %v2066_v24 = vadd.f32 %v2065_v44, %v2064_v26 }
 0x226   : > { %v2077_v52 = vsel %vm1485_vm4, %v2036_v59, 0.0 }
 0x229   : > { %v1857_v61 = vpop.f32.mrf.mxu0 }
 0x22a   : > { %1930 = vst.msk [vmem:[%s4636_s21 + $0x28] sm:$0xff] %vm1485_vm4, %v1857_v61  ;;  %v2031_v34 = vmul.f32 %v1857_v61, %v1857_v61  ;;  %v1966_v7 = vsel %vm1485_vm4, %v1857_v61, 0.0 }
 0x22b   : > { %v1872_v23 = vpop.f32.mrf.mxu1  ;;  %v1967_v43 = vadd.f32 %v1966_v7, %v1965_v22  ;;  %v2042_v7 = vmul.f32 %v4662_v49, %v4662_v49 }
 0x22c   : > { %1936 = vst.msk [vmem:[%s4636_s21 + $0x58] sm:$0xff] %vm1485_vm4, %v1872_v23  ;;  %v2067_v13 = vsel %vm1485_vm4, %v2031_v34, 0.0  ;;  %v2037_v45 = vmul.f32 %v1872_v23, %v1872_v23  ;;  %v1978_v58 = vsel %vm1485_vm4, %v1872_v23, 0.0 }
 0x22d   : > { %v2068_v33 = vadd.f32 %v2067_v13, %v2066_v24  ;;  %v1988_v24 = vsel %vm1485_vm4, %v4662_v49, 0.0 }
 0x22e   : > { %v2079_v9 = vsel %vm1485_vm4, %v2037_v45, 0.0 }
 0x237   : > { %v4680_v14 = vpop.f32.mrf.mxu2 }
 0x238   : > { %1943 = vst.msk [vmem:[%s4636_s21 + $0x90] sm:$0xff] %vm1485_vm4, %v4680_v14  ;;  %v1992_v49 = vsel %vm1485_vm4, %v4680_v14, 0.0 }
 0x239   : > { %v4685_v56 = vpop.f32.mrf.mxu3 }
 0x23a   : > { %1949 = vst.msk [vmem:[%s4636_s21 + $0xc0] sm:$0xff] %vm1485_vm4, %v4685_v56 }
 0x23f   : > { %v4690_v3 = vpop.f32.mrf.mxu2 }
 0x240   : > { %1944 = vst.msk [vmem:[%s4636_s21 + $0x98] sm:$0xff] %vm1485_vm4, %v4690_v3 }
 0x241   : > { %v4695_v5 = vpop.f32.mrf.mxu3  ;;  %v1860_v47 = vpop.f32.mrf.mxu0 }
 0x242   : > { %1950 = vst.msk [vmem:[%s4636_s21 + $0xc8] sm:$0xff] %vm1485_vm4, %v4695_v5  ;;  %v2032_v30 = vmul.f32 %v1860_v47, %v1860_v47  ;;  %v1968_v57 = vsel %vm1485_vm4, %v1860_v47, 0.0 }
 0x243   : > { %1931 = vst.msk [vmem:[%s4636_s21 + $0x30] sm:$0xff] %vm1485_vm4, %v1860_v47  ;;  %v1875_v25 = vpop.f32.mrf.mxu1  ;;  %v1969_v40 = vadd.f32 %v1968_v57, %v1967_v43  ;;  %v2043_v43 = vmul.f32 %v4669_v0, %v4669_v0  ;;  %v1994_v0 = vsel %vm1485_vm4, %v4690_v3, 0.0 }
 0x244   : > { %1937 = vst.msk [vmem:[%s4636_s21 + $0x60] sm:$0xff] %vm1485_vm4, %v1875_v25  ;;  %v2069_v63 = vsel %vm1485_vm4, %v2032_v30, 0.0  ;;  %v2038_v48 = vmul.f32 %v1875_v25, %v1875_v25  ;;  %v1980_v50 = vsel %vm1485_vm4, %v1875_v25, 0.0 }
 0x245   : > { %v2070_v29 = vadd.f32 %v2069_v63, %v2068_v33 }
 0x246   : > { %v2081_v12 = vsel %vm1485_vm4, %v2038_v48, 0.0 }
 0x249   : > { %v1862_v6 = vpop.f32.mrf.mxu0 }
 0x24a   : > { %1932 = vst.msk [vmem:[%s4636_s21 + $0x38] sm:$0xff] %vm1485_vm4, %v1862_v6  ;;  %v1970_v41 = vsel %vm1485_vm4, %v1862_v6, 0.0  ;;  %v2033_v36 = vmul.f32 %v1862_v6, %v1862_v6  ;;  %v2089_v6 = vsel %vm1485_vm4, %v2042_v7, 0.0 }
 0x24b   : > { %v1971_v15 = vadd.f32 %v1970_v41, %v1969_v40  ;;  %v1877_v32 = vpop.f32.mrf.mxu1  ;;  %v2044_v41 = vmul.f32 %v4680_v14, %v4680_v14 }
 0x24c   : > { %v2071_v27 = vsel %vm1485_vm4, %v2033_v36, 0.0  ;;  %1938 = vst.msk [vmem:[%s4636_s21 + $0x68] sm:$0xff] %vm1485_vm4, %v1877_v32  ;;  %v2039_v18 = vmul.f32 %v1877_v32, %v1877_v32  ;;  %v1982_v51 = vsel %vm1485_vm4, %v1877_v32, 0.0  ;;  %v2045_v32 = vmul.f32 %v4690_v3, %v4690_v3 }
 0x24d   : > { %v1973_v46 = vadd.f32 %v1972_v1, %v1971_v15  ;;  %v2072_v8 = vadd.f32 %v2071_v27, %v2070_v29  ;;  %v2091_v15 = vsel %vm1485_vm4, %v2043_v43, 0.0  ;;  %v2093_v27 = vsel %vm1485_vm4, %v2044_v41, 0.0 }
 0x24e   : > { %v2083_v47 = vsel %vm1485_vm4, %v2039_v18, 0.0  ;;  %v2004_v18 = vsel %vm1485_vm4, %v4685_v56, 0.0 }
 0x24f   : > { %v1975_v28 = vadd.f32 %v1974_v62, %v1973_v46  ;;  %v2074_v16 = vadd.f32 %v2073_v2, %v2072_v8  ;;  %v2095_v62 = vsel %vm1485_vm4, %v2045_v32, 0.0 }
 0x251   : > { %v1977_v19 = vadd.f32 %v1976_v20, %v1975_v28  ;;  %v2076_v53 = vadd.f32 %v2075_v54, %v2074_v16 }
 0x253   : > { %v2078_v10 = vadd.f32 %v2077_v52, %v2076_v53  ;;  %v1979_v37 = vadd.f32 %v1978_v58, %v1977_v19 }
 0x255   : > { %v2080_v17 = vadd.f32 %v2079_v9, %v2078_v10  ;;  %v1981_v35 = vadd.f32 %v1980_v50, %v1979_v37 }
 0x257   : > { %v1895_v39 = vpop.f32.mrf.mxu2  ;;  %v2082_v42 = vadd.f32 %v2081_v12, %v2080_v17  ;;  %v1983_v21 = vadd.f32 %v1982_v51, %v1981_v35  ;;  %v2050_v17 = vmul.f32 %v4685_v56, %v4685_v56 }
 0x258   : > { %1945 = vst.msk [vmem:[%s4636_s21 + $0xa0] sm:$0xff] %vm1485_vm4, %v1895_v39  ;;  %v2046_v46 = vmul.f32 %v1895_v39, %v1895_v39  ;;  %v1996_v59 = vsel %vm1485_vm4, %v1895_v39, 0.0 }
 0x259   : > { %v4728_v60 = vpop.f32.mrf.mxu3  ;;  %v2084_v34 = vadd.f32 %v2083_v47, %v2082_v42 }
 0x25a   : > { %1951 = vst.msk [vmem:[%s4636_s21 + $0xd0] sm:$0xff] %vm1485_vm4, %v4728_v60  ;;  %v2097_v54 = vsel %vm1485_vm4, %v2046_v46, 0.0  ;;  %v2052_v47 = vmul.f32 %v4728_v60, %v4728_v60 }
 0x25c   : > { %v1880_v4 = vpop.f32.mrf.mxu1 }
 0x25d   : > { %1939 = vst.msk [vmem:[%s4636_s21 + $0x70] sm:$0xff] %vm1485_vm4, %v1880_v4  ;;  %v2040_v38 = vmul.f32 %v1880_v4, %v1880_v4  ;;  %v1984_v61 = vsel %vm1485_vm4, %v1880_v4, 0.0 }
 0x25e   : > { %v1985_v25 = vadd.f32 %v1984_v61, %v1983_v21  ;;  %v2105_v61 = vsel %vm1485_vm4, %v2050_v17, 0.0  ;;  %v2006_v21 = vsel %vm1485_vm4, %v4695_v5, 0.0 }
 0x25f   : > { %v1897_v26 = vpop.f32.mrf.mxu2  ;;  %v2085_v11 = vsel %vm1485_vm4, %v2040_v38, 0.0  ;;  %v2051_v38 = vmul.f32 %v4695_v5, %v4695_v5  ;;  %v2109_v5 = vsel %vm1485_vm4, %v2052_v47, 0.0 }
 0x260   : > { %1946 = vst.msk [vmem:[%s4636_s21 + $0xa8] sm:$0xff] %vm1485_vm4, %v1897_v26  ;;  %v2086_v13 = vadd.f32 %v2085_v11, %v2084_v34  ;;  %v2047_v20 = vmul.f32 %v1897_v26, %v1897_v26  ;;  %v1998_v3 = vsel %vm1485_vm4, %v1897_v26, 0.0 }
 0x261   : > { %v4742_v23 = vpop.f32.mrf.mxu3  ;;  %v2107_v56 = vsel %vm1485_vm4, %v2051_v38, 0.0 }
 0x262   : > { %1952 = vst.msk [vmem:[%s4636_s21 + $0xd8] sm:$0xff] %vm1485_vm4, %v4742_v23  ;;  %v2099_v10 = vsel %vm1485_vm4, %v2047_v20, 0.0  ;;  %v2053_v7 = vmul.f32 %v4742_v23, %v4742_v23 }
 0x264   : > { %v1882_v44 = vpop.f32.mrf.mxu1  ;;  %v2111_v43 = vsel %vm1485_vm4, %v2053_v7, 0.0 }
 0x265   : > { %1940 = vst.msk [vmem:[%s4636_s21 + $0x78] sm:$0xff] %vm1485_vm4, %v1882_v44  ;;  %v1986_v30 = vsel %vm1485_vm4, %v1882_v44, 0.0  ;;  %v2041_v22 = vmul.f32 %v1882_v44, %v1882_v44 }
 0x266   : > { %v1987_v57 = vadd.f32 %v1986_v30, %v1985_v25  ;;  %v2008_v25 = vsel %vm1485_vm4, %v4728_v60, 0.0 }
 0x267   : > { %v2087_v63 = vsel %vm1485_vm4, %v2041_v22, 0.0 }
 0x268   : > { %v1989_v33 = vadd.f32 %v1988_v24, %v1987_v57  ;;  %v2088_v40 = vadd.f32 %v2087_v63, %v2086_v13  ;;  %v2010_v13 = vsel %vm1485_vm4, %v4742_v23, 0.0 }
 0x26a   : > { %v1991_v36 = vadd.f32 %v1990_v31, %v1989_v33  ;;  %v2090_v29 = vadd.f32 %v2089_v6, %v2088_v40 }
 0x26c   : > { %v1993_v1 = vadd.f32 %v1992_v49, %v1991_v36  ;;  %v2092_v55 = vadd.f32 %v2091_v15, %v2090_v29 }
 0x26e   : > { %v2094_v8 = vadd.f32 %v2093_v27, %v2092_v55  ;;  %v1995_v2 = vadd.f32 %v1994_v0, %v1993_v1 }
 0x270   : > { %v2096_v28 = vadd.f32 %v2095_v62, %v2094_v8  ;;  %v1997_v16 = vadd.f32 %v1996_v59, %v1995_v2 }
 0x271   : > { %v1900_v14 = vpop.f32.mrf.mxu2 }
 0x272   : > { %1947 = vst.msk [vmem:[%s4636_s21 + $0xb0] sm:$0xff] %vm1485_vm4, %v1900_v14  ;;  %v2098_v19 = vadd.f32 %v2097_v54, %v2096_v28  ;;  %v2048_v53 = vmul.f32 %v1900_v14, %v1900_v14  ;;  %v1999_v52 = vadd.f32 %v1998_v3, %v1997_v16  ;;  %v2000_v45 = vsel %vm1485_vm4, %v1900_v14, 0.0 }
 0x274   : > { %v2100_v39 = vadd.f32 %v2099_v10, %v2098_v19  ;;  %v2101_v58 = vsel %vm1485_vm4, %v2048_v53, 0.0  ;;  %v2001_v9 = vadd.f32 %v2000_v45, %v1999_v52 }
 0x276   : > { %v2102_v35 = vadd.f32 %v2101_v58, %v2100_v39 }
 0x278   : > { %v1915_v37 = vpop.f32.mrf.mxu3 }
 0x279   : > { %1953 = vst.msk [vmem:[%s4636_s21 + $0xe0] sm:$0xff] %vm1485_vm4, %v1915_v37  ;;  %v1902_v48 = vpop.f32.mrf.mxu2  ;;  %v2054_v63 = vmul.f32 %v1915_v37, %v1915_v37  ;;  %v2012_v33 = vsel %vm1485_vm4, %v1915_v37, 0.0 }
 0x27a   : > { %1948 = vst.msk [vmem:[%s4636_s21 + $0xb8] sm:$0xff] %vm1485_vm4, %v1902_v48  ;;  %v2002_v4 = vsel %vm1485_vm4, %v1902_v48, 0.0  ;;  %v2049_v50 = vmul.f32 %v1902_v48, %v1902_v48 }
 0x27b   : > { %v2003_v12 = vadd.f32 %v2002_v4, %v2001_v9  ;;  %v2113_v31 = vsel %vm1485_vm4, %v2054_v63, 0.0 }
 0x27c   : > { %v2103_v26 = vsel %vm1485_vm4, %v2049_v50, 0.0 }
 0x27d   : > { %v2005_v42 = vadd.f32 %v2004_v18, %v2003_v12  ;;  %v2104_v51 = vadd.f32 %v2103_v26, %v2102_v35 }
 0x27f   : > { %v2007_v11 = vadd.f32 %v2006_v21, %v2005_v42  ;;  %v2106_v34 = vadd.f32 %v2105_v61, %v2104_v51 }
 0x280   : > { %v1917_v44 = vpop.f32.mrf.mxu3 }
 0x281   : > { %v2009_v30 = vadd.f32 %v2008_v25, %v2007_v11  ;;  %v2108_v22 = vadd.f32 %v2107_v56, %v2106_v34  ;;  %1954 = vst.msk [vmem:[%s4636_s21 + $0xe8] sm:$0xff] %vm1485_vm4, %v1917_v44  ;;  %v2055_v41 = vmul.f32 %v1917_v44, %v1917_v44  ;;  %v2014_v29 = vsel %vm1485_vm4, %v1917_v44, 0.0 }
 0x283   : > { %v2110_v57 = vadd.f32 %v2109_v5, %v2108_v22  ;;  %v2011_v24 = vadd.f32 %v2010_v13, %v2009_v30  ;;  %v2115_v49 = vsel %vm1485_vm4, %v2055_v41, 0.0 }
 0x285   : > { %v2112_v60 = vadd.f32 %v2111_v43, %v2110_v57  ;;  %v2013_v40 = vadd.f32 %v2012_v33, %v2011_v24 }
 0x287   : > { %v2114_v36 = vadd.f32 %v2113_v31, %v2112_v60  ;;  %v2015_v15 = vadd.f32 %v2014_v29, %v2013_v40 }
 0x288   : > { %v1920_v6 = vpop.f32.mrf.mxu3 }
 0x289   : > { %1955 = vst.msk [vmem:[%s4636_s21 + $0xf0] sm:$0xff] %vm1485_vm4, %v1920_v6  ;;  %v2056_v23 = vmul.f32 %v1920_v6, %v1920_v6  ;;  %v2016_v32 = vsel %vm1485_vm4, %v1920_v6, 0.0  ;;  %v2116_v1 = vadd.f32 %v2115_v49, %v2114_v36 }
 0x28a   : > { %v2017_v27 = vadd.f32 %v2016_v32, %v2015_v15 }
 0x28b   : > { %v2117_v55 = vsel %vm1485_vm4, %v2056_v23, 0.0 }
 0x28c   : > { %v2118_v2 = vadd.f32 %v2117_v55, %v2116_v1 }
 0x290   : > { %v1922_v0 = vpop.f32.mrf.mxu3 }
 0x291   : > { %1956 = vst.msk [vmem:[%s4636_s21 + $0xf8] sm:$0xff] %vm1485_vm4, %v1922_v0  ;;  %v2018_v46 = vsel %vm1485_vm4, %v1922_v0, 0.0  ;;  %v2057_v8 = vmul.f32 %v1922_v0, %v1922_v0 }
 0x292   : > { %v2019_v62 = vadd.f32 %v2018_v46, %v2017_v27 }
 0x293   : > { %v2119_v59 = vsel %vm1485_vm4, %v2057_v8, 0.0 }
 0x294   : > { %v2020_v28 = vrot.slane %v2019_v62, 4  ;;  %v2120_v14 = vadd.f32 %v2119_v59, %v2118_v2 }
 0x296   : > { %v2021_v16 = vadd.f32 %v2020_v28, %v2019_v62  ;;  %v2121_v54 = vrot.slane %v2120_v14, 4 }
 0x298   : > { %v2022_v20 = vrot.slane %v2021_v16, 2  ;;  %v2122_v19 = vadd.f32 %v2121_v54, %v2120_v14 }
 0x29a   : > { %v2023_v3 = vadd.f32 %v2022_v20, %v2021_v16  ;;  %v2123_v53 = vrot.slane %v2122_v19, 2 }
 0x29c   : > { %v2024_v52 = vrot.slane %v2023_v3, 1  ;;  %v2124_v10 = vadd.f32 %v2123_v53, %v2122_v19 }
 0x29e   : > { %v2125_v45 = vrot.slane %v2124_v10, 1  ;;  %v2025_v39 = vadd.f32 %v2024_v52, %v2023_v3 }
 0x2a0   : > { %v2126_v58 = vadd.f32 %v2125_v45, %v2124_v10 }
 0x2a2   : > { %v2127_v37 = vsel %vm405_vm0, %v2025_v39, %v2126_v58 }
 0x2a3   : > { %2129 = vst.msk [vmem:[%s235_s25] sm:$0x3] %vm2128_vm13, %v2127_v37 }
 0x2a4 PF: > { %s16_s18 = sadd.s32 1, %s2905_s18  }
 0x2a5   : > { %p13_p4 = scmp.ge.s32.totalorder %s16_s18, 4  }
 0x2a7   :  { %15 = sbr.rel (!%p13_p4) target bundleno = 1 (0x1), region = 78 }

</bundles_post_ra>
